<compile_context>
chip_gen: v7x
topology: tpu7x:2x2x1
jax: 0.10.0
libtpu: 0.0.40
codegen_flags: <defaults>
</compile_context>

<pallas_src>
import functools

import jax
import jax.numpy as jnp
from jax.experimental import pallas as pl
from jax.experimental.pallas import tpu as pltpu

EPS = 1e-4   # PPNet.epsilon


def _round_up(v, m):
    return ((v + m - 1) // m) * m


def _ppnet_kernel(x_ref, wfT_ref, bf_ref, w1T_ref, b1_ref, w2T_ref, b2_ref,
                  proto_ref, wlast_ref, logits_ref, mind_ref, *, hw, bt, mxu_dtype):
    def mm(a, b):
        # MXU matmul; operands optionally cast to bf16, accumulation always f32.
        return jnp.dot(a.astype(mxu_dtype), b.astype(mxu_dtype),
                       preferred_element_type=jnp.float32)

    x = x_ref[...]                                            # (Cin, bt*HW) lane-dense

    # ---- backbone `features` ----
    # TODO(synk): the real VGG/ResNet/DenseNet backbone is an injected external module;
    # modeled here as a single 1x1 conv + ReLU producing first_add_on_layer_in_channels.
    h = jnp.maximum(mm(wfT_ref[...], x) + bf_ref[...], 0.0)   # (Cfeat, bt*HW)

    # ---- add_on_layers (bottleneck): 1x1 conv -> ReLU -> 1x1 conv -> Sigmoid ----
    a = jnp.maximum(mm(w1T_ref[...], h) + b1_ref[...], 0.0)   # (Cp, bt*HW)
    zlin = mm(w2T_ref[...], a) + b2_ref[...]
    z = 0.5 * (jnp.tanh(0.5 * zlin) + 1.0)                    # sigmoid via EUP tanh

    # ---- _l2_convolution (prototypes are (P, Cp, 1, 1)) ----
    proto = proto_ref[...]                                    # (P_pad, Cp), padded rows 0
    p2 = jnp.sum(proto * proto, axis=1, keepdims=True)        # (P_pad, 1)
    x2 = jnp.sum(z * z, axis=0, keepdims=True)                # (1, bt*HW) == conv2d(x^2, ones)
    xp = mm(proto, z)                                         # (P_pad, bt*HW)
    dist = x2 - 2.0 * xp + p2                                 # (P_pad, bt*HW)

    # ---- per-sample spatial min (== -max_pool2d(-dist, full window)) ----
    # Stage 1: VPU elementwise min across the HW/128 lane tiles of each sample
    # (static, 128-aligned lane slices are free).  Stage 2: one cross-lane (XLU) min per
    # sample, written straight into row b of the (bt, P_pad) output tile.
    for b in range(bt):
        d = dist[:, b * hw:(b + 1) * hw]                      # (P_pad, HW)
        if hw % 128 == 0 and hw > 128:
            m = d[:, 0:128]
            for t in range(1, hw // 128):
                m = jnp.minimum(m, d[:, t * 128:(t + 1) * 128])
        else:
            m = d
        mind_ref[b, :] = jnp.min(m, axis=1)                   # (P_pad,)

    # ReLU commutes with min, so the reference's relu(dist) is applied post-reduction.
    min_d = jnp.maximum(mind_ref[...], 0.0)                   # (bt, P_pad)
    mind_ref[...] = min_d

    # ---- distance_2_similarity ('log') + last_layer (no bias) ----
    sim = jnp.log((min_d + 1.0) / (min_d + EPS))              # (bt, P_pad)
    logits_ref[...] = mm(sim, wlast_ref[...])                 # (bt, K_pad); padded rows of
                                                              # wlast are zero -> exact.


def ppnet_forward(x_nchw, params, block_n=64, mxu_dtype=jnp.float32):
    """x_nchw: (N, Cin, H, W).  Returns (logits (N, K), min_distances (N, P))."""
    wfT, bf, w1T, b1, w2T, b2, proto, wlast = params
    N, Cin, H, W = x_nchw.shape
    HW = H * W
    P, K = wlast.shape

    # Lane-dense padded outputs (sliced off below).
    P_pad = _round_up(P, 128)
    K_pad = _round_up(K, 128)

    # Batch block: multiple of 8 (sublane-dense output tiles), capped by block_n.
    # For production sizes (Cfeat >= 512, P ~ 2000) size block_n against VMEM: the
    # dominant live buffer is the (Cfeat, bt*HW) f32 activation -- pick roughly half the
    # v5e/v6e value on v7x (64 MiB VMEM) and keep >= 2 grid steps per TensorCore.
    bt = min(block_n, _round_up(N, 8))
    bt = _round_up(bt, 8)
    n_pad = pl.cdiv(N, bt) * bt

    # NCHW -> (Cin, n_pad*HW): channels on the contraction/sublane axis, samples
    # contiguous along the lane axis (one cheap XLA transpose of a small input).
    x = x_nchw.reshape(N, Cin, HW)
    if n_pad != N:
        x = jnp.pad(x, ((0, n_pad - N), (0, 0), (0, 0)))
    x = jnp.transpose(x, (1, 0, 2)).reshape(Cin, n_pad * HW)

    proto_p = jnp.pad(proto, ((0, P_pad - P), (0, 0)))
    wlast_p = jnp.pad(wlast, ((0, P_pad - P), (0, K_pad - K)))

    L = bt * HW
    kernel = functools.partial(_ppnet_kernel, hw=HW, bt=bt, mxu_dtype=mxu_dtype)

    def full(arr):
        nd = arr.ndim
        return pl.BlockSpec(arr.shape, lambda g, _nd=nd: (0,) * _nd)

    logits, mind = pl.pallas_call(
        kernel,
        out_shape=(jax.ShapeDtypeStruct((n_pad, K_pad), jnp.float32),
                   jax.ShapeDtypeStruct((n_pad, P_pad), jnp.float32)),
        grid_spec=pltpu.PrefetchScalarGridSpec(
            num_scalar_prefetch=0,
            grid=(n_pad // bt,),
            in_specs=[pl.BlockSpec((Cin, L), lambda g: (0, g)),
                      full(wfT), full(bf), full(w1T), full(b1),
                      full(w2T), full(b2), full(proto_p), full(wlast_p)],
            out_specs=[pl.BlockSpec((bt, K_pad), lambda g: (g, 0)),
                       pl.BlockSpec((bt, P_pad), lambda g: (g, 0))],
        ),
        # Per-sample outputs, nothing accumulates across the batch axis -> parallel
        # (lets v7x shard grid steps over both TensorCores).  Explicit VMEM budget keeps
        # headroom below v7x's 64 MiB physical VMEM while allowing large bt tiles.
        compiler_params=pltpu.CompilerParams(
            dimension_semantics=("parallel",),
            vmem_limit_bytes=48 * 1024 * 1024),
    )(x, wfT, bf, w1T, b1, w2T, b2, proto_p, wlast_p)

    return logits[:N, :K], mind[:N, :P]


def _ppnet_reference(x_nchw, params, mxu_dtype=jnp.float32):
    """Pure-JAX reference of the same forward pass (correctness self-check).

    With mxu_dtype=bf16 it applies the same operand casts as the kernel so the reduced
    precision path can be checked tightly as well.
    """
    wfT, bf, w1T, b1, w2T, b2, proto, wlast = params
    N, Cin, H, W = x_nchw.shape
    x = x_nchw.reshape(N, Cin, H * W)
    hi = jax.lax.Precision.HIGHEST

    def mm(eq, a, b):
        return jnp.einsum(eq, a.astype(mxu_dtype), b.astype(mxu_dtype),
                          precision=hi, preferred_element_type=jnp.float32)

    h = jnp.maximum(mm('fc,ncs->nfs', wfT, x) + bf, 0.0)
    a = jnp.maximum(mm('pf,nfs->nps', w1T, h) + b1, 0.0)
    z = jax.nn.sigmoid(mm('qp,nps->nqs', w2T, a) + b2)
    x2 = jnp.sum(z * z, axis=1, keepdims=True)
    xp = mm('pc,ncs->nps', proto, z)
    p2 = jnp.sum(proto * proto, axis=1)[None, :, None]
    dist = jnp.maximum(x2 - 2.0 * xp + p2, 0.0)
    mind = jnp.min(dist, axis=2)
    sim = jnp.log((mind + 1.0) / (mind + EPS))
    logits = mm('np,pk->nk', sim, wlast)
    return logits, mind


if __name__ == "__main__":
    # Small deterministic configuration (consistent with PPNet.__init__ semantics):
    N, Cin, H, W = 2, 4, 16, 16
    Cfeat = 16            # first_add_on_layer_in_channels (backbone output channels)
    Cp = 8                # prototype_shape[1]
    num_classes = 5
    P = 10                # num_prototypes (2 per class); prototype_shape = (P, Cp, 1, 1)

    key = jax.random.PRNGKey(0)
    k = jax.random.split(key, 6)

    # backbone stand-in weights (1x1 conv), stored pre-transposed as (Cout, Cin)
    wfT = jax.random.normal(k[0], (Cfeat, Cin), jnp.float32) * 0.1
    bf = jnp.zeros((Cfeat, 1), jnp.float32)

    # add_on_layers: with Cfeat=16 > Cp=8 the bottleneck builder yields exactly
    # conv1x1(16->8) -> ReLU -> conv1x1(8->8) -> Sigmoid.
    # kaiming_normal_(mode='fan_out', relu) for 1x1 convs: std = sqrt(2 / out_channels)
    w1T = jax.random.normal(k[1], (Cp, Cfeat), jnp.float32) * jnp.sqrt(2.0 / Cp)
    b1 = jnp.zeros((Cp, 1), jnp.float32)
    w2T = jax.random.normal(k[2], (Cp, Cp), jnp.float32) * jnp.sqrt(2.0 / Cp)
    b2 = jnp.zeros((Cp, 1), jnp.float32)

    # prototype_vectors = torch.rand(prototype_shape) -> uniform [0, 1)
    proto = jax.random.uniform(k[3], (P, Cp), jnp.float32)

    # last_layer: set_last_layer_incorrect_connection(incorrect_strength=-0.5)
    proto_class = jnp.arange(P, dtype=jnp.int32) // (P // num_classes)
    class_identity = jnp.zeros((P, num_classes), jnp.float32).at[
        jnp.arange(P), proto_class].set(1.0)
    wlast = 1.0 * class_identity + (-0.5) * (1.0 - class_identity)   # (P, K) = weight.T

    x = jax.random.normal(k[4], (N, Cin, H, W), jnp.float32)
    params = (wfT, bf, w1T, b1, w2T, b2, proto, wlast)

    # ---- f32 MXU path (matches the PyTorch module numerics) ----
    logits, min_distances = ppnet_forward(x, params, mxu_dtype=jnp.float32)
    jax.block_until_ready((logits, min_distances))

    assert logits.shape == (N, num_classes)
    assert min_distances.shape == (N, P)
    assert bool(jnp.all(min_distances >= 0.0))

    ref_logits, ref_mind = _ppnet_reference(x, params, mxu_dtype=jnp.float32)
    assert bool(jnp.allclose(min_distances, ref_mind, atol=2e-3, rtol=2e-3))
    assert bool(jnp.allclose(logits, ref_logits, atol=2e-3, rtol=2e-3))

    # ---- bf16 MXU path (production setting: bf16 operands, f32 accumulation) ----
    logits_bf, mind_bf = ppnet_forward(x, params, mxu_dtype=jnp.bfloat16)
    jax.block_until_ready((logits_bf, mind_bf))
    ref_logits_bf, ref_mind_bf = _ppnet_reference(x, params, mxu_dtype=jnp.bfloat16)
    assert bool(jnp.all(mind_bf >= 0.0))
    assert bool(jnp.allclose(mind_bf, ref_mind_bf, atol=1e-2, rtol=1e-2))
    assert bool(jnp.allclose(logits_bf, ref_logits_bf, atol=1e-2, rtol=1e-2))

    print("KERNEL_OK")
</pallas_src>

<mosaic_0001>
module attributes {stable_mosaic.version = 11 : i64} {
  func.func @_ppnet_kernel(%arg0: i32, %arg1: memref<4x2048xf32, #tpu.memory_space<vmem>>, %arg2: memref<16x4xf32, #tpu.memory_space<vmem>>, %arg3: memref<16x1xf32, #tpu.memory_space<vmem>>, %arg4: memref<8x16xf32, #tpu.memory_space<vmem>>, %arg5: memref<8x1xf32, #tpu.memory_space<vmem>>, %arg6: memref<8x8xf32, #tpu.memory_space<vmem>>, %arg7: memref<8x1xf32, #tpu.memory_space<vmem>>, %arg8: memref<128x8xf32, #tpu.memory_space<vmem>>, %arg9: memref<128x128xf32, #tpu.memory_space<vmem>>, %arg10: memref<8x128xf32, #tpu.memory_space<vmem>>, %arg11: memref<8x128xf32, #tpu.memory_space<vmem>>) attributes {dimension_semantics = [#tpu.dimension_semantics<parallel>], iteration_bounds = array<i64: 1>, scalar_prefetch = 0 : i64, scratch_operands = 0 : i64, tpu.core_type = #tpu.core_type<tc>, window_params = [{transform_indices = @transform_0, window_bounds = array<i64: 4, 2048>}, {pipeline_mode = #tpu.pipeline_mode<synchronous>, transform_indices = @transform_1, window_bounds = array<i64: 16, 4>}, {pipeline_mode = #tpu.pipeline_mode<synchronous>, transform_indices = @transform_2, window_bounds = array<i64: 16, 1>}, {pipeline_mode = #tpu.pipeline_mode<synchronous>, transform_indices = @transform_3, window_bounds = array<i64: 8, 16>}, {pipeline_mode = #tpu.pipeline_mode<synchronous>, transform_indices = @transform_4, window_bounds = array<i64: 8, 1>}, {pipeline_mode = #tpu.pipeline_mode<synchronous>, transform_indices = @transform_5, window_bounds = array<i64: 8, 8>}, {pipeline_mode = #tpu.pipeline_mode<synchronous>, transform_indices = @transform_6, window_bounds = array<i64: 8, 1>}, {pipeline_mode = #tpu.pipeline_mode<synchronous>, transform_indices = @transform_7, window_bounds = array<i64: 128, 8>}, {pipeline_mode = #tpu.pipeline_mode<synchronous>, transform_indices = @transform_8, window_bounds = array<i64: 128, 128>}, {transform_indices = @transform_9, window_bounds = array<i64: 8, 128>}, {transform_indices = @transform_10, window_bounds = array<i64: 8, 128>}]} {
    %c0 = arith.constant 0 : index
    %c0_0 = arith.constant 0 : index
    %0 = vector.load %arg1[%c0, %c0_0] : memref<4x2048xf32, #tpu.memory_space<vmem>>, vector<4x2048xf32>
    %c0_1 = arith.constant 0 : index
    %c0_2 = arith.constant 0 : index
    %1 = vector.load %arg2[%c0_1, %c0_2] : memref<16x4xf32, #tpu.memory_space<vmem>>, vector<16x4xf32>
    %cst = arith.constant dense<0.000000e+00> : vector<16x2048xf32>
    %2 = tpu.matmul %1, %0, %cst {dimension_numbers = #tpu.dot_dimension_numbers<[1], [0], [0], [1], [0, 0, 1, 1], [], []>} : vector<16x4xf32>, vector<4x2048xf32>, vector<16x2048xf32> -> vector<16x2048xf32>
    %c0_3 = arith.constant 0 : index
    %c0_4 = arith.constant 0 : index
    %3 = vector.load %arg3[%c0_3, %c0_4] : memref<16x1xf32, #tpu.memory_space<vmem>>, vector<16x1xf32>
    %4 = vector.broadcast %3 : vector<16x1xf32> to vector<16x2048xf32>
    %5 = arith.addf %2, %4 : vector<16x2048xf32>
    %cst_5 = arith.constant 0.000000e+00 : f32
    %6 = vector.broadcast %cst_5 : f32 to vector<16x2048xf32>
    %7 = arith.maximumf %5, %6 : vector<16x2048xf32>
    %c0_6 = arith.constant 0 : index
    %c0_7 = arith.constant 0 : index
    %8 = vector.load %arg4[%c0_6, %c0_7] : memref<8x16xf32, #tpu.memory_space<vmem>>, vector<8x16xf32>
    %cst_8 = arith.constant dense<0.000000e+00> : vector<8x2048xf32>
    %9 = tpu.matmul %8, %7, %cst_8 {dimension_numbers = #tpu.dot_dimension_numbers<[1], [0], [0], [1], [0, 0, 1, 1], [], []>} : vector<8x16xf32>, vector<16x2048xf32>, vector<8x2048xf32> -> vector<8x2048xf32>
    %c0_9 = arith.constant 0 : index
    %c0_10 = arith.constant 0 : index
    %10 = vector.load %arg5[%c0_9, %c0_10] : memref<8x1xf32, #tpu.memory_space<vmem>>, vector<8x1xf32>
    %11 = vector.broadcast %10 : vector<8x1xf32> to vector<8x2048xf32>
    %12 = arith.addf %9, %11 : vector<8x2048xf32>
    %cst_11 = arith.constant 0.000000e+00 : f32
    %13 = vector.broadcast %cst_11 : f32 to vector<8x2048xf32>
    %14 = arith.maximumf %12, %13 : vector<8x2048xf32>
    %c0_12 = arith.constant 0 : index
    %c0_13 = arith.constant 0 : index
    %15 = vector.load %arg6[%c0_12, %c0_13] : memref<8x8xf32, #tpu.memory_space<vmem>>, vector<8x8xf32>
    %cst_14 = arith.constant dense<0.000000e+00> : vector<8x2048xf32>
    %16 = tpu.matmul %15, %14, %cst_14 {dimension_numbers = #tpu.dot_dimension_numbers<[1], [0], [0], [1], [0, 0, 1, 1], [], []>} : vector<8x8xf32>, vector<8x2048xf32>, vector<8x2048xf32> -> vector<8x2048xf32>
    %c0_15 = arith.constant 0 : index
    %c0_16 = arith.constant 0 : index
    %17 = vector.load %arg7[%c0_15, %c0_16] : memref<8x1xf32, #tpu.memory_space<vmem>>, vector<8x1xf32>
    %18 = vector.broadcast %17 : vector<8x1xf32> to vector<8x2048xf32>
    %19 = arith.addf %16, %18 : vector<8x2048xf32>
    %cst_17 = arith.constant 5.000000e-01 : f32
    %20 = vector.broadcast %cst_17 : f32 to vector<8x2048xf32>
    %21 = arith.mulf %20, %19 : vector<8x2048xf32>
    %22 = math.tanh %21 : vector<8x2048xf32>
    %cst_18 = arith.constant 1.000000e+00 : f32
    %23 = vector.broadcast %cst_18 : f32 to vector<8x2048xf32>
    %24 = arith.addf %22, %23 : vector<8x2048xf32>
    %cst_19 = arith.constant 5.000000e-01 : f32
    %25 = vector.broadcast %cst_19 : f32 to vector<8x2048xf32>
    %26 = arith.mulf %25, %24 : vector<8x2048xf32>
    %c0_20 = arith.constant 0 : index
    %c0_21 = arith.constant 0 : index
    %27 = vector.load %arg8[%c0_20, %c0_21] : memref<128x8xf32, #tpu.memory_space<vmem>>, vector<128x8xf32>
    %28 = arith.mulf %27, %27 : vector<128x8xf32>
    %cst_22 = arith.constant dense<0.000000e+00> : vector<128xf32>
    %29 = vector.multi_reduction <add>, %28, %cst_22 [1] : vector<128x8xf32> to vector<128xf32>
    %30 = vector.shape_cast %29 : vector<128xf32> to vector<128x1xf32>
    %31 = arith.mulf %26, %26 : vector<8x2048xf32>
    %cst_23 = arith.constant dense<0.000000e+00> : vector<2048xf32>
    %32 = vector.multi_reduction <add>, %31, %cst_23 [0] : vector<8x2048xf32> to vector<2048xf32>
    %33 = vector.shape_cast %32 : vector<2048xf32> to vector<1x2048xf32>
    %cst_24 = arith.constant dense<0.000000e+00> : vector<128x2048xf32>
    %34 = tpu.matmul %27, %26, %cst_24 {dimension_numbers = #tpu.dot_dimension_numbers<[1], [0], [0], [1], [0, 0, 1, 1], [], []>} : vector<128x8xf32>, vector<8x2048xf32>, vector<128x2048xf32> -> vector<128x2048xf32>
    %cst_25 = arith.constant 2.000000e+00 : f32
    %35 = vector.broadcast %cst_25 : f32 to vector<128x2048xf32>
    %36 = arith.mulf %35, %34 : vector<128x2048xf32>
    %37 = vector.broadcast %33 : vector<1x2048xf32> to vector<128x2048xf32>
    %38 = arith.subf %37, %36 : vector<128x2048xf32>
    %39 = vector.broadcast %30 : vector<128x1xf32> to vector<128x2048xf32>
    %40 = arith.addf %38, %39 : vector<128x2048xf32>
    %41 = vector.extract_strided_slice %40 {offsets = [0, 0], sizes = [128, 256], strides = [1, 1]} : vector<128x2048xf32> to vector<128x256xf32>
    %42 = vector.extract_strided_slice %41 {offsets = [0, 0], sizes = [128, 128], strides = [1, 1]} : vector<128x256xf32> to vector<128x128xf32>
    %43 = vector.extract_strided_slice %41 {offsets = [0, 128], sizes = [128, 128], strides = [1, 1]} : vector<128x256xf32> to vector<128x128xf32>
    %44 = arith.minimumf %42, %43 : vector<128x128xf32>
    %cst_26 = arith.constant dense<0x7F800000> : vector<128xf32>
    %45 = vector.multi_reduction <minimumf>, %44, %cst_26 [1] : vector<128x128xf32> to vector<128xf32>
    %c0_27 = arith.constant 0 : index
    %c0_28 = arith.constant 0 : index
    %46 = vector.load %arg11[%c0_27, %c0_28] : memref<8x128xf32, #tpu.memory_space<vmem>>, vector<1x128xf32>
    %47 = vector.shape_cast %46 : vector<1x128xf32> to vector<128xf32>
    %48 = vector.shape_cast %45 : vector<128xf32> to vector<1x128xf32>
    tpu.vector_store %arg11[%c0_27, %c0_28], %48 {strides = array<i32>} : memref<8x128xf32, #tpu.memory_space<vmem>>, vector<1x128xf32>,
    %49 = vector.extract_strided_slice %40 {offsets = [0, 256], sizes = [128, 256], strides = [1, 1]} : vector<128x2048xf32> to vector<128x256xf32>
    %50 = vector.extract_strided_slice %49 {offsets = [0, 0], sizes = [128, 128], strides = [1, 1]} : vector<128x256xf32> to vector<128x128xf32>
    %51 = vector.extract_strided_slice %49 {offsets = [0, 128], sizes = [128, 128], strides = [1, 1]} : vector<128x256xf32> to vector<128x128xf32>
    %52 = arith.minimumf %50, %51 : vector<128x128xf32>
    %cst_29 = arith.constant dense<0x7F800000> : vector<128xf32>
    %53 = vector.multi_reduction <minimumf>, %52, %cst_29 [1] : vector<128x128xf32> to vector<128xf32>
    %c1 = arith.constant 1 : index
    %c0_30 = arith.constant 0 : index
    %54 = vector.load %arg11[%c1, %c0_30] : memref<8x128xf32, #tpu.memory_space<vmem>>, vector<1x128xf32>
    %55 = vector.shape_cast %54 : vector<1x128xf32> to vector<128xf32>
    %56 = vector.shape_cast %53 : vector<128xf32> to vector<1x128xf32>
    tpu.vector_store %arg11[%c1, %c0_30], %56 {strides = array<i32>} : memref<8x128xf32, #tpu.memory_space<vmem>>, vector<1x128xf32>,
    %57 = vector.extract_strided_slice %40 {offsets = [0, 512], sizes = [128, 256], strides = [1, 1]} : vector<128x2048xf32> to vector<128x256xf32>
    %58 = vector.extract_strided_slice %57 {offsets = [0, 0], sizes = [128, 128], strides = [1, 1]} : vector<128x256xf32> to vector<128x128xf32>
    %59 = vector.extract_strided_slice %57 {offsets = [0, 128], sizes = [128, 128], strides = [1, 1]} : vector<128x256xf32> to vector<128x128xf32>
    %60 = arith.minimumf %58, %59 : vector<128x128xf32>
    %cst_31 = arith.constant dense<0x7F800000> : vector<128xf32>
    %61 = vector.multi_reduction <minimumf>, %60, %cst_31 [1] : vector<128x128xf32> to vector<128xf32>
    %c2 = arith.constant 2 : index
    %c0_32 = arith.constant 0 : index
    %62 = vector.load %arg11[%c2, %c0_32] : memref<8x128xf32, #tpu.memory_space<vmem>>, vector<1x128xf32>
    %63 = vector.shape_cast %62 : vector<1x128xf32> to vector<128xf32>
    %64 = vector.shape_cast %61 : vector<128xf32> to vector<1x128xf32>
    tpu.vector_store %arg11[%c2, %c0_32], %64 {strides = array<i32>} : memref<8x128xf32, #tpu.memory_space<vmem>>, vector<1x128xf32>,
    %65 = vector.extract_strided_slice %40 {offsets = [0, 768], sizes = [128, 256], strides = [1, 1]} : vector<128x2048xf32> to vector<128x256xf32>
    %66 = vector.extract_strided_slice %65 {offsets = [0, 0], sizes = [128, 128], strides = [1, 1]} : vector<128x256xf32> to vector<128x128xf32>
    %67 = vector.extract_strided_slice %65 {offsets = [0, 128], sizes = [128, 128], strides = [1, 1]} : vector<128x256xf32> to vector<128x128xf32>
    %68 = arith.minimumf %66, %67 : vector<128x128xf32>
    %cst_33 = arith.constant dense<0x7F800000> : vector<128xf32>
    %69 = vector.multi_reduction <minimumf>, %68, %cst_33 [1] : vector<128x128xf32> to vector<128xf32>
    %c3 = arith.constant 3 : index
    %c0_34 = arith.constant 0 : index
    %70 = vector.load %arg11[%c3, %c0_34] : memref<8x128xf32, #tpu.memory_space<vmem>>, vector<1x128xf32>
    %71 = vector.shape_cast %70 : vector<1x128xf32> to vector<128xf32>
    %72 = vector.shape_cast %69 : vector<128xf32> to vector<1x128xf32>
    tpu.vector_store %arg11[%c3, %c0_34], %72 {strides = array<i32>} : memref<8x128xf32, #tpu.memory_space<vmem>>, vector<1x128xf32>,
    %73 = vector.extract_strided_slice %40 {offsets = [0, 1024], sizes = [128, 256], strides = [1, 1]} : vector<128x2048xf32> to vector<128x256xf32>
    %74 = vector.extract_strided_slice %73 {offsets = [0, 0], sizes = [128, 128], strides = [1, 1]} : vector<128x256xf32> to vector<128x128xf32>
    %75 = vector.extract_strided_slice %73 {offsets = [0, 128], sizes = [128, 128], strides = [1, 1]} : vector<128x256xf32> to vector<128x128xf32>
    %76 = arith.minimumf %74, %75 : vector<128x128xf32>
    %cst_35 = arith.constant dense<0x7F800000> : vector<128xf32>
    %77 = vector.multi_reduction <minimumf>, %76, %cst_35 [1] : vector<128x128xf32> to vector<128xf32>
    %c4 = arith.constant 4 : index
    %c0_36 = arith.constant 0 : index
    %78 = vector.load %arg11[%c4, %c0_36] : memref<8x128xf32, #tpu.memory_space<vmem>>, vector<1x128xf32>
    %79 = vector.shape_cast %78 : vector<1x128xf32> to vector<128xf32>
    %80 = vector.shape_cast %77 : vector<128xf32> to vector<1x128xf32>
    tpu.vector_store %arg11[%c4, %c0_36], %80 {strides = array<i32>} : memref<8x128xf32, #tpu.memory_space<vmem>>, vector<1x128xf32>,
    %81 = vector.extract_strided_slice %40 {offsets = [0, 1280], sizes = [128, 256], strides = [1, 1]} : vector<128x2048xf32> to vector<128x256xf32>
    %82 = vector.extract_strided_slice %81 {offsets = [0, 0], sizes = [128, 128], strides = [1, 1]} : vector<128x256xf32> to vector<128x128xf32>
    %83 = vector.extract_strided_slice %81 {offsets = [0, 128], sizes = [128, 128], strides = [1, 1]} : vector<128x256xf32> to vector<128x128xf32>
    %84 = arith.minimumf %82, %83 : vector<128x128xf32>
    %cst_37 = arith.constant dense<0x7F800000> : vector<128xf32>
    %85 = vector.multi_reduction <minimumf>, %84, %cst_37 [1] : vector<128x128xf32> to vector<128xf32>
    %c5 = arith.constant 5 : index
    %c0_38 = arith.constant 0 : index
    %86 = vector.load %arg11[%c5, %c0_38] : memref<8x128xf32, #tpu.memory_space<vmem>>, vector<1x128xf32>
    %87 = vector.shape_cast %86 : vector<1x128xf32> to vector<128xf32>
    %88 = vector.shape_cast %85 : vector<128xf32> to vector<1x128xf32>
    tpu.vector_store %arg11[%c5, %c0_38], %88 {strides = array<i32>} : memref<8x128xf32, #tpu.memory_space<vmem>>, vector<1x128xf32>,
    %89 = vector.extract_strided_slice %40 {offsets = [0, 1536], sizes = [128, 256], strides = [1, 1]} : vector<128x2048xf32> to vector<128x256xf32>
    %90 = vector.extract_strided_slice %89 {offsets = [0, 0], sizes = [128, 128], strides = [1, 1]} : vector<128x256xf32> to vector<128x128xf32>
    %91 = vector.extract_strided_slice %89 {offsets = [0, 128], sizes = [128, 128], strides = [1, 1]} : vector<128x256xf32> to vector<128x128xf32>
    %92 = arith.minimumf %90, %91 : vector<128x128xf32>
    %cst_39 = arith.constant dense<0x7F800000> : vector<128xf32>
    %93 = vector.multi_reduction <minimumf>, %92, %cst_39 [1] : vector<128x128xf32> to vector<128xf32>
    %c6 = arith.constant 6 : index
    %c0_40 = arith.constant 0 : index
    %94 = vector.load %arg11[%c6, %c0_40] : memref<8x128xf32, #tpu.memory_space<vmem>>, vector<1x128xf32>
    %95 = vector.shape_cast %94 : vector<1x128xf32> to vector<128xf32>
    %96 = vector.shape_cast %93 : vector<128xf32> to vector<1x128xf32>
    tpu.vector_store %arg11[%c6, %c0_40], %96 {strides = array<i32>} : memref<8x128xf32, #tpu.memory_space<vmem>>, vector<1x128xf32>,
    %97 = vector.extract_strided_slice %40 {offsets = [0, 1792], sizes = [128, 256], strides = [1, 1]} : vector<128x2048xf32> to vector<128x256xf32>
    %98 = vector.extract_strided_slice %97 {offsets = [0, 0], sizes = [128, 128], strides = [1, 1]} : vector<128x256xf32> to vector<128x128xf32>
    %99 = vector.extract_strided_slice %97 {offsets = [0, 128], sizes = [128, 128], strides = [1, 1]} : vector<128x256xf32> to vector<128x128xf32>
    %100 = arith.minimumf %98, %99 : vector<128x128xf32>
    %cst_41 = arith.constant dense<0x7F800000> : vector<128xf32>
    %101 = vector.multi_reduction <minimumf>, %100, %cst_41 [1] : vector<128x128xf32> to vector<128xf32>
    %c7 = arith.constant 7 : index
    %c0_42 = arith.constant 0 : index
    %102 = vector.load %arg11[%c7, %c0_42] : memref<8x128xf32, #tpu.memory_space<vmem>>, vector<1x128xf32>
    %103 = vector.shape_cast %102 : vector<1x128xf32> to vector<128xf32>
    %104 = vector.shape_cast %101 : vector<128xf32> to vector<1x128xf32>
    tpu.vector_store %arg11[%c7, %c0_42], %104 {strides = array<i32>} : memref<8x128xf32, #tpu.memory_space<vmem>>, vector<1x128xf32>,
    %c0_43 = arith.constant 0 : index
    %c0_44 = arith.constant 0 : index
    %105 = vector.load %arg11[%c0_43, %c0_44] : memref<8x128xf32, #tpu.memory_space<vmem>>, vector<8x128xf32>
    %cst_45 = arith.constant 0.000000e+00 : f32
    %106 = vector.broadcast %cst_45 : f32 to vector<8x128xf32>
    %107 = arith.maximumf %105, %106 : vector<8x128xf32>
    %c0_46 = arith.constant 0 : index
    %c0_47 = arith.constant 0 : index
    %108 = vector.load %arg11[%c0_46, %c0_47] : memref<8x128xf32, #tpu.memory_space<vmem>>, vector<8x128xf32>
    tpu.vector_store %arg11[%c0_46, %c0_47], %107 {strides = array<i32>} : memref<8x128xf32, #tpu.memory_space<vmem>>, vector<8x128xf32>,
    %cst_48 = arith.constant 1.000000e+00 : f32
    %109 = vector.broadcast %cst_48 : f32 to vector<8x128xf32>
    %110 = arith.addf %107, %109 : vector<8x128xf32>
    %cst_49 = arith.constant 9.99999974E-5 : f32
    %111 = vector.broadcast %cst_49 : f32 to vector<8x128xf32>
    %112 = arith.addf %107, %111 : vector<8x128xf32>
    %113 = arith.divf %110, %112 : vector<8x128xf32>
    %114 = math.log %113 : vector<8x128xf32>
    %c0_50 = arith.constant 0 : index
    %c0_51 = arith.constant 0 : index
    %115 = vector.load %arg9[%c0_50, %c0_51] : memref<128x128xf32, #tpu.memory_space<vmem>>, vector<128x128xf32>
    %cst_52 = arith.constant dense<0.000000e+00> : vector<8x128xf32>
    %116 = tpu.matmul %114, %115, %cst_52 {dimension_numbers = #tpu.dot_dimension_numbers<[1], [0], [0], [1], [0, 0, 1, 1], [], []>} : vector<8x128xf32>, vector<128x128xf32>, vector<8x128xf32> -> vector<8x128xf32>
    %c0_53 = arith.constant 0 : index
    %c0_54 = arith.constant 0 : index
    %117 = vector.load %arg10[%c0_53, %c0_54] : memref<8x128xf32, #tpu.memory_space<vmem>>, vector<8x128xf32>
    tpu.vector_store %arg10[%c0_53, %c0_54], %116 {strides = array<i32>} : memref<8x128xf32, #tpu.memory_space<vmem>>, vector<8x128xf32>,
    return
  }
  func.func @transform_0(%arg0: i32) -> (i32, i32) {
    %c0_i32 = arith.constant 0 : i32
    %c0_i32_0 = arith.constant 0 : i32
    return %c0_i32, %arg0 : i32, i32
  }
  func.func @transform_1(%arg0: i32) -> (i32, i32) {
    %c0_i32 = arith.constant 0 : i32
    %c0_i32_0 = arith.constant 0 : i32
    %c0_i32_1 = arith.constant 0 : i32
    return %c0_i32, %c0_i32_0 : i32, i32
  }
  func.func @transform_2(%arg0: i32) -> (i32, i32) {
    %c0_i32 = arith.constant 0 : i32
    %c0_i32_0 = arith.constant 0 : i32
    %c0_i32_1 = arith.constant 0 : i32
    return %c0_i32, %c0_i32_0 : i32, i32
  }
  func.func @transform_3(%arg0: i32) -> (i32, i32) {
    %c0_i32 = arith.constant 0 : i32
    %c0_i32_0 = arith.constant 0 : i32
    %c0_i32_1 = arith.constant 0 : i32
    return %c0_i32, %c0_i32_0 : i32, i32
  }
  func.func @transform_4(%arg0: i32) -> (i32, i32) {
    %c0_i32 = arith.constant 0 : i32
    %c0_i32_0 = arith.constant 0 : i32
    %c0_i32_1 = arith.constant 0 : i32
    return %c0_i32, %c0_i32_0 : i32, i32
  }
  func.func @transform_5(%arg0: i32) -> (i32, i32) {
    %c0_i32 = arith.constant 0 : i32
    %c0_i32_0 = arith.constant 0 : i32
    %c0_i32_1 = arith.constant 0 : i32
    return %c0_i32, %c0_i32_0 : i32, i32
  }
  func.func @transform_6(%arg0: i32) -> (i32, i32) {
    %c0_i32 = arith.constant 0 : i32
    %c0_i32_0 = arith.constant 0 : i32
    %c0_i32_1 = arith.constant 0 : i32
    return %c0_i32, %c0_i32_0 : i32, i32
  }
  func.func @transform_7(%arg0: i32) -> (i32, i32) {
    %c0_i32 = arith.constant 0 : i32
    %c0_i32_0 = arith.constant 0 : i32
    %c0_i32_1 = arith.constant 0 : i32
    return %c0_i32, %c0_i32_0 : i32, i32
  }
  func.func @transform_8(%arg0: i32) -> (i32, i32) {
    %c0_i32 = arith.constant 0 : i32
    %c0_i32_0 = arith.constant 0 : i32
    %c0_i32_1 = arith.constant 0 : i32
    return %c0_i32, %c0_i32_0 : i32, i32
  }
  func.func @transform_9(%arg0: i32) -> (i32, i32) {
    %c0_i32 = arith.constant 0 : i32
    %c0_i32_0 = arith.constant 0 : i32
    return %arg0, %c0_i32 : i32, i32
  }
  func.func @transform_10(%arg0: i32) -> (i32, i32) {
    %c0_i32 = arith.constant 0 : i32
    %c0_i32_0 = arith.constant 0 : i32
    return %arg0, %c0_i32 : i32, i32
  }
}

</mosaic_0001>

<bundles_post_ra>
// kernel: tpu_custom_call.1
= control target key start
LH: loop header
LB: loop body
LE: loop exit
PB: predicated region body
PF: predicated region fallthrough
CT: control target
= control target key end

     0   :  { %16 = vsyncpa [#allocation3], 0  ;;  %vm81_vm0 = vcmask 1043456   ;;  %v8223_v4 = vmov 0.0   ;;  %vm74_vm1 = vcmask 31744   ;;  %v6005_v8 = vmov 0   ;;  %s8212_s0 = inlined_call_operand.vmem [shape: f32[4,2048], index: 0, kind: input, shape index: {}]   ;;  %s8213_s1 = inlined_call_operand.vmem [shape: f32[16,4], index: 1, kind: input, shape index: {}]   ;;  %s8214_s2 = inlined_call_operand.vmem [shape: f32[16,1], index: 2, kind: input, shape index: {}]   ;;  %s8215_s3 = inlined_call_operand.vmem [shape: f32[8,16], index: 3, kind: input, shape index: {}]   ;;  %s8216_s4 = inlined_call_operand.vmem [shape: f32[8,1], index: 4, kind: input, shape index: {}]   ;;  %s8217_s5 = inlined_call_operand.vmem [shape: f32[8,8], index: 5, kind: input, shape index: {}]   ;;  %s8218_s6 = inlined_call_operand.vmem [shape: f32[8,1], index: 6, kind: input, shape index: {}]   ;;  %s8219_s7 = inlined_call_operand.vmem [shape: f32[128,8], index: 7, kind: input, shape index: {}]   ;;  %s8220_s8 = inlined_call_operand.vmem [shape: f32[128,128], index: 8, kind: input, shape index: {}]   ;;  %s8221_s9 = inlined_call_operand.hbm [shape: f32[8,128], index: 9, kind: output, shape index: {0}]   ;;  %s8222_s10 = inlined_call_operand.hbm [shape: f32[8,128], index: 10, kind: output, shape index: {1}]  }
   0x1   :  { %v36_v0 = vld [vmem:[%s8212_s0] sm:$0xff]  ;;  %v37_v1 = vld [vmem:[%s8212_s0 + $0x8] sm:$0xff]  ;;  %178 = vmatprep.mubr.f32.mxu0 %v8223_v4  ;;  %255 = vmatprep.mubr.f32.mxu1 %v8223_v4  ;;  %v38_v5 = vld [vmem:[%s8212_s0 + $0x10] sm:$0xff] }
   0x2   :  { %v66_v2 = vcombine.high %v36_v0, %v36_v0  ;;  %v67_v3 = vcombine.high %v37_v1, %v37_v1  ;;  %v39_v6 = vld [vmem:[%s8212_s0 + $0x18] sm:$0xff]  ;;  %v44_v7 = vld [vmem:[%s8213_s1] sm:$0xff]  ;;  %5902 = vset.pattern.permute.xlu0 %v6005_v8  ;;  %5903 = vset.pattern.permute.xlu1 %v6005_v8  ;;  %v68_v9 = vcombine.high %v38_v5, %v38_v5  ;;  %v41_v12 = vld [vmem:[%s8212_s0 + $0x28] sm:$0xff] }
   0x3   :  { %v69_v10 = vcombine.high %v39_v6, %v39_v6  ;;  %v40_v11 = vld [vmem:[%s8212_s0 + $0x20] sm:$0xff] }
   0x4   :  { %5612 = vmatprep.subr.msk.mxu0 %vm81_vm0, %v66_v2  ;;  %5616 = vmatprep.subr.msk.mxu1 %vm81_vm0, %v67_v3 }
   0x5   :  { %5613 = vmatpush1.msk.msra.mxu0 %vm81_vm0, %v36_v0  ;;  %5617 = vmatpush1.msk.msra.mxu1 %vm81_vm0, %v37_v1 }
   0x6   :  { %17 = vsyncpa [#allocation5], 0  ;;  %5614 = vmatmul.mubr.msk.f32.vlgmr.msra.gmra.mrb[0].mxu0 %vm74_vm1, %v44_v7  ;;  %5618 = vmatmul.mubr.msk.f32.vlgmr.msra.gmra.mrb[0].mxu1 %vm74_vm1, %v44_v7  ;;  %v45_v13 = vld [vmem:[%s8213_s1 + $0x8] sm:$0xff]  ;;  %v70_v14 = vcombine.high %v40_v11, %v40_v11  ;;  %v71_v15 = vcombine.high %v41_v12, %v41_v12  ;;  %v42_v16 = vld [vmem:[%s8212_s0 + $0x30] sm:$0xff]  ;;  %vm769_vm2 = vcmask 130048   ;;  %vm1364_vm3 = vcmask 64512  }
   0x7   :  { %184 = vmatprep.mubr.f32.mxu0 %v8223_v4  ;;  %261 = vmatprep.mubr.f32.mxu1 %v8223_v4  ;;  %v43_v17 = vld [vmem:[%s8212_s0 + $0x38] sm:$0xff]  ;;  %v46_v18 = vld [vmem:[%s8214_s2] sm:$0xff]  ;;  %v72_v19 = vcombine.high %v42_v16, %v42_v16  ;;  %v47_v21 = vld [vmem:[%s8214_s2 + $0x8] sm:$0xff]  ;;  %vm4371_vm4 = vcmask 130112   ;;  %vm4378_vm5 = vcmask 195712   ;;  %vm4385_vm6 = vcmask 261312  }
   0x8   :  { %5620 = vmatprep.subr.msk.mxu0 %vm81_vm0, %v68_v9  ;;  %5624 = vmatprep.subr.msk.mxu1 %vm81_vm0, %v69_v10  ;;  %v73_v20 = vcombine.high %v43_v17, %v43_v17  ;;  %v763_v22 = vld [vmem:[%s8216_s4] sm:$0xff]  ;;  %vm4392_vm7 = vcmask 326912   ;;  %vm4399_vm8 = vcmask 392512   ;;  %vm4406_vm9 = vcmask 458112  }
   0x9   :  { %5621 = vmatpush1.msk.msra.mxu0 %vm81_vm0, %v38_v5  ;;  %5625 = vmatpush1.msk.msra.mxu1 %vm81_vm0, %v39_v6  ;;  %v1358_v23 = vld [vmem:[%s8218_s6] sm:$0xff]  ;;  %vm4413_vm10 = vcmask 523712   ;;  %vm4420_vm11 = vcmask 589312   ;;  %vm4427_vm12 = vcmask 654912   ;;  %vm4434_vm13 = vcmask 720512  }
   0xa   :  { %5615 = vmatmul.mubr.msk.f32.gmra.mrb[2].mxu0 %vm74_vm1, %v45_v13  ;;  %5619 = vmatmul.mubr.msk.f32.gmra.mrb[2].mxu1 %vm74_vm1, %v45_v13  ;;  %v6178_v5 = vld [vmem:[%s8215_s3] sm:$0xff]  ;;  %vm4441_vm14 = vcmask 786112   ;;  %vm4448_vm15 = vcmask 851712  }
   0xb   :  { %332 = vmatprep.mubr.f32.mxu0 %v8223_v4  ;;  %409 = vmatprep.mubr.f32.mxu1 %v8223_v4 }
   0xc   :  { %5628 = vmatprep.subr.msk.mxu0 %vm81_vm0, %v70_v14  ;;  %5632 = vmatprep.subr.msk.mxu1 %vm81_vm0, %v71_v15 }
   0xd   :  { %50 = vperm.xlu0 %5902, %v46_v18   ;;  %766 = vperm.xlu1 %5903, %v763_v22  }
   0xe   :  { %5622 = vmatmul.mubr.msk.f32.vlgmr.msra.gmra.mrb[4].mxu0 %vm74_vm1, %v44_v7  ;;  %5626 = vmatmul.mubr.msk.f32.vlgmr.msra.gmra.mrb[4].mxu1 %vm74_vm1, %v44_v7 }
   0xf   :  { %338 = vmatprep.mubr.f32.mxu0 %v8223_v4  ;;  %415 = vmatprep.mubr.f32.mxu1 %v8223_v4 }
  0x10   :  { %5629 = vmatpush1.msk.msra.mxu0 %vm81_vm0, %v40_v11  ;;  %5633 = vmatpush1.msk.msra.mxu1 %vm81_vm0, %v41_v12 }
  0x11   :  { %5636 = vmatprep.subr.msk.mxu0 %vm81_vm0, %v72_v19  ;;  %5640 = vmatprep.subr.msk.mxu1 %vm81_vm0, %v73_v20 }
  0x12   :  { %5623 = vmatmul.mubr.msk.f32.gmra.mrb[6].mxu0 %vm74_vm1, %v45_v13  ;;  %5627 = vmatmul.mubr.msk.f32.gmra.mrb[6].mxu1 %vm74_vm1, %v45_v13 }
  0x13   :  { %486 = vmatprep.mubr.f32.mxu0 %v8223_v4  ;;  %563 = vmatprep.mubr.f32.mxu1 %v8223_v4 }
  0x14   :  { %55 = vperm.xlu0 %5902, %v47_v21   ;;  %1361 = vperm.xlu1 %5903, %v1358_v23  }
  0x16   :  { %5630 = vmatmul.mubr.msk.f32.vlgmr.msra.gmra.mrb[8].mxu0 %vm74_vm1, %v44_v7  ;;  %5634 = vmatmul.mubr.msk.f32.vlgmr.msra.gmra.mrb[8].mxu1 %vm74_vm1, %v44_v7 }
  0x17   :  { %492 = vmatprep.mubr.f32.mxu0 %v8223_v4  ;;  %569 = vmatprep.mubr.f32.mxu1 %v8223_v4 }
  0x18   :  { %5637 = vmatpush1.msk.msra.mxu0 %vm81_vm0, %v42_v16  ;;  %5641 = vmatpush1.msk.msra.mxu1 %vm81_vm0, %v43_v17  ;;  %vm4455_vm0 = vcmask 917312  }
  0x1a   :  { %5631 = vmatmul.mubr.msk.f32.gmra.mrb[10].mxu0 %vm74_vm1, %v45_v13  ;;  %5635 = vmatmul.mubr.msk.f32.gmra.mrb[10].mxu1 %vm74_vm1, %v45_v13 }
  0x1b   :  { %640 = vmatprep.mubr.f32.mxu0 %v8223_v4  ;;  %717 = vmatprep.mubr.f32.mxu1 %v8223_v4 }
  0x1e   :  { %5638 = vmatmul.mubr.msk.f32.vlgmr.msra.gmra.mrb[12].mxu0 %vm74_vm1, %v44_v7  ;;  %5642 = vmatmul.mubr.msk.f32.vlgmr.msra.gmra.mrb[12].mxu1 %vm74_vm1, %v44_v7 }
  0x1f   :  { %646 = vmatprep.mubr.f32.mxu0 %v8223_v4  ;;  %723 = vmatprep.mubr.f32.mxu1 %v8223_v4 }
  0x22   :  { %5639 = vmatmul.mubr.msk.f32.gmra.mrb[14].mxu0 %vm74_vm1, %v45_v13  ;;  %5643 = vmatmul.mubr.msk.f32.gmra.mrb[14].mxu1 %vm74_vm1, %v45_v13  ;;  %vm4462_vm1 = vcmask 982912  }
  0x23   :  { %837 = vmatprep.mubr.f32.mxu0 %v8223_v4  ;;  %908 = vmatprep.mubr.f32.mxu1 %v8223_v4 }
  0x8c   :  { %v6157_v24 = vpop.permute.xlu0 %50 }
  0x93   :  { %v6161_v31 = vpop.permute.xlu0 %55 }
  0xd9   :  { %v180_v25 = vpop.f32.mrb[0].mxu0  ;;  %v257_v26 = vpop.f32.mrb[0].mxu1 }
  0xda   :  { %v182_v27 = vpop.f32.mrb[1].mxu0  ;;  %v259_v28 = vpop.f32.mrb[1].mxu1  ;;  %v181_v29 = vadd.f32 %v180_v25, %v6157_v24  ;;  %v258_v30 = vadd.f32 %v257_v26, %v6157_v24 }
  0xdb   :  { %v183_v32 = vadd.f32 %v182_v27, %v6157_v24  ;;  %v260_v33 = vadd.f32 %v259_v28, %v6157_v24 }
  0xdc   :  { %v730_v42 = vmax.f32 %v181_v29, 0.0  ;;  %v732_v43 = vmax.f32 %v258_v30, 0.0 }
  0xdd   :  { %v186_v34 = vpop.f32.mrb[2].mxu0  ;;  %v263_v35 = vpop.f32.mrb[2].mxu1  ;;  %v731_v46 = vmax.f32 %v183_v32, 0.0  ;;  %v733_v47 = vmax.f32 %v260_v33, 0.0 }
  0xde   :  { %v187_v36 = vadd.f32 %v186_v34, %v6161_v31  ;;  %v264_v37 = vadd.f32 %v263_v35, %v6161_v31  ;;  %v188_v38 = vpop.f32.mrb[3].mxu0  ;;  %v265_v39 = vpop.f32.mrb[3].mxu1 }
  0xdf   :  { %v189_v40 = vadd.f32 %v188_v38, %v6161_v31  ;;  %v266_v41 = vadd.f32 %v265_v39, %v6161_v31 }
  0xe0   :  { %v746_v44 = vmax.f32 %v187_v36, 0.0  ;;  %v748_v45 = vmax.f32 %v264_v37, 0.0 }
  0xe1   :  { %v747_v48 = vmax.f32 %v189_v40, 0.0  ;;  %v749_v49 = vmax.f32 %v266_v41, 0.0  ;;  %v334_v50 = vpop.f32.mrb[4].mxu0  ;;  %v411_v51 = vpop.f32.mrb[4].mxu1 }
  0xe2   :  { %v5842_v52 = vpack.c.bf16 %v746_v44, %v730_v42  ;;  %v5846_v53 = vpack.c.bf16 %v748_v45, %v732_v43  ;;  %v336_v54 = vpop.f32.mrb[5].mxu0  ;;  %v413_v55 = vpop.f32.mrb[5].mxu1  ;;  %v335_v58 = vadd.f32 %v334_v50, %v6157_v24  ;;  %v412_v59 = vadd.f32 %v411_v51, %v6157_v24 }
  0xe3   :  { %v5840_v56 = vpack.c.bf16 %v747_v48, %v731_v46  ;;  %v5844_v57 = vpack.c.bf16 %v749_v49, %v733_v47  ;;  %v337_v60 = vadd.f32 %v336_v54, %v6157_v24  ;;  %v414_v61 = vadd.f32 %v413_v55, %v6157_v24 }
  0xe4   :  { %v734_v8 = vmax.f32 %v335_v58, 0.0  ;;  %v736_v9 = vmax.f32 %v412_v59, 0.0 }
  0xe5   :  { %v340_v62 = vpop.f32.mrb[6].mxu0  ;;  %v417_v63 = vpop.f32.mrb[6].mxu1  ;;  %5841 = vmatprep.subr.bf16.mxu0 %v5840_v56  ;;  %5845 = vmatprep.subr.bf16.mxu1 %v5844_v57  ;;  %v735_v12 = vmax.f32 %v337_v60, 0.0  ;;  %v737_v13 = vmax.f32 %v414_v61, 0.0 }
  0xe6   :  { %v341_v0 = vadd.f32 %v340_v62, %v6161_v31  ;;  %v418_v1 = vadd.f32 %v417_v63, %v6161_v31  ;;  %v342_v2 = vpop.f32.mrb[7].mxu0  ;;  %v419_v3 = vpop.f32.mrb[7].mxu1  ;;  %5843 = vmatpush1.bf16.msra.mxu0 %v5842_v52  ;;  %5847 = vmatpush1.bf16.msra.mxu1 %v5846_v53 }
  0xe7   :  { %v343_v6 = vadd.f32 %v342_v2, %v6161_v31  ;;  %v420_v7 = vadd.f32 %v419_v3, %v6161_v31 }
  0xe8   :  { %v750_v10 = vmax.f32 %v341_v0, 0.0  ;;  %v752_v11 = vmax.f32 %v418_v1, 0.0 }
  0xe9   :  { %v751_v14 = vmax.f32 %v343_v6, 0.0  ;;  %v753_v15 = vmax.f32 %v420_v7, 0.0  ;;  %v488_v16 = vpop.f32.mrb[8].mxu0  ;;  %v565_v17 = vpop.f32.mrb[8].mxu1  ;;  %5644 = vmatmul.mubr.msk.f32.vlgmr.msra.gmra.mrb[16].mxu0 %vm769_vm2, %v6178_v5  ;;  %5645 = vmatmul.mubr.msk.f32.vlgmr.msra.gmra.mrb[16].mxu1 %vm769_vm2, %v6178_v5 }
  0xea   :  { %v5850_v18 = vpack.c.bf16 %v750_v10, %v734_v8  ;;  %v5854_v19 = vpack.c.bf16 %v752_v11, %v736_v9  ;;  %v490_v20 = vpop.f32.mrb[9].mxu0  ;;  %v567_v21 = vpop.f32.mrb[9].mxu1  ;;  %979 = vmatprep.mubr.f32.mxu0 %v8223_v4  ;;  %1050 = vmatprep.mubr.f32.mxu1 %v8223_v4  ;;  %v489_v25 = vadd.f32 %v488_v16, %v6157_v24 }
  0xeb   :  { %v5848_v22 = vpack.c.bf16 %v751_v14, %v735_v12  ;;  %v5852_v23 = vpack.c.bf16 %v753_v15, %v737_v13  ;;  %v566_v26 = vadd.f32 %v565_v17, %v6157_v24  ;;  %v491_v27 = vadd.f32 %v490_v20, %v6157_v24  ;;  %v6222_v14 = vpop.permute.xlu1 %766 }
  0xec   :  { %v568_v28 = vadd.f32 %v567_v21, %v6157_v24  ;;  %v738_v38 = vmax.f32 %v489_v25, 0.0 }
  0xed   :  { %v494_v29 = vpop.f32.mrb[10].mxu0  ;;  %v571_v30 = vpop.f32.mrb[10].mxu1  ;;  %5849 = vmatprep.subr.bf16.mxu0 %v5848_v22  ;;  %5853 = vmatprep.subr.bf16.mxu1 %v5852_v23  ;;  %v740_v39 = vmax.f32 %v566_v26, 0.0  ;;  %v739_v42 = vmax.f32 %v491_v27, 0.0  ;;  %v6231_v27 = vld [vmem:[%s8217_s5] sm:$0xff] }
  0xee   :  { %v495_v32 = vadd.f32 %v494_v29, %v6161_v31  ;;  %v572_v33 = vadd.f32 %v571_v30, %v6161_v31  ;;  %v496_v34 = vpop.f32.mrb[11].mxu0  ;;  %v573_v35 = vpop.f32.mrb[11].mxu1  ;;  %5851 = vmatpush1.bf16.msra.mxu0 %v5850_v18  ;;  %5855 = vmatpush1.bf16.msra.mxu1 %v5854_v19  ;;  %v741_v43 = vmax.f32 %v568_v28, 0.0 }
  0xef   :  { %v497_v36 = vadd.f32 %v496_v34, %v6161_v31  ;;  %v574_v37 = vadd.f32 %v573_v35, %v6161_v31 }
  0xf0   :  { %v754_v40 = vmax.f32 %v495_v32, 0.0  ;;  %v756_v41 = vmax.f32 %v572_v33, 0.0 }
  0xf1   :  { %v755_v44 = vmax.f32 %v497_v36, 0.0  ;;  %v757_v45 = vmax.f32 %v574_v37, 0.0  ;;  %v642_v46 = vpop.f32.mrb[12].mxu0  ;;  %v719_v47 = vpop.f32.mrb[12].mxu1  ;;  %5646 = vmatmul.mubr.msk.f32.vlgmr.msra.gmra.mrb[18].mxu0 %vm769_vm2, %v6178_v5  ;;  %5647 = vmatmul.mubr.msk.f32.vlgmr.msra.gmra.mrb[18].mxu1 %vm769_vm2, %v6178_v5 }
  0xf2   :  { %v5858_v48 = vpack.c.bf16 %v754_v40, %v738_v38  ;;  %v5862_v49 = vpack.c.bf16 %v756_v41, %v740_v39  ;;  %v644_v50 = vpop.f32.mrb[13].mxu0  ;;  %v721_v51 = vpop.f32.mrb[13].mxu1  ;;  %1121 = vmatprep.mubr.f32.mxu0 %v8223_v4  ;;  %1192 = vmatprep.mubr.f32.mxu1 %v8223_v4  ;;  %v643_v54 = vadd.f32 %v642_v46, %v6157_v24 }
  0xf3   :  { %v5856_v52 = vpack.c.bf16 %v755_v44, %v739_v42  ;;  %v5860_v53 = vpack.c.bf16 %v757_v45, %v741_v43  ;;  %v720_v55 = vadd.f32 %v719_v47, %v6157_v24  ;;  %v645_v56 = vadd.f32 %v644_v50, %v6157_v24 }
  0xf4   :  { %v722_v57 = vadd.f32 %v721_v51, %v6157_v24  ;;  %v742_v2 = vmax.f32 %v643_v54, 0.0 }
  0xf5   :  { %v648_v58 = vpop.f32.mrb[14].mxu0  ;;  %v725_v59 = vpop.f32.mrb[14].mxu1  ;;  %5857 = vmatprep.subr.bf16.mxu0 %v5856_v52  ;;  %5861 = vmatprep.subr.bf16.mxu1 %v5860_v53  ;;  %v744_v3 = vmax.f32 %v720_v55, 0.0  ;;  %v743_v7 = vmax.f32 %v645_v56, 0.0 }
  0xf6   :  { %v649_v60 = vadd.f32 %v648_v58, %v6161_v31  ;;  %v726_v61 = vadd.f32 %v725_v59, %v6161_v31  ;;  %v650_v62 = vpop.f32.mrb[15].mxu0  ;;  %v727_v63 = vpop.f32.mrb[15].mxu1  ;;  %5859 = vmatpush1.bf16.msra.mxu0 %v5858_v48  ;;  %5863 = vmatpush1.bf16.msra.mxu1 %v5862_v49  ;;  %v745_v8 = vmax.f32 %v722_v57, 0.0 }
  0xf7   :  { %v651_v0 = vadd.f32 %v650_v62, %v6161_v31  ;;  %v728_v1 = vadd.f32 %v727_v63, %v6161_v31 }
  0xf8   :  { %v758_v6 = vmax.f32 %v649_v60, 0.0  ;;  %v760_v24 = vmax.f32 %v726_v61, 0.0 }
  0xf9   :  { %v759_v9 = vmax.f32 %v651_v0, 0.0  ;;  %v761_v10 = vmax.f32 %v728_v1, 0.0  ;;  %5648 = vmatmul.mubr.msk.f32.vlgmr.msra.gmra.mrb[20].mxu0 %vm769_vm2, %v6178_v5  ;;  %5649 = vmatmul.mubr.msk.f32.vlgmr.msra.gmra.mrb[20].mxu1 %vm769_vm2, %v6178_v5  ;;  %v6272_v1 = vld [vmem:[%s8219_s7] sm:$0xff] }
  0xfa   :  { %v5866_v11 = vpack.c.bf16 %v758_v6, %v742_v2  ;;  %v5870_v12 = vpack.c.bf16 %v760_v24, %v744_v3  ;;  %1263 = vmatprep.mubr.f32.mxu0 %v8223_v4  ;;  %1334 = vmatprep.mubr.f32.mxu1 %v8223_v4  ;;  %v2016_v2 = vmul.f32 %v6272_v1, %v6272_v1  ;;  %v6280_v6 = vld [vmem:[%s8219_s7 + $0x8] sm:$0xff] }
  0xfb   :  { %v5864_v31 = vpack.c.bf16 %v759_v9, %v743_v7  ;;  %v5868_v13 = vpack.c.bf16 %v761_v10, %v745_v8  ;;  %v2017_v24 = vmul.f32 %v6280_v6, %v6280_v6  ;;  %v6288_v8 = vld [vmem:[%s8219_s7 + $0x10] sm:$0xff] }
  0xfc   :  { %v2032_v3 = vsel %vm1364_vm3, %v2016_v2, 0.0  ;;  %v2018_v9 = vmul.f32 %v6288_v8, %v6288_v8 }
  0xfd   :  { %5865 = vmatprep.subr.bf16.mxu0 %v5864_v31  ;;  %5869 = vmatprep.subr.bf16.mxu1 %v5868_v13  ;;  %v2035_v7 = vsel %vm1364_vm3, %v2017_v24, 0.0  ;;  %v6304_v13 = vld [vmem:[%s8219_s7 + $0x20] sm:$0xff] }
  0xfe   :  { %5867 = vmatpush1.bf16.msra.mxu0 %v5866_v11  ;;  %5871 = vmatpush1.bf16.msra.mxu1 %v5870_v12  ;;  %v2038_v10 = vsel %vm1364_vm3, %v2018_v9, 0.0  ;;  %v6296_v11 = vld [vmem:[%s8219_s7 + $0x18] sm:$0xff] }
  0xff   :  { %2033 = vadd.xlane.f32.xlu0 %v2032_v3  ;;  %2036 = vadd.xlane.f32.xlu1 %v2035_v7  ;;  %v2019_v12 = vmul.f32 %v6296_v11, %v6296_v11 }
 0x101   :  { %5650 = vmatmul.mubr.msk.f32.vlgmr.msra.gmra.mrb[22].mxu0 %vm769_vm2, %v6178_v5  ;;  %5651 = vmatmul.mubr.msk.f32.vlgmr.msra.gmra.mrb[22].mxu1 %vm769_vm2, %v6178_v5  ;;  %v2041_v31 = vsel %vm1364_vm3, %v2019_v12, 0.0  ;;  %vm4469_vm2 = vcmask 1048512  }
 0x102   :  { %1432 = vmatprep.mubr.f32.mxu0 %v8223_v4  ;;  %1503 = vmatprep.mubr.f32.mxu1 %v8223_v4 }
 0x103   :  { %2039 = vadd.xlane.f32.xlu0 %v2038_v10 }
 0x107   :  { %2042 = vadd.xlane.f32.xlu0 %v2041_v31 }
 0x1bc   :  { %v839_v15 = vpop.f32.mrb[16].mxu0  ;;  %v910_v16 = vpop.f32.mrb[16].mxu1 }
 0x1bd   :  { %v841_v17 = vpop.f32.mrb[17].mxu0  ;;  %v912_v18 = vpop.f32.mrb[17].mxu1  ;;  %v840_v19 = vadd.f32 %v839_v15, %v6222_v14  ;;  %v911_v20 = vadd.f32 %v910_v16, %v6222_v14  ;;  %v6312_v16 = vld [vmem:[%s8219_s7 + $0x28] sm:$0xff] }
 0x1be   :  { %v842_v21 = vadd.f32 %v841_v17, %v6222_v14  ;;  %v913_v22 = vadd.f32 %v912_v18, %v6222_v14  ;;  %v2021_v17 = vmul.f32 %v6312_v16, %v6312_v16 }
 0x1bf   :  { %v1343_v23 = vmax.f32 %v911_v20, 0.0  ;;  %v1341_v26 = vmax.f32 %v840_v19, 0.0  ;;  %v6320_v19 = vld [vmem:[%s8219_s7 + $0x30] sm:$0xff] }
 0x1c0   :  { %v1342_v5 = vmax.f32 %v842_v21, 0.0  ;;  %v1344_v25 = vmax.f32 %v913_v22, 0.0  ;;  %v2047_v18 = vsel %vm1364_vm3, %v2021_v17, 0.0  ;;  %v2022_v20 = vmul.f32 %v6320_v19, %v6320_v19  ;;  %v6328_v22 = vld [vmem:[%s8219_s7 + $0x38] sm:$0xff] }
 0x1c1   :  { %2048 = vadd.xlane.f32.xlu0 %v2047_v18 }
 0x1c2   :  { %1368 = vmatprep.subr.mxu0 %v1342_v5  ;;  %1439 = vmatprep.subr.mxu1 %v1344_v25  ;;  %v2050_v21 = vsel %vm1364_vm3, %v2022_v20, 0.0  ;;  %v6332_v5 = vpop.permute.xlu1 %1361 }
 0x1c3   :  { %1369 = vmatpush1.msra.mxu0 %v1341_v26  ;;  %1440 = vmatpush1.msra.mxu1 %v1343_v23  ;;  %v2023_v23 = vmul.f32 %v6328_v22, %v6328_v22 }
 0x1c4   :  { %v981_v28 = vpop.f32.mrb[18].mxu0  ;;  %v1052_v29 = vpop.f32.mrb[18].mxu1  ;;  %5652 = vmatmul.mubr.msk.f32.vlgmr.msra.gmra.mrb[24].mxu0 %vm1364_vm3, %v6231_v27  ;;  %5653 = vmatmul.mubr.msk.f32.vlgmr.msra.gmra.mrb[24].mxu1 %vm1364_vm3, %v6231_v27 }
 0x1c5   :  { %v982_v30 = vadd.f32 %v981_v28, %v6222_v14  ;;  %v1053_v32 = vadd.f32 %v1052_v29, %v6222_v14  ;;  %v983_v33 = vpop.f32.mrb[19].mxu0  ;;  %v1054_v34 = vpop.f32.mrb[19].mxu1  ;;  %1574 = vmatprep.mubr.f32.mxu0 %v8223_v4  ;;  %1645 = vmatprep.mubr.f32.mxu1 %v8223_v4 }
 0x1c6   :  { %v984_v35 = vadd.f32 %v983_v33, %v6222_v14  ;;  %v1055_v36 = vadd.f32 %v1054_v34, %v6222_v14  ;;  %v6340_v33 = vld [vmem:[%s8219_s7 + $0x40] sm:$0xff] }
 0x1c7   :  { %v1345_v39 = vmax.f32 %v982_v30, 0.0  ;;  %v1347_v40 = vmax.f32 %v1053_v32, 0.0 }
 0x1c8   :  { %v1346_v37 = vmax.f32 %v984_v35, 0.0  ;;  %v1348_v38 = vmax.f32 %v1055_v36, 0.0  ;;  %v2024_v36 = vmul.f32 %v6340_v33, %v6340_v33 }
 0x1ca   :  { %1510 = vmatprep.subr.mxu0 %v1346_v37  ;;  %1581 = vmatprep.subr.mxu1 %v1348_v38 }
 0x1cb   :  { %1511 = vmatpush1.msra.mxu0 %v1345_v39  ;;  %1582 = vmatpush1.msra.mxu1 %v1347_v40 }
 0x1cc   :  { %v1123_v41 = vpop.f32.mrb[20].mxu0  ;;  %v1194_v42 = vpop.f32.mrb[20].mxu1  ;;  %5654 = vmatmul.mubr.msk.f32.vlgmr.msra.gmra.mrb[26].mxu0 %vm1364_vm3, %v6231_v27  ;;  %5655 = vmatmul.mubr.msk.f32.vlgmr.msra.gmra.mrb[26].mxu1 %vm1364_vm3, %v6231_v27 }
 0x1cd   :  { %v1124_v43 = vadd.f32 %v1123_v41, %v6222_v14  ;;  %v1195_v44 = vadd.f32 %v1194_v42, %v6222_v14  ;;  %v1125_v45 = vpop.f32.mrb[21].mxu0  ;;  %v1196_v46 = vpop.f32.mrb[21].mxu1  ;;  %1716 = vmatprep.mubr.f32.mxu0 %v8223_v4  ;;  %1787 = vmatprep.mubr.f32.mxu1 %v8223_v4  ;;  %v2056_v41 = vsel %vm1364_vm3, %v2024_v36, 0.0  ;;  %v6350_v42 = vld [vmem:[%s8219_s7 + $0x48] sm:$0xff] }
 0x1ce   :  { %v1126_v47 = vadd.f32 %v1125_v45, %v6222_v14  ;;  %v1197_v48 = vadd.f32 %v1196_v46, %v6222_v14 }
 0x1cf   :  { %v1349_v51 = vmax.f32 %v1124_v43, 0.0  ;;  %v1351_v52 = vmax.f32 %v1195_v44, 0.0  ;;  %v2025_v43 = vmul.f32 %v6350_v42, %v6350_v42 }
 0x1d0   :  { %v1350_v49 = vmax.f32 %v1126_v47, 0.0  ;;  %v1352_v50 = vmax.f32 %v1197_v48, 0.0 }
 0x1d1   :  { %v2059_v46 = vsel %vm1364_vm3, %v2025_v43, 0.0 }
 0x1d2   :  { %1652 = vmatprep.subr.mxu0 %v1350_v49  ;;  %1723 = vmatprep.subr.mxu1 %v1352_v50  ;;  %v6359_v50 = vld [vmem:[%s8219_s7 + $0x50] sm:$0xff] }
 0x1d3   :  { %1653 = vmatpush1.msra.mxu0 %v1349_v51  ;;  %1724 = vmatpush1.msra.mxu1 %v1351_v52  ;;  %v2026_v51 = vmul.f32 %v6359_v50, %v6359_v50 }
 0x1d4   :  { %v1265_v53 = vpop.f32.mrb[22].mxu0  ;;  %v1336_v54 = vpop.f32.mrb[22].mxu1  ;;  %5656 = vmatmul.mubr.msk.f32.vlgmr.msra.gmra.mrb[28].mxu0 %vm1364_vm3, %v6231_v27  ;;  %5657 = vmatmul.mubr.msk.f32.vlgmr.msra.gmra.mrb[28].mxu1 %vm1364_vm3, %v6231_v27 }
 0x1d5   :  { %v1266_v55 = vadd.f32 %v1265_v53, %v6222_v14  ;;  %v1337_v56 = vadd.f32 %v1336_v54, %v6222_v14  ;;  %v1267_v57 = vpop.f32.mrb[23].mxu0  ;;  %v1338_v58 = vpop.f32.mrb[23].mxu1  ;;  %1858 = vmatprep.mubr.f32.mxu0 %v8223_v4  ;;  %1929 = vmatprep.mubr.f32.mxu1 %v8223_v4  ;;  %v2062_v54 = vsel %vm1364_vm3, %v2026_v51, 0.0 }
 0x1d6   :  { %v1268_v59 = vadd.f32 %v1267_v57, %v6222_v14  ;;  %v1339_v60 = vadd.f32 %v1338_v58, %v6222_v14  ;;  %v2020_v14 = vmul.f32 %v6304_v13, %v6304_v13  ;;  %v6370_v57 = vld [vmem:[%s8219_s7 + $0x58] sm:$0xff] }
 0x1d7   :  { %v1353_v63 = vmax.f32 %v1266_v55, 0.0  ;;  %v1355_v0 = vmax.f32 %v1337_v56, 0.0  ;;  %v2027_v58 = vmul.f32 %v6370_v57, %v6370_v57 }
 0x1d8   :  { %v1354_v61 = vmax.f32 %v1268_v59, 0.0  ;;  %v1356_v62 = vmax.f32 %v1339_v60, 0.0  ;;  %v2044_v15 = vsel %vm1364_vm3, %v2020_v14, 0.0 }
 0x1d9   :  { %2045 = vadd.xlane.f32.xlu1 %v2044_v15  ;;  %v2065_v2 = vsel %vm1364_vm3, %v2027_v58, 0.0 }
 0x1da   :  { %1794 = vmatprep.subr.mxu0 %v1354_v61  ;;  %1865 = vmatprep.subr.mxu1 %v1356_v62 }
 0x1db   :  { %1795 = vmatpush1.msra.mxu0 %v1353_v63  ;;  %1866 = vmatpush1.msra.mxu1 %v1355_v0 }
 0x1dc   :  { %5658 = vmatmul.mubr.msk.f32.vlgmr.msra.gmra.mrb[30].mxu0 %vm1364_vm3, %v6231_v27  ;;  %5659 = vmatmul.mubr.msk.f32.vlgmr.msra.gmra.mrb[30].mxu1 %vm1364_vm3, %v6231_v27  ;;  %v2053_v27 = vsel %vm1364_vm3, %v2023_v23, 0.0 }
 0x1dd   :  { %2304 = vmatprep.mubr.f32.mxu0 %v8223_v4  ;;  %2465 = vmatprep.mubr.f32.mxu1 %v8223_v4 }
 0x1de   :  { %2051 = vadd.xlane.f32.xlu1 %v2050_v21  ;;  %2054 = vadd.xlane.f32.xlu0 %v2053_v27  ;;  %v6386_v21 = vld [vmem:[%s8219_s7 + $0x60] sm:$0xff] }
 0x1df   :  { %v2028_v27 = vmul.f32 %v6386_v21, %v6386_v21 }
 0x1e2   :  { %2057 = vadd.xlane.f32.xlu1 %v2056_v41  ;;  %2060 = vadd.xlane.f32.xlu0 %v2059_v46 }
 0x1e6   :  { %2063 = vadd.xlane.f32.xlu1 %v2062_v54  ;;  %2066 = vadd.xlane.f32.xlu0 %v2065_v2  ;;  %v6489_v2 = vld [vmem:[%s8219_s7 + $0x78] sm:$0xff] }
 0x297   :  { %v1434_v25 = vpop.f32.mrb[24].mxu0  ;;  %v1505_v26 = vpop.f32.mrb[24].mxu1 }
 0x298   :  { %v1435_v28 = vadd.f32 %v1434_v25, %v6332_v5  ;;  %v1506_v29 = vadd.f32 %v1505_v26, %v6332_v5  ;;  %v1436_v30 = vpop.f32.mrb[25].mxu0  ;;  %v1507_v32 = vpop.f32.mrb[25].mxu1 }
 0x299   :  { %v1437_v34 = vadd.f32 %v1436_v30, %v6332_v5  ;;  %v1508_v35 = vadd.f32 %v1507_v32, %v6332_v5  ;;  %v2068_v30 = vsel %vm1364_vm3, %v2028_v27, 0.0 }
 0x29a   :  { %v1936_v37 = vmul.f32 0.5, %v1435_v28  ;;  %v1938_v38 = vmul.f32 0.5, %v1506_v29  ;;  %2069 = vadd.xlane.f32.xlu1 %v2068_v30 }
 0x29b   :  { %v1937_v39 = vmul.f32 0.5, %v1437_v34  ;;  %v1939_v40 = vmul.f32 0.5, %v1508_v35 }
 0x29c   :  { %5912 = vtanh.f32 %v1936_v37 }
 0x29d   :  { %5914 = vtanh.f32 %v1938_v38 }
 0x29e   :  { %5916 = vtanh.f32 %v1937_v39 }
 0x29f   :  { %5918 = vtanh.f32 %v1939_v40  ;;  %v1576_v44 = vpop.f32.mrb[26].mxu0  ;;  %v1647_v45 = vpop.f32.mrb[26].mxu1 }
 0x2a0   :  { %v1577_v47 = vadd.f32 %v1576_v44, %v6332_v5  ;;  %v1578_v48 = vpop.f32.mrb[27].mxu0  ;;  %v1649_v49 = vpop.f32.mrb[27].mxu1  ;;  %v1648_v56 = vadd.f32 %v1647_v45, %v6332_v5 }
 0x2a1   :  { %v1579_v52 = vadd.f32 %v1578_v48, %v6332_v5  ;;  %v1650_v53 = vadd.f32 %v1649_v49, %v6332_v5 }
 0x2a2   :  { %v1940_v55 = vmul.f32 0.5, %v1577_v47  ;;  %v1942_v7 = vmul.f32 0.5, %v1648_v56 }
 0x2a3   :  { %v1941_v60 = vmul.f32 0.5, %v1579_v52  ;;  %v1943_v62 = vmul.f32 0.5, %v1650_v53 }
 0x2a4   :  { %5920 = vtanh.f32 %v1940_v55  ;;  %v6445_v55 = vld [vmem:[%s8219_s7 + $0x68] sm:$0xff] }
 0x2a5   :  { %5922 = vtanh.f32 %v1941_v60  ;;  %v2029_v56 = vmul.f32 %v6445_v55, %v6445_v55 }
 0x2a6   :  { %v5913_v59 = vpop.eup %5912  ;;  %5924 = vtanh.f32 %v1943_v62 }
 0x2a7   :  { %v5915_v61 = vpop.eup %5914  ;;  %v6374_v63 = vpop.f32.mrb[28].mxu0  ;;  %v1968_v24 = vadd.f32 1.0, %v5913_v59  ;;  %5926 = vtanh.f32 %v1942_v7  ;;  %v2071_v60 = vsel %vm1364_vm3, %v2029_v56, 0.0 }
 0x2a8   :  { %v6376_v0 = vpop.f32.mrb[28].mxu1  ;;  %v5917_v3 = vpop.eup %5916  ;;  %v1970_v31 = vadd.f32 1.0, %v5915_v61  ;;  %2072 = vadd.xlane.f32.xlu0 %v2071_v60  ;;  %v6476_v61 = vld [vmem:[%s8219_s7 + $0x70] sm:$0xff] }
 0x2a9   :  { %v1720_v9 = vpop.f32.mrb[29].mxu0  ;;  %v1791_v10 = vpop.f32.mrb[29].mxu1  ;;  %v1969_v14 = vadd.f32 1.0, %v5917_v3  ;;  %v6388_v23 = vmul.f32 0.5, %v1968_v24  ;;  %v2030_v62 = vmul.f32 %v6476_v61, %v6476_v61  ;;  %v2031_v24 = vmul.f32 %v6489_v2, %v6489_v2 }
 0x2aa   :  { %v5919_v12 = vpop.eup %5918  ;;  %v1721_v15 = vadd.f32 %v1720_v9, %v6332_v5  ;;  %v1792_v17 = vadd.f32 %v1791_v10, %v6332_v5  ;;  %v6394_v28 = vmul.f32 0.5, %v1970_v31  ;;  %v1719_v9 = vadd.f32 %v6374_v63, %v6332_v5 }
 0x2ab   :  { %v1971_v18 = vadd.f32 1.0, %v5919_v12  ;;  %v6381_v20 = vmul.f32 0.5, %v1969_v14  ;;  %v2074_v3 = vsel %vm1364_vm3, %v2030_v62, 0.0  ;;  %v2077_v7 = vsel %vm1364_vm3, %v2031_v24, 0.0 }
 0x2ac   :  { %v1945_v25 = vmul.f32 0.5, %v1721_v15  ;;  %v1947_v29 = vmul.f32 0.5, %v1792_v17  ;;  %2075 = vadd.xlane.f32.xlu1 %v2074_v3  ;;  %2078 = vadd.xlane.f32.xlu0 %v2077_v7  ;;  %v1790_v10 = vadd.f32 %v6376_v0, %v6332_v5  ;;  %v1944_v63 = vmul.f32 0.5, %v1719_v9 }
 0x2ad   :  { %v6390_v26 = vmul.f32 0.5, %v1971_v18  ;;  %2240 = vmatprep.subr.mxu0 %v6381_v20 }
 0x2ae   :  { %2241 = vmatpush1.msra.mxu0 %v6388_v23  ;;  %5928 = vtanh.f32 %v1945_v25  ;;  %v5921_v37 = vpop.eup %5920  ;;  %v1946_v14 = vmul.f32 0.5, %v1790_v10 }
 0x2af   :  { %2401 = vmatprep.subr.mxu1 %v6390_v26  ;;  %5660 = vmatmul.mubr.msk.f32.vlgmr.msra.gmra.mrb[32].mxu0 %vm1364_vm3, %v6272_v1  ;;  %v6403_v32 = vpop.f32.mrb[30].mxu0  ;;  %v6405_v34 = vpop.f32.mrb[30].mxu1  ;;  %5930 = vtanh.f32 %v1947_v29  ;;  %v1972_v43 = vadd.f32 1.0, %v5921_v37 }
 0x2b0   :  { %2402 = vmatpush1.msra.mxu1 %v6394_v28  ;;  %v6409_v35 = vpop.f32.mrb[31].mxu0  ;;  %v6411_v36 = vpop.f32.mrb[31].mxu1  ;;  %2310 = vmatprep.mubr.f32.mxu0 %v8223_v4  ;;  %5932 = vtanh.f32 %v1944_v63 }
 0x2b1   :  { %5676 = vmatmul.mubr.msk.f32.vlgmr.msra.gmra.mrb[32].mxu1 %vm1364_vm3, %v6272_v1  ;;  %v5923_v38 = vpop.eup %5922  ;;  %v6434_v49 = vmul.f32 0.5, %v1972_v43  ;;  %v1863_v12 = vadd.f32 %v6409_v35, %v6332_v5  ;;  %v1934_v31 = vadd.f32 %v6411_v36, %v6332_v5  ;;  %5934 = vtanh.f32 %v1946_v14 }
 0x2b2   :  { %2471 = vmatprep.mubr.f32.mxu1 %v8223_v4  ;;  %v5925_v39 = vpop.eup %5924  ;;  %v1973_v41 = vadd.f32 1.0, %v5923_v38  ;;  %v1932_v43 = vadd.f32 %v6405_v34, %v6332_v5 }
 0x2b3   :  { %5661 = vmatmul.mubr.msk.f32.gmra.mrb[34].mxu0 %vm1364_vm3, %v6280_v6  ;;  %v5927_v40 = vpop.eup %5926  ;;  %v1975_v44 = vadd.f32 1.0, %v5925_v39  ;;  %v1949_v0 = vmul.f32 0.5, %v1863_v12  ;;  %v1951_v15 = vmul.f32 0.5, %v1934_v31 }
 0x2b4   :  { %2316 = vmatprep.mubr.f32.mxu0 %v8223_v4  ;;  %v1974_v46 = vadd.f32 1.0, %v5927_v40  ;;  %v6429_v48 = vmul.f32 0.5, %v1973_v41  ;;  %v1861_v41 = vadd.f32 %v6403_v32, %v6332_v5 }
 0x2b5   :  { %5677 = vmatmul.mubr.msk.f32.gmra.mrb[34].mxu1 %vm1364_vm3, %v6280_v6  ;;  %v6436_v52 = vmul.f32 0.5, %v1975_v44  ;;  %5936 = vtanh.f32 %v1949_v0 }
 0x2b6   :  { %2477 = vmatprep.mubr.f32.mxu1 %v8223_v4  ;;  %v6439_v53 = vmul.f32 0.5, %v1974_v46  ;;  %2562 = vmatprep.subr.mxu0 %v6429_v48  ;;  %5938 = vtanh.f32 %v1951_v15  ;;  %v1948_v44 = vmul.f32 0.5, %v1861_v41 }
 0x2b7   :  { %5662 = vmatmul.mubr.msk.f32.gmra.mrb[36].mxu0 %vm1364_vm3, %v6288_v8  ;;  %2723 = vmatprep.subr.mxu1 %v6436_v52 }
 0x2b8   :  { %2322 = vmatprep.mubr.f32.mxu0 %v8223_v4  ;;  %v5929_v45 = vpop.eup %5928  ;;  %2563 = vmatpush1.msra.mxu0 %v6434_v49  ;;  %5940 = vtanh.f32 %v1948_v44 }
 0x2b9   :  { %5678 = vmatmul.mubr.msk.f32.gmra.mrb[36].mxu1 %vm1364_vm3, %v6288_v8  ;;  %v5931_v47 = vpop.eup %5930  ;;  %v1977_v51 = vadd.f32 1.0, %v5929_v45  ;;  %v1950_v45 = vmul.f32 0.5, %v1932_v43 }
 0x2ba   :  { %2483 = vmatprep.mubr.f32.mxu1 %v8223_v4  ;;  %v1979_v54 = vadd.f32 1.0, %v5931_v47  ;;  %2724 = vmatpush1.msra.mxu1 %v6439_v53  ;;  %v5933_v17 = vpop.eup %5932 }
 0x2bb   :  { %5663 = vmatmul.mubr.msk.f32.gmra.mrb[38].mxu0 %vm1364_vm3, %v6296_v11  ;;  %v6454_v58 = vmul.f32 0.5, %v1977_v51  ;;  %v5935_v18 = vpop.eup %5934  ;;  %v1976_v29 = vadd.f32 1.0, %v5933_v17  ;;  %5942 = vtanh.f32 %v1950_v45 }
 0x2bc   :  { %2328 = vmatprep.mubr.f32.mxu0 %v8223_v4  ;;  %v6459_v59 = vmul.f32 0.5, %v1979_v54  ;;  %v1978_v30 = vadd.f32 1.0, %v5935_v18  ;;  %v2084_v54 = vmul.f32 %v6434_v49, %v6434_v49 }
 0x2bd   :  { %5679 = vmatmul.mubr.msk.f32.gmra.mrb[38].mxu1 %vm1364_vm3, %v6296_v11  ;;  %2884 = vmatprep.subr.mxu0 %v6454_v58  ;;  %v6555_v37 = vmul.f32 0.5, %v1976_v29 }
 0x2be   :  { %2489 = vmatprep.mubr.f32.mxu1 %v8223_v4  ;;  %3045 = vmatprep.subr.mxu1 %v6459_v59  ;;  %v6557_v38 = vmul.f32 0.5, %v1978_v30  ;;  %v2120_v56 = vrot.slane %v2084_v54, 4  ;;  %v2085_v30 = vmul.f32 %v6429_v48, %v6429_v48 }
 0x2bf   :  { %5664 = vmatmul.mubr.msk.f32.gmra.mrb[40].mxu0 %vm1364_vm3, %v6304_v13  ;;  %v5937_v25 = vpop.eup %5936 }
 0x2c0   :  { %2334 = vmatprep.mubr.f32.mxu0 %v8223_v4  ;;  %v5939_v27 = vpop.eup %5938  ;;  %v1981_v35 = vadd.f32 1.0, %v5937_v25  ;;  %v2121_v3 = vadd.f32 %v2120_v56, %v2084_v54  ;;  %v2090_v9 = vmul.f32 %v6557_v38, %v6557_v38  ;;  %v2126_v45 = vrot.slane %v2085_v30, 4 }
 0x2c1   :  { %5680 = vmatmul.mubr.msk.f32.gmra.mrb[40].mxu1 %vm1364_vm3, %v6304_v13  ;;  %v1983_v36 = vadd.f32 1.0, %v5939_v27 }
 0x2c2   :  { %2495 = vmatprep.mubr.f32.mxu1 %v8223_v4  ;;  %v6561_v39 = vmul.f32 0.5, %v1981_v35  ;;  %v5941_v5 = vpop.eup %5940  ;;  %v2122_v63 = vrot.slane %v2121_v3, 2  ;;  %v2156_v15 = vrot.slane %v2090_v9, 4  ;;  %v2087_v35 = vmul.f32 %v6436_v52, %v6436_v52 }
 0x2c3   :  { %5665 = vmatmul.mubr.msk.f32.gmra.mrb[42].mxu0 %vm1364_vm3, %v6312_v16  ;;  %v6566_v40 = vmul.f32 0.5, %v1983_v36  ;;  %v1980_v34 = vadd.f32 1.0, %v5941_v5  ;;  %v6833_v54 = vadd.f32 %v2126_v45, %v2085_v30 }
 0x2c4   :  { %2340 = vmatprep.mubr.f32.mxu0 %v8223_v4  ;;  %v2123_v27 = vadd.f32 %v2122_v63, %v2121_v3  ;;  %v2157_v36 = vadd.f32 %v2156_v15, %v2090_v9  ;;  %v2138_v52 = vrot.slane %v2087_v35, 4  ;;  %v6858_v3 = vmul.f32 %v6459_v59, %v6459_v59 }
 0x2c5   :  { %5681 = vmatmul.mubr.msk.f32.gmra.mrb[42].mxu1 %vm1364_vm3, %v6312_v16  ;;  %v5943_v32 = vpop.eup %5942  ;;  %v6667_v47 = vmul.f32 0.5, %v1980_v34  ;;  %v2128_v9 = vrot.slane %v6833_v54, 2 }
 0x2c6   :  { %2501 = vmatprep.mubr.f32.mxu1 %v8223_v4  ;;  %v1982_v46 = vadd.f32 1.0, %v5943_v32  ;;  %v2124_v48 = vrot.slane %v2123_v27, 1  ;;  %v2158_v32 = vrot.slane %v2157_v36, 2 }
 0x2c7   :  { %5666 = vmatmul.mubr.msk.f32.gmra.mrb[44].mxu0 %vm1364_vm3, %v6320_v19 }
 0x2c8   :  { %2346 = vmatprep.mubr.f32.mxu0 %v8223_v4  ;;  %v6669_v51 = vmul.f32 0.5, %v1982_v46 }
 0x2c9   :  { %5682 = vmatmul.mubr.msk.f32.gmra.mrb[44].mxu1 %vm1364_vm3, %v6320_v19 }
 0x2ca   :  { %2507 = vmatprep.mubr.f32.mxu1 %v8223_v4 }
 0x2cb   :  { %5667 = vmatmul.mubr.msk.f32.gmra.mrb[46].mxu0 %vm1364_vm3, %v6328_v22 }
 0x2cc   :  { %2352 = vmatprep.mubr.f32.mxu0 %v8223_v4 }
 0x2cd   :  { %5683 = vmatmul.mubr.msk.f32.gmra.mrb[46].mxu1 %vm1364_vm3, %v6328_v22 }
 0x2ce   :  { %2513 = vmatprep.mubr.f32.mxu1 %v8223_v4 }
 0x2cf   :  { %5668 = vmatmul.mubr.msk.f32.gmra.mrb[48].mxu0 %vm1364_vm3, %v6340_v33 }
 0x2d0   :  { %2358 = vmatprep.mubr.f32.mxu0 %v8223_v4 }
 0x2d1   :  { %5684 = vmatmul.mubr.msk.f32.gmra.mrb[48].mxu1 %vm1364_vm3, %v6340_v33 }
 0x2d2   :  { %2519 = vmatprep.mubr.f32.mxu1 %v8223_v4 }
 0x2d3   :  { %5669 = vmatmul.mubr.msk.f32.gmra.mrb[50].mxu0 %vm1364_vm3, %v6350_v42 }
 0x2d4   :  { %2364 = vmatprep.mubr.f32.mxu0 %v8223_v4 }
 0x2d5   :  { %5685 = vmatmul.mubr.msk.f32.gmra.mrb[50].mxu1 %vm1364_vm3, %v6350_v42 }
 0x2d6   :  { %2525 = vmatprep.mubr.f32.mxu1 %v8223_v4 }
 0x2d7   :  { %5670 = vmatmul.mubr.msk.f32.gmra.mrb[52].mxu0 %vm1364_vm3, %v6359_v50 }
 0x2d8   :  { %2370 = vmatprep.mubr.f32.mxu0 %v8223_v4 }
 0x2d9   :  { %5686 = vmatmul.mubr.msk.f32.gmra.mrb[52].mxu1 %vm1364_vm3, %v6359_v50 }
 0x2da   :  { %2531 = vmatprep.mubr.f32.mxu1 %v8223_v4 }
 0x2db   :  { %5671 = vmatmul.mubr.msk.f32.gmra.mrb[54].mxu0 %vm1364_vm3, %v6370_v57 }
 0x2dc   :  { %2376 = vmatprep.mubr.f32.mxu0 %v8223_v4 }
 0x2dd   :  { %5687 = vmatmul.mubr.msk.f32.gmra.mrb[54].mxu1 %vm1364_vm3, %v6370_v57 }
 0x2de   :  { %2537 = vmatprep.mubr.f32.mxu1 %v8223_v4 }
 0x2df   :  { %5672 = vmatmul.mubr.msk.f32.gmra.mrb[56].mxu0 %vm1364_vm3, %v6386_v21 }
 0x2e0   :  { %2382 = vmatprep.mubr.f32.mxu0 %v8223_v4 }
 0x2e1   :  { %5688 = vmatmul.mubr.msk.f32.gmra.mrb[56].mxu1 %vm1364_vm3, %v6386_v21 }
 0x2e2   :  { %2543 = vmatprep.mubr.f32.mxu1 %v8223_v4 }
 0x2e3   :  { %5673 = vmatmul.mubr.msk.f32.gmra.mrb[58].mxu0 %vm1364_vm3, %v6445_v55 }
 0x2e4   :  { %2388 = vmatprep.mubr.f32.mxu0 %v8223_v4 }
 0x2e5   :  { %5689 = vmatmul.mubr.msk.f32.gmra.mrb[58].mxu1 %vm1364_vm3, %v6445_v55 }
 0x2e6   :  { %2549 = vmatprep.mubr.f32.mxu1 %v8223_v4 }
 0x2e7   :  { %5674 = vmatmul.mubr.msk.f32.gmra.mrb[60].mxu0 %vm1364_vm3, %v6476_v61 }
 0x2e8   :  { %2394 = vmatprep.mubr.f32.mxu0 %v8223_v4 }
 0x2e9   :  { %5690 = vmatmul.mubr.msk.f32.gmra.mrb[60].mxu1 %vm1364_vm3, %v6476_v61 }
 0x2ea   :  { %2555 = vmatprep.mubr.f32.mxu1 %v8223_v4 }
 0x2eb   :  { %5675 = vmatmul.mubr.msk.f32.gmra.mrb[62].mxu0 %vm1364_vm3, %v6489_v2 }
 0x2ec   :  { %2626 = vmatprep.mubr.f32.mxu0 %v8223_v4 }
 0x2ed   :  { %5691 = vmatmul.mubr.msk.f32.gmra.mrb[62].mxu1 %vm1364_vm3, %v6489_v2 }
 0x2ee   :  { %2787 = vmatprep.mubr.f32.mxu1 %v8223_v4 }
 0x2ef   :  { %5692 = vmatmul.mubr.msk.f32.vlgmr.msra.gmra.mrb[64].mxu0 %vm1364_vm3, %v6272_v1 }
 0x2f0   :  { %2885 = vmatpush1.msra.mxu0 %v6555_v37  ;;  %2632 = vmatprep.mubr.f32.mxu0 %v8223_v4 }
 0x2f1   :  { %5708 = vmatmul.mubr.msk.f32.vlgmr.msra.gmra.mrb[64].mxu1 %vm1364_vm3, %v6272_v1  ;;  %3206 = vmatprep.subr.mxu0 %v6561_v39 }
 0x2f2   :  { %3046 = vmatpush1.msra.mxu1 %v6557_v38  ;;  %2793 = vmatprep.mubr.f32.mxu1 %v8223_v4 }
 0x2f3   :  { %3367 = vmatprep.subr.mxu1 %v6566_v40  ;;  %5693 = vmatmul.mubr.msk.f32.gmra.mrb[66].mxu0 %vm1364_vm3, %v6280_v6 }
 0x2f4   :  { %2638 = vmatprep.mubr.f32.mxu0 %v8223_v4 }
 0x2f5   :  { %5709 = vmatmul.mubr.msk.f32.gmra.mrb[66].mxu1 %vm1364_vm3, %v6280_v6 }
 0x2f6   :  { %2799 = vmatprep.mubr.f32.mxu1 %v8223_v4 }
 0x2f7   :  { %5694 = vmatmul.mubr.msk.f32.gmra.mrb[68].mxu0 %vm1364_vm3, %v6288_v8 }
 0x2f8   :  { %2644 = vmatprep.mubr.f32.mxu0 %v8223_v4 }
 0x2f9   :  { %5710 = vmatmul.mubr.msk.f32.gmra.mrb[68].mxu1 %vm1364_vm3, %v6288_v8 }
 0x2fa   :  { %2805 = vmatprep.mubr.f32.mxu1 %v8223_v4 }
 0x2fb   :  { %5695 = vmatmul.mubr.msk.f32.gmra.mrb[70].mxu0 %vm1364_vm3, %v6296_v11 }
 0x2fc   :  { %2650 = vmatprep.mubr.f32.mxu0 %v8223_v4 }
 0x2fd   :  { %5711 = vmatmul.mubr.msk.f32.gmra.mrb[70].mxu1 %vm1364_vm3, %v6296_v11 }
 0x2fe   :  { %2811 = vmatprep.mubr.f32.mxu1 %v8223_v4 }
 0x2ff   :  { %5696 = vmatmul.mubr.msk.f32.gmra.mrb[72].mxu0 %vm1364_vm3, %v6304_v13 }
 0x300   :  { %2656 = vmatprep.mubr.f32.mxu0 %v8223_v4 }
 0x301   :  { %5712 = vmatmul.mubr.msk.f32.gmra.mrb[72].mxu1 %vm1364_vm3, %v6304_v13 }
 0x302   :  { %2817 = vmatprep.mubr.f32.mxu1 %v8223_v4 }
 0x303   :  { %5697 = vmatmul.mubr.msk.f32.gmra.mrb[74].mxu0 %vm1364_vm3, %v6312_v16 }
 0x304   :  { %2662 = vmatprep.mubr.f32.mxu0 %v8223_v4 }
 0x305   :  { %5713 = vmatmul.mubr.msk.f32.gmra.mrb[74].mxu1 %vm1364_vm3, %v6312_v16 }
 0x306   :  { %2823 = vmatprep.mubr.f32.mxu1 %v8223_v4 }
 0x307   :  { %5698 = vmatmul.mubr.msk.f32.gmra.mrb[76].mxu0 %vm1364_vm3, %v6320_v19 }
 0x308   :  { %2668 = vmatprep.mubr.f32.mxu0 %v8223_v4 }
 0x309   :  { %5714 = vmatmul.mubr.msk.f32.gmra.mrb[76].mxu1 %vm1364_vm3, %v6320_v19 }
 0x30a   :  { %2829 = vmatprep.mubr.f32.mxu1 %v8223_v4 }
 0x30b   :  { %5699 = vmatmul.mubr.msk.f32.gmra.mrb[78].mxu0 %vm1364_vm3, %v6328_v22 }
 0x30c   :  { %2674 = vmatprep.mubr.f32.mxu0 %v8223_v4 }
 0x30d   :  { %5715 = vmatmul.mubr.msk.f32.gmra.mrb[78].mxu1 %vm1364_vm3, %v6328_v22 }
 0x30e   :  { %2835 = vmatprep.mubr.f32.mxu1 %v8223_v4 }
 0x30f   :  { %5700 = vmatmul.mubr.msk.f32.gmra.mrb[80].mxu0 %vm1364_vm3, %v6340_v33 }
 0x310   :  { %2680 = vmatprep.mubr.f32.mxu0 %v8223_v4 }
 0x311   :  { %5716 = vmatmul.mubr.msk.f32.gmra.mrb[80].mxu1 %vm1364_vm3, %v6340_v33 }
 0x312   :  { %2841 = vmatprep.mubr.f32.mxu1 %v8223_v4 }
 0x313   :  { %5701 = vmatmul.mubr.msk.f32.gmra.mrb[82].mxu0 %vm1364_vm3, %v6350_v42 }
 0x314   :  { %2686 = vmatprep.mubr.f32.mxu0 %v8223_v4 }
 0x315   :  { %5717 = vmatmul.mubr.msk.f32.gmra.mrb[82].mxu1 %vm1364_vm3, %v6350_v42 }
 0x316   :  { %2847 = vmatprep.mubr.f32.mxu1 %v8223_v4 }
 0x317   :  { %5702 = vmatmul.mubr.msk.f32.gmra.mrb[84].mxu0 %vm1364_vm3, %v6359_v50 }
 0x318   :  { %2692 = vmatprep.mubr.f32.mxu0 %v8223_v4 }
 0x319   :  { %5718 = vmatmul.mubr.msk.f32.gmra.mrb[84].mxu1 %vm1364_vm3, %v6359_v50 }
 0x31a   :  { %2853 = vmatprep.mubr.f32.mxu1 %v8223_v4 }
 0x31b   :  { %5703 = vmatmul.mubr.msk.f32.gmra.mrb[86].mxu0 %vm1364_vm3, %v6370_v57 }
 0x31c   :  { %2698 = vmatprep.mubr.f32.mxu0 %v8223_v4 }
 0x31d   :  { %5719 = vmatmul.mubr.msk.f32.gmra.mrb[86].mxu1 %vm1364_vm3, %v6370_v57 }
 0x31e   :  { %2859 = vmatprep.mubr.f32.mxu1 %v8223_v4 }
 0x31f   :  { %5704 = vmatmul.mubr.msk.f32.gmra.mrb[88].mxu0 %vm1364_vm3, %v6386_v21 }
 0x320   :  { %2704 = vmatprep.mubr.f32.mxu0 %v8223_v4 }
 0x321   :  { %5720 = vmatmul.mubr.msk.f32.gmra.mrb[88].mxu1 %vm1364_vm3, %v6386_v21 }
 0x322   :  { %2865 = vmatprep.mubr.f32.mxu1 %v8223_v4 }
 0x323   :  { %5705 = vmatmul.mubr.msk.f32.gmra.mrb[90].mxu0 %vm1364_vm3, %v6445_v55 }
 0x324   :  { %2710 = vmatprep.mubr.f32.mxu0 %v8223_v4 }
 0x325   :  { %5721 = vmatmul.mubr.msk.f32.gmra.mrb[90].mxu1 %vm1364_vm3, %v6445_v55 }
 0x326   :  { %2871 = vmatprep.mubr.f32.mxu1 %v8223_v4 }
 0x327   :  { %5706 = vmatmul.mubr.msk.f32.gmra.mrb[92].mxu0 %vm1364_vm3, %v6476_v61 }
 0x328   :  { %2716 = vmatprep.mubr.f32.mxu0 %v8223_v4 }
 0x329   :  { %5722 = vmatmul.mubr.msk.f32.gmra.mrb[92].mxu1 %vm1364_vm3, %v6476_v61 }
 0x32a   :  { %2877 = vmatprep.mubr.f32.mxu1 %v8223_v4 }
 0x32b   :  { %5707 = vmatmul.mubr.msk.f32.gmra.mrb[94].mxu0 %vm1364_vm3, %v6489_v2 }
 0x32c   :  { %2948 = vmatprep.mubr.f32.mxu0 %v8223_v4 }
 0x32d   :  { %5723 = vmatmul.mubr.msk.f32.gmra.mrb[94].mxu1 %vm1364_vm3, %v6489_v2 }
 0x32e   :  { %3109 = vmatprep.mubr.f32.mxu1 %v8223_v4 }
 0x32f   :  { %5724 = vmatmul.mubr.msk.f32.vlgmr.msra.gmra.mrb[96].mxu0 %vm1364_vm3, %v6272_v1 }
 0x330   :  { %3207 = vmatpush1.msra.mxu0 %v6667_v47  ;;  %2954 = vmatprep.mubr.f32.mxu0 %v8223_v4 }
 0x331   :  { %5740 = vmatmul.mubr.msk.f32.vlgmr.msra.gmra.mrb[96].mxu1 %vm1364_vm3, %v6272_v1 }
 0x332   :  { %3368 = vmatpush1.msra.mxu1 %v6669_v51  ;;  %3115 = vmatprep.mubr.f32.mxu1 %v8223_v4 }
 0x333   :  { %5725 = vmatmul.mubr.msk.f32.gmra.mrb[98].mxu0 %vm1364_vm3, %v6280_v6 }
 0x334   :  { %2960 = vmatprep.mubr.f32.mxu0 %v8223_v4 }
 0x335   :  { %5741 = vmatmul.mubr.msk.f32.gmra.mrb[98].mxu1 %vm1364_vm3, %v6280_v6 }
 0x336   :  { %3121 = vmatprep.mubr.f32.mxu1 %v8223_v4 }
 0x337   :  { %5726 = vmatmul.mubr.msk.f32.gmra.mrb[100].mxu0 %vm1364_vm3, %v6288_v8 }
 0x338   :  { %2966 = vmatprep.mubr.f32.mxu0 %v8223_v4 }
 0x339   :  { %5742 = vmatmul.mubr.msk.f32.gmra.mrb[100].mxu1 %vm1364_vm3, %v6288_v8 }
 0x33a   :  { %3127 = vmatprep.mubr.f32.mxu1 %v8223_v4 }
 0x33b   :  { %5727 = vmatmul.mubr.msk.f32.gmra.mrb[102].mxu0 %vm1364_vm3, %v6296_v11 }
 0x33c   :  { %2972 = vmatprep.mubr.f32.mxu0 %v8223_v4 }
 0x33d   :  { %5743 = vmatmul.mubr.msk.f32.gmra.mrb[102].mxu1 %vm1364_vm3, %v6296_v11 }
 0x33e   :  { %3133 = vmatprep.mubr.f32.mxu1 %v8223_v4 }
 0x33f   :  { %5728 = vmatmul.mubr.msk.f32.gmra.mrb[104].mxu0 %vm1364_vm3, %v6304_v13 }
 0x340   :  { %2978 = vmatprep.mubr.f32.mxu0 %v8223_v4 }
 0x341   :  { %5744 = vmatmul.mubr.msk.f32.gmra.mrb[104].mxu1 %vm1364_vm3, %v6304_v13 }
 0x342   :  { %3139 = vmatprep.mubr.f32.mxu1 %v8223_v4 }
 0x343   :  { %5729 = vmatmul.mubr.msk.f32.gmra.mrb[106].mxu0 %vm1364_vm3, %v6312_v16 }
 0x344   :  { %2984 = vmatprep.mubr.f32.mxu0 %v8223_v4 }
 0x345   :  { %5745 = vmatmul.mubr.msk.f32.gmra.mrb[106].mxu1 %vm1364_vm3, %v6312_v16 }
 0x346   :  { %3145 = vmatprep.mubr.f32.mxu1 %v8223_v4 }
 0x347   :  { %5730 = vmatmul.mubr.msk.f32.gmra.mrb[108].mxu0 %vm1364_vm3, %v6320_v19 }
 0x348   :  { %2990 = vmatprep.mubr.f32.mxu0 %v8223_v4 }
 0x349   :  { %5746 = vmatmul.mubr.msk.f32.gmra.mrb[108].mxu1 %vm1364_vm3, %v6320_v19 }
 0x34a   :  { %3151 = vmatprep.mubr.f32.mxu1 %v8223_v4 }
 0x34b   :  { %5731 = vmatmul.mubr.msk.f32.gmra.mrb[110].mxu0 %vm1364_vm3, %v6328_v22 }
 0x34c   :  { %2996 = vmatprep.mubr.f32.mxu0 %v8223_v4 }
 0x34d   :  { %5747 = vmatmul.mubr.msk.f32.gmra.mrb[110].mxu1 %vm1364_vm3, %v6328_v22 }
 0x34e   :  { %3157 = vmatprep.mubr.f32.mxu1 %v8223_v4 }
 0x34f   :  { %5732 = vmatmul.mubr.msk.f32.gmra.mrb[112].mxu0 %vm1364_vm3, %v6340_v33 }
 0x350   :  { %3002 = vmatprep.mubr.f32.mxu0 %v8223_v4 }
 0x351   :  { %5748 = vmatmul.mubr.msk.f32.gmra.mrb[112].mxu1 %vm1364_vm3, %v6340_v33 }
 0x352   :  { %3163 = vmatprep.mubr.f32.mxu1 %v8223_v4 }
 0x353   :  { %5733 = vmatmul.mubr.msk.f32.gmra.mrb[114].mxu0 %vm1364_vm3, %v6350_v42 }
 0x354   :  { %3008 = vmatprep.mubr.f32.mxu0 %v8223_v4 }
 0x355   :  { %5749 = vmatmul.mubr.msk.f32.gmra.mrb[114].mxu1 %vm1364_vm3, %v6350_v42  ;;  %v2080_v42 = vmul.f32 %v6388_v23, %v6388_v23  ;;  %v2086_v23 = vmul.f32 %v6439_v53, %v6439_v53 }
 0x356   :  { %3169 = vmatprep.mubr.f32.mxu1 %v8223_v4 }
 0x357   :  { %5734 = vmatmul.mubr.msk.f32.gmra.mrb[116].mxu0 %vm1364_vm3, %v6359_v50  ;;  %v2132_v60 = vrot.slane %v2086_v23, 4 }
 0x358   :  { %3014 = vmatprep.mubr.f32.mxu0 %v8223_v4 }
 0x359   :  { %5750 = vmatmul.mubr.msk.f32.gmra.mrb[116].mxu1 %vm1364_vm3, %v6359_v50  ;;  %v2082_v50 = vmul.f32 %v6394_v28, %v6394_v28  ;;  %v2133_v24 = vadd.f32 %v2132_v60, %v2086_v23 }
 0x35a   :  { %3175 = vmatprep.mubr.f32.mxu1 %v8223_v4 }
 0x35b   :  { %5735 = vmatmul.mubr.msk.f32.gmra.mrb[118].mxu0 %vm1364_vm3, %v6370_v57  ;;  %v2134_v14 = vrot.slane %v2133_v24, 2 }
 0x35c   :  { %3020 = vmatprep.mubr.f32.mxu0 %v8223_v4 }
 0x35d   :  { %5751 = vmatmul.mubr.msk.f32.gmra.mrb[118].mxu1 %vm1364_vm3, %v6370_v57  ;;  %v2081_v57 = vmul.f32 %v6381_v20, %v6381_v20  ;;  %v2108_v20 = vrot.slane %v2082_v50, 4  ;;  %v2135_v29 = vadd.f32 %v2134_v14, %v2133_v24 }
 0x35e   :  { %3181 = vmatprep.mubr.f32.mxu1 %v8223_v4 }
 0x35f   :  { %5736 = vmatmul.mubr.msk.f32.gmra.mrb[120].mxu0 %vm1364_vm3, %v6386_v21  ;;  %v2102_v28 = vrot.slane %v2081_v57, 4  ;;  %v2109_v53 = vadd.f32 %v2108_v20, %v2082_v50  ;;  %v2136_v44 = vrot.slane %v2135_v29, 1  ;;  %v6835_v20 = vadd.f32 %v2138_v52, %v2087_v35 }
 0x360   :  { %3026 = vmatprep.mubr.f32.mxu0 %v8223_v4 }
 0x361   :  { %5752 = vmatmul.mubr.msk.f32.gmra.mrb[120].mxu1 %vm1364_vm3, %v6386_v21  ;;  %v2083_v21 = vmul.f32 %v6390_v26, %v6390_v26  ;;  %v2103_v62 = vadd.f32 %v2102_v28, %v2081_v57  ;;  %v6829_v57 = vadd.f32 %v2124_v48, %v2123_v27  ;;  %v6839_v28 = vmul.f32 %v6454_v58, %v6454_v58 }
 0x362   :  { %3187 = vmatprep.mubr.f32.mxu1 %v8223_v4 }
 0x363   :  { %5737 = vmatmul.mubr.msk.f32.gmra.mrb[122].mxu0 %vm1364_vm3, %v6445_v55  ;;  %v2114_v26 = vrot.slane %v2083_v21, 4  ;;  %v2104_v12 = vrot.slane %v2103_v62, 2 }
 0x364   :  { %3032 = vmatprep.mubr.f32.mxu0 %v8223_v4 }
 0x365   :  { %5753 = vmatmul.mubr.msk.f32.gmra.mrb[122].mxu1 %vm1364_vm3, %v6445_v55  ;;  %v2096_v55 = vrot.slane %v2080_v42, 4  ;;  %v2105_v18 = vadd.f32 %v2104_v12, %v2103_v62 }
 0x366   :  { %3193 = vmatprep.mubr.f32.mxu1 %v8223_v4 }
 0x367   :  { %5738 = vmatmul.mubr.msk.f32.gmra.mrb[124].mxu0 %vm1364_vm3, %v6476_v61  ;;  %v2097_v49 = vadd.f32 %v2096_v55, %v2080_v42  ;;  %v2106_v41 = vrot.slane %v2105_v18, 1 }
 0x368   :  { %3038 = vmatprep.mubr.f32.mxu0 %v8223_v4 }
 0x369   :  { %5754 = vmatmul.mubr.msk.f32.gmra.mrb[124].mxu1 %vm1364_vm3, %v6476_v61  ;;  %v2088_v61 = vmul.f32 %v6555_v37, %v6555_v37  ;;  %v2098_v7 = vrot.slane %v2097_v49, 2  ;;  %v6824_v46 = vadd.f32 %v2106_v41, %v2105_v18 }
 0x36a   :  { %3199 = vmatprep.mubr.f32.mxu1 %v8223_v4 }
 0x36b   :  { %5739 = vmatmul.mubr.msk.f32.gmra.mrb[126].mxu0 %vm1364_vm3, %v6489_v2  ;;  %v2144_v10 = vrot.slane %v2088_v61, 4  ;;  %v2099_v0 = vadd.f32 %v2098_v7, %v2097_v49  ;;  %v6843_v49 = vpop.xlane.xlu0 %2033 }
 0x36c   :  { %3270 = vmatprep.mubr.f32.mxu0 %v8223_v4 }
 0x36d   :  { %5755 = vmatmul.mubr.msk.f32.gmra.mrb[126].mxu1 %vm1364_vm3, %v6489_v2  ;;  %v2115_v2 = vadd.f32 %v2114_v26, %v2083_v21  ;;  %v2145_v17 = vadd.f32 %v2144_v10, %v2088_v61  ;;  %v6831_v21 = vadd.f32 %v2136_v44, %v2135_v29  ;;  %v6849_v61 = vmul.f32 %v6667_v47, %v6667_v47 }
 0x36e   :  { %3431 = vmatprep.mubr.f32.mxu1 %v8223_v4  ;;  %v2150_v29 = vrot.slane %v6839_v28, 4 }
 0x36f   :  { %5756 = vmatmul.mubr.msk.f32.vlgmr.msra.gmra.mrb[128].mxu0 %vm1364_vm3, %v6272_v1  ;;  %v2116_v31 = vrot.slane %v2115_v2, 2  ;;  %v2146_v38 = vrot.slane %v2145_v17, 2 }
 0x370   :  { %3276 = vmatprep.mubr.f32.mxu0 %v8223_v4 }
 0x371   :  { %5772 = vmatmul.mubr.msk.f32.vlgmr.msra.gmra.mrb[128].mxu1 %vm1364_vm3, %v6272_v1  ;;  %v2110_v1 = vrot.slane %v2109_v53, 2  ;;  %v2117_v25 = vadd.f32 %v2116_v31, %v2115_v2  ;;  %v6822_v34 = vadd.f32 %v2146_v38, %v2145_v17  ;;  %v2140_v17 = vrot.slane %v6835_v20, 2 }
 0x372   :  { %3437 = vmatprep.mubr.f32.mxu1 %v8223_v4 }
 0x373   :  { %5757 = vmatmul.mubr.msk.f32.gmra.mrb[130].mxu0 %vm1364_vm3, %v6280_v6  ;;  %v2118_v43 = vrot.slane %v2117_v25, 1  ;;  %v2148_v58 = vrot.slane %v6822_v34, 1 }
 0x374   :  { %3282 = vmatprep.mubr.f32.mxu0 %v8223_v4 }
 0x375   :  { %5773 = vmatmul.mubr.msk.f32.gmra.mrb[130].mxu1 %vm1364_vm3, %v6280_v6  ;;  %v2111_v6 = vadd.f32 %v2110_v1, %v2109_v53  ;;  %v6826_v42 = vadd.f32 %v2118_v43, %v2117_v25  ;;  %v6845_v53 = vadd.f32 %v2158_v32, %v2157_v36 }
 0x376   :  { %3443 = vmatprep.mubr.f32.mxu1 %v8223_v4 }
 0x377   :  { %5758 = vmatmul.mubr.msk.f32.gmra.mrb[132].mxu0 %vm1364_vm3, %v6288_v8  ;;  %v2112_v37 = vrot.slane %v2111_v6, 1 }
 0x378   :  { %3288 = vmatprep.mubr.f32.mxu0 %v8223_v4 }
 0x379   :  { %5774 = vmatmul.mubr.msk.f32.gmra.mrb[132].mxu1 %vm1364_vm3, %v6288_v8  ;;  %v2100_v8 = vrot.slane %v2099_v0, 1 }
 0x37a   :  { %3449 = vmatprep.mubr.f32.mxu1 %v8223_v4 }
 0x37b   :  { %5759 = vmatmul.mubr.msk.f32.gmra.mrb[134].mxu0 %vm1364_vm3, %v6296_v11  ;;  %v6815_v5 = vadd.f32 %v2100_v8, %v2099_v0  ;;  %v6868_v0 = vpop.xlane.xlu1 %2036 }
 0x37c   :  { %3294 = vmatprep.mubr.f32.mxu0 %v8223_v4 }
 0x37d   :  { %5775 = vmatmul.mubr.msk.f32.gmra.mrb[134].mxu1 %vm1364_vm3, %v6296_v11  ;;  %v6820_v11 = vadd.f32 %v2112_v37, %v2111_v6  ;;  %v6882_v37 = vpop.xlane.xlu0 %2039 }
 0x37e   :  { %3455 = vmatprep.mubr.f32.mxu1 %v8223_v4  ;;  %8259 = vst [vmem:[#allocation8_spill] sm:$0xff] %v6882_v37 }
 0x37f   :  { %5760 = vmatmul.mubr.msk.f32.gmra.mrb[136].mxu0 %vm1364_vm3, %v6304_v13 }
 0x380   :  { %3300 = vmatprep.mubr.f32.mxu0 %v8223_v4 }
 0x381   :  { %5776 = vmatmul.mubr.msk.f32.gmra.mrb[136].mxu1 %vm1364_vm3, %v6304_v13 }
 0x382   :  { %v2306_v50 = vpop.f32.mrb[32].mxu0  ;;  %3461 = vmatprep.mubr.f32.mxu1 %v8223_v4 }
 0x383   :  { %v3528_v13 = vmul.f32 2.0, %v2306_v50  ;;  %v2308_v55 = vpop.f32.mrb[33].mxu0  ;;  %5761 = vmatmul.mubr.msk.f32.gmra.mrb[138].mxu0 %vm1364_vm3, %v6312_v16 }
 0x384   :  { %v2467_v23 = vpop.f32.mrb[32].mxu1  ;;  %v3529_v56 = vmul.f32 2.0, %v2308_v55  ;;  %3306 = vmatprep.mubr.f32.mxu0 %v8223_v4 }
 0x385   :  { %v3530_v26 = vmul.f32 2.0, %v2467_v23  ;;  %v2469_v60 = vpop.f32.mrb[33].mxu1  ;;  %v3784_v62 = vsub.f32 %v6815_v5, %v3528_v13  ;;  %5777 = vmatmul.mubr.msk.f32.gmra.mrb[138].mxu1 %vm1364_vm3, %v6312_v16  ;;  %v2160_v23 = vrot.slane %v6845_v53, 1 }
 0x386   :  { %v3531_v2 = vmul.f32 2.0, %v2469_v60  ;;  %v3785_v7 = vsub.f32 %v6824_v46, %v3529_v56  ;;  %v2312_v47 = vpop.f32.mrb[34].mxu0  ;;  %3467 = vmatprep.mubr.f32.mxu1 %v8223_v4  ;;  %v2168_v60 = vrot.slane %v6849_v61, 4 }
 0x387   :  { %v3786_v24 = vsub.f32 %v6820_v11, %v3530_v26  ;;  %v3544_v16 = vmul.f32 2.0, %v2312_v47  ;;  %v2314_v12 = vpop.f32.mrb[35].mxu0  ;;  %v4040_v31 = vadd.f32 %v3784_v62, %v6843_v49  ;;  %5762 = vmatmul.mubr.msk.f32.gmra.mrb[140].mxu0 %vm1364_vm3, %v6320_v19 }
 0x388   :  { %v3787_v1 = vsub.f32 %v6826_v42, %v3531_v2  ;;  %v2473_v10 = vpop.f32.mrb[34].mxu1  ;;  %v3545_v14 = vmul.f32 2.0, %v2314_v12  ;;  %v4041_v15 = vadd.f32 %v3785_v7, %v6843_v49  ;;  %3312 = vmatprep.mubr.f32.mxu0 %v8223_v4 }
 0x389   :  { %v3546_v63 = vmul.f32 2.0, %v2473_v10  ;;  %v2475_v59 = vpop.f32.mrb[35].mxu1  ;;  %v4042_v6 = vadd.f32 %v3786_v24, %v6843_v49  ;;  %v3800_v18 = vsub.f32 %v6815_v5, %v3544_v16  ;;  %5778 = vmatmul.mubr.msk.f32.gmra.mrb[140].mxu1 %vm1364_vm3, %v6320_v19 }
 0x38a   :  { %v3547_v25 = vmul.f32 2.0, %v2475_v59  ;;  %v4043_v27 = vadd.f32 %v3787_v1, %v6843_v49  ;;  %v3801_v35 = vsub.f32 %v6824_v46, %v3545_v14  ;;  %v2318_v8 = vpop.f32.mrb[36].mxu0  ;;  %3473 = vmatprep.mubr.f32.mxu1 %v8223_v4  ;;  %v4296_v36 = vmin.f32 %v4040_v31, %v4041_v15  ;;  %v6904_v59 = vpop.xlane.xlu0 %2042 }
 0x38b   :  { %v3802_v30 = vsub.f32 %v6820_v11, %v3546_v63  ;;  %v3560_v41 = vmul.f32 2.0, %v2318_v8  ;;  %v2320_v43 = vpop.f32.mrb[37].mxu0  ;;  %v4056_v48 = vadd.f32 %v3800_v18, %v6868_v0  ;;  %5763 = vmatmul.mubr.msk.f32.gmra.mrb[142].mxu0 %vm1364_vm3, %v6328_v22  ;;  %8260 = vst [vmem:[#allocation9_spill] sm:$0xff] %v6904_v59  ;;  %v6911_v18 = vadd.f32 %v2148_v58, %v6822_v34 }
 0x38c   :  { %v3803_v38 = vsub.f32 %v6826_v42, %v3547_v25  ;;  %v2479_v19 = vpop.f32.mrb[36].mxu1  ;;  %v4473_v44 = vmin.f32 %v4042_v6, %v4043_v27  ;;  %v3561_v52 = vmul.f32 2.0, %v2320_v43  ;;  %4312 = vmin.xlane.f32.xlu1 %v4296_v36  ;;  %v4057_v50 = vadd.f32 %v3801_v35, %v6868_v0  ;;  %3318 = vmatprep.mubr.f32.mxu0 %v8223_v4 }
 0x38d   :  { %v3562_v45 = vmul.f32 2.0, %v2479_v19  ;;  %v2481_v32 = vpop.f32.mrb[37].mxu1  ;;  %v4058_v13 = vadd.f32 %v3802_v30, %v6868_v0  ;;  %v3816_v55 = vsub.f32 %v6815_v5, %v3560_v41  ;;  %5779 = vmatmul.mubr.msk.f32.gmra.mrb[142].mxu1 %vm1364_vm3, %v6328_v22  ;;  %v5948_v30 = vld [vmem:[%s8219_s7 + $0x40] sm:$0xff]  ;;  %v2162_v35 = vrot.slane %v6858_v3, 4 }
 0x38e   :  { %v3563_v26 = vmul.f32 2.0, %v2481_v32  ;;  %v4059_v56 = vadd.f32 %v3803_v38, %v6868_v0  ;;  %v3817_v2 = vsub.f32 %v6824_v46, %v3561_v52  ;;  %v2324_v24 = vpop.f32.mrb[38].mxu0  ;;  %3479 = vmatprep.mubr.f32.mxu1 %v8223_v4  ;;  %v4297_v7 = vmin.f32 %v4056_v48, %v4057_v50  ;;  %v5949_v32 = vld [vmem:[%s8219_s7 + $0x48] sm:$0xff] }
 0x38f   :  { %v3818_v62 = vsub.f32 %v6820_v11, %v3562_v45  ;;  %v3576_v1 = vmul.f32 2.0, %v2324_v24  ;;  %v2326_v10 = vpop.f32.mrb[39].mxu0  ;;  %v4072_v12 = vadd.f32 %v3816_v55, %v6882_v37  ;;  %5764 = vmatmul.mubr.msk.f32.gmra.mrb[144].mxu0 %vm1364_vm3, %v6340_v33  ;;  %v6927_v58 = vadd.f32 %v2128_v9, %v6833_v54  ;;  %v6948_v55 = vpop.xlane.xlu1 %2045 }
 0x390   :  { %v3819_v47 = vsub.f32 %v6826_v42, %v3563_v26  ;;  %v2485_v16 = vpop.f32.mrb[38].mxu1  ;;  %v4474_v22 = vmin.f32 %v4058_v13, %v4059_v56  ;;  %v3577_v63 = vmul.f32 2.0, %v2326_v10  ;;  %4314 = vmin.xlane.f32.xlu0 %v4297_v7  ;;  %v4073_v15 = vadd.f32 %v3817_v2, %v6882_v37  ;;  %4489 = vmin.xlane.f32.xlu1 %v4473_v44 }
 0x391   :  { %v3578_v31 = vmul.f32 2.0, %v2485_v16  ;;  %v2487_v14 = vpop.f32.mrb[39].mxu1  ;;  %v4074_v6 = vadd.f32 %v3818_v62, %v6882_v37  ;;  %v3832_v25 = vsub.f32 %v6815_v5, %v3576_v1  ;;  %5780 = vmatmul.mubr.msk.f32.gmra.mrb[144].mxu1 %vm1364_vm3, %v5948_v30  ;;  %3324 = vmatprep.mubr.f32.mxu0 %v8223_v4  ;;  %v6934_v48 = vadd.f32 %v2140_v17, %v6835_v20 }
 0x392   :  { %v3579_v27 = vmul.f32 2.0, %v2487_v14  ;;  %v4075_v33 = vadd.f32 %v3819_v47, %v6882_v37  ;;  %v3833_v36 = vsub.f32 %v6824_v46, %v3577_v63  ;;  %3485 = vmatprep.mubr.f32.mxu1 %v8223_v4  ;;  %v4298_v34 = vmin.f32 %v4072_v12, %v4073_v15  ;;  %v2330_v41 = vpop.f32.mrb[40].mxu0  ;;  %8261 = vst [vmem:[#allocation10_spill] sm:$0xff] %v6948_v55  ;;  %v5950_v12 = vld [vmem:[%s8219_s7 + $0x50] sm:$0xff] }
 0x393   :  { %v3834_v8 = vsub.f32 %v6820_v11, %v3578_v31  ;;  %v4088_v43 = vadd.f32 %v3832_v25, %v6904_v59  ;;  %v3592_v44 = vmul.f32 2.0, %v2330_v41  ;;  %v2332_v52 = vpop.f32.mrb[41].mxu0  ;;  %5765 = vmatmul.mubr.msk.f32.gmra.mrb[146].mxu0 %vm1364_vm3, %v5949_v32  ;;  %v6945_v50 = vadd.f32 %v2150_v29, %v6839_v28 }
 0x394   :  { %v3835_v38 = vsub.f32 %v6826_v42, %v3579_v27  ;;  %v4475_v19 = vmin.f32 %v4074_v6, %v4075_v33  ;;  %v2491_v45 = vpop.f32.mrb[40].mxu1  ;;  %4491 = vmin.xlane.f32.xlu0 %v4474_v22  ;;  %v4089_v54 = vadd.f32 %v3833_v36, %v6904_v59  ;;  %v3593_v17 = vmul.f32 2.0, %v2332_v52  ;;  %4316 = vmin.xlane.f32.xlu1 %v4298_v34 }
 0x395   :  { %v4090_v9 = vadd.f32 %v3834_v8, %v6904_v59  ;;  %v3594_v20 = vmul.f32 2.0, %v2491_v45  ;;  %v2493_v13 = vpop.f32.mrb[41].mxu1  ;;  %5781 = vmatmul.mubr.msk.f32.gmra.mrb[146].mxu1 %vm1364_vm3, %v5949_v32  ;;  %v6952_v56 = vadd.f32 %v2160_v23, %v6845_v53  ;;  %v3848_v62 = vsub.f32 %v6815_v5, %v3592_v44  ;;  %3330 = vmatprep.mubr.f32.mxu0 %v8223_v4  ;;  %v5951_v44 = vld [vmem:[%s8219_s7 + $0x58] sm:$0xff] }
 0x396   :  { %v4091_v26 = vadd.f32 %v3835_v38, %v6904_v59  ;;  %v3595_v2 = vmul.f32 2.0, %v2493_v13  ;;  %3491 = vmatprep.mubr.f32.mxu1 %v8223_v4  ;;  %v4299_v28 = vmin.f32 %v4088_v43, %v4089_v54  ;;  %v6958_v29 = vadd.f32 %v2168_v60, %v6849_v61  ;;  %v2336_v47 = vpop.f32.mrb[42].mxu0 }
 0x397   :  { %v3850_v24 = vsub.f32 %v6820_v11, %v3594_v20  ;;  %v3849_v7 = vsub.f32 %v6824_v46, %v3593_v17  ;;  %v6963_v53 = vadd.f32 %v2162_v35, %v6858_v3  ;;  %v3608_v16 = vmul.f32 2.0, %v2336_v47  ;;  %v2338_v22 = vpop.f32.mrb[43].mxu0  ;;  %5766 = vmatmul.mubr.msk.f32.gmra.mrb[148].mxu0 %vm1364_vm3, %v5950_v12  ;;  %v6972_v3 = vpop.xlane.xlu0 %2048 }
 0x398   :  { %v4476_v1 = vmin.f32 %v4090_v9, %v4091_v26  ;;  %v3851_v23 = vsub.f32 %v6826_v42, %v3595_v2  ;;  %v2497_v10 = vpop.f32.mrb[42].mxu1  ;;  %4493 = vmin.xlane.f32.xlu0 %v4475_v19  ;;  %v4104_v61 = vadd.f32 %v3848_v62, %v6948_v55  ;;  %v3609_v31 = vmul.f32 2.0, %v2338_v22  ;;  %4318 = vmin.xlane.f32.xlu1 %v4299_v28  ;;  %v6991_v20 = vpop.xlane.xlu1 %2051 }
 0x399   :  { %v3610_v60 = vmul.f32 2.0, %v2497_v10  ;;  %v2499_v63 = vpop.f32.mrb[43].mxu1  ;;  %5782 = vmatmul.mubr.msk.f32.gmra.mrb[148].mxu1 %vm1364_vm3, %v5950_v12  ;;  %8262 = vst [vmem:[#allocation11_spill] sm:$0xff] %v6972_v3  ;;  %v4105_v14 = vadd.f32 %v3849_v7, %v6948_v55  ;;  %v4106_v15 = vadd.f32 %v3850_v24, %v6948_v55  ;;  %v2130_v6 = vrot.slane %v6927_v58, 1  ;;  %3336 = vmatprep.mubr.f32.mxu0 %v8223_v4 }
 0x39a   :  { %v3864_v25 = vsub.f32 %v6815_v5, %v3608_v16  ;;  %v3611_v27 = vmul.f32 2.0, %v2499_v63  ;;  %3497 = vmatprep.mubr.f32.mxu1 %v8223_v4  ;;  %v4107_v30 = vadd.f32 %v3851_v23, %v6948_v55  ;;  %v2142_v33 = vrot.slane %v6934_v48, 1  ;;  %v2342_v36 = vpop.f32.mrb[44].mxu0  ;;  %8263 = vst [vmem:[#allocation12_spill] sm:$0xff] %v6991_v20 }
 0x39b   :  { %v3866_v35 = vsub.f32 %v6820_v11, %v3610_v60  ;;  %v3865_v8 = vsub.f32 %v6824_v46, %v3609_v31  ;;  %v4300_v34 = vmin.f32 %v4104_v61, %v4105_v14  ;;  %v3624_v41 = vmul.f32 2.0, %v2342_v36  ;;  %v2344_v43 = vpop.f32.mrb[45].mxu0  ;;  %5767 = vmatmul.mubr.msk.f32.gmra.mrb[150].mxu0 %vm1364_vm3, %v5951_v44  ;;  %v5952_v61 = vld [vmem:[%s8219_s7 + $0x60] sm:$0xff] }
 0x39c   :  { %v3867_v38 = vsub.f32 %v6826_v42, %v3611_v27  ;;  %v2503_v19 = vpop.f32.mrb[44].mxu1  ;;  %4495 = vmin.xlane.f32.xlu0 %v4476_v1  ;;  %v4477_v45 = vmin.f32 %v4106_v15, %v4107_v30  ;;  %v4120_v52 = vadd.f32 %v3864_v25, %v6972_v3  ;;  %v3625_v54 = vmul.f32 2.0, %v2344_v43  ;;  %3342 = vmatprep.mubr.f32.mxu0 %v8223_v4  ;;  %v7010_v25 = vpop.xlane.xlu0 %2054 }
 0x39d   :  { %v3626_v32 = vmul.f32 2.0, %v2503_v19  ;;  %v2505_v9 = vpop.f32.mrb[45].mxu1  ;;  %5783 = vmatmul.mubr.msk.f32.gmra.mrb[150].mxu1 %vm1364_vm3, %v5951_v44  ;;  %4320 = vmin.xlane.f32.xlu1 %v4300_v34  ;;  %v4121_v17 = vadd.f32 %v3865_v8, %v6972_v3  ;;  %v4122_v13 = vadd.f32 %v3866_v35, %v6972_v3  ;;  %v2152_v26 = vrot.slane %v6945_v50, 2  ;;  %8264 = vst [vmem:[#allocation13_spill] sm:$0xff] %v7010_v25 }
 0x39e   :  { %v3880_v62 = vsub.f32 %v6815_v5, %v3624_v41  ;;  %v3627_v2 = vmul.f32 2.0, %v2505_v9  ;;  %3503 = vmatprep.mubr.f32.mxu1 %v8223_v4  ;;  %v4123_v28 = vadd.f32 %v3867_v38, %v6972_v3  ;;  %v2170_v24 = vrot.slane %v6958_v29, 2  ;;  %v2348_v1 = vpop.f32.mrb[46].mxu0 }
 0x39f   :  { %v3882_v7 = vsub.f32 %v6820_v11, %v3626_v32  ;;  %v3881_v47 = vsub.f32 %v6824_v46, %v3625_v54  ;;  %v4301_v23 = vmin.f32 %v4120_v52, %v4121_v17  ;;  %v3640_v10 = vmul.f32 2.0, %v2348_v1  ;;  %v2350_v12 = vpop.f32.mrb[47].mxu0  ;;  %5768 = vmatmul.mubr.msk.f32.gmra.mrb[152].mxu0 %vm1364_vm3, %v5952_v61  ;;  %v5953_v54 = vld [vmem:[%s8219_s7 + $0x68] sm:$0xff] }
 0x3a0   :  { %v3883_v16 = vsub.f32 %v6826_v42, %v3627_v2  ;;  %v2509_v22 = vpop.f32.mrb[46].mxu1  ;;  %4497 = vmin.xlane.f32.xlu0 %v4477_v45  ;;  %v4478_v60 = vmin.f32 %v4122_v13, %v4123_v28  ;;  %v4136_v31 = vadd.f32 %v3880_v62, %v6991_v20  ;;  %v3641_v14 = vmul.f32 2.0, %v2350_v12  ;;  %3348 = vmatprep.mubr.f32.mxu0 %v8223_v4  ;;  %v7032_v28 = vpop.xlane.xlu1 %2057 }
 0x3a1   :  { %v3642_v63 = vmul.f32 2.0, %v2509_v22  ;;  %v2511_v15 = vpop.f32.mrb[47].mxu1  ;;  %5784 = vmatmul.mubr.msk.f32.gmra.mrb[152].mxu1 %vm1364_vm3, %v5952_v61  ;;  %4322 = vmin.xlane.f32.xlu1 %v4301_v23  ;;  %v4137_v27 = vadd.f32 %v3881_v47, %v6991_v20  ;;  %v4138_v30 = vadd.f32 %v3882_v7, %v6991_v20  ;;  %v7016_v35 = vmul.f32 %v6669_v51, %v6669_v51 }
 0x3a2   :  { %v3896_v8 = vsub.f32 %v6815_v5, %v3640_v10  ;;  %v3643_v36 = vmul.f32 2.0, %v2511_v15  ;;  %3509 = vmatprep.mubr.f32.mxu1 %v8223_v4  ;;  %v4139_v34 = vadd.f32 %v3883_v16, %v6991_v20  ;;  %v2164_v38 = vrot.slane %v6963_v53, 2  ;;  %v2354_v43 = vpop.f32.mrb[48].mxu0  ;;  %v5954_v15 = vld [vmem:[%s8219_s7 + $0x70] sm:$0xff] }
 0x3a3   :  { %v3898_v41 = vsub.f32 %v6820_v11, %v3642_v63  ;;  %v3897_v19 = vsub.f32 %v6824_v46, %v3641_v14  ;;  %v4302_v44 = vmin.f32 %v4136_v31, %v4137_v27  ;;  %v3656_v45 = vmul.f32 2.0, %v2354_v43  ;;  %v2356_v32 = vpop.f32.mrb[49].mxu0  ;;  %5769 = vmatmul.mubr.msk.f32.gmra.mrb[154].mxu0 %vm1364_vm3, %v5953_v54 }
 0x3a4   :  { %v3899_v51 = vsub.f32 %v6826_v42, %v3643_v36  ;;  %v2515_v52 = vpop.f32.mrb[48].mxu1  ;;  %4499 = vmin.xlane.f32.xlu0 %v4478_v60  ;;  %v4479_v9 = vmin.f32 %v4138_v30, %v4139_v34  ;;  %v4152_v17 = vadd.f32 %v3896_v8, %v7010_v25  ;;  %v3657_v62 = vmul.f32 2.0, %v2356_v32  ;;  %3354 = vmatprep.mubr.f32.mxu0 %v8223_v4  ;;  %v7059_v36 = vpop.xlane.xlu0 %2060 }
 0x3a5   :  { %v3658_v13 = vmul.f32 2.0, %v2515_v52  ;;  %v2517_v2 = vpop.f32.mrb[49].mxu1  ;;  %5785 = vmatmul.mubr.msk.f32.gmra.mrb[154].mxu1 %vm1364_vm3, %v5953_v54  ;;  %4324 = vmin.xlane.f32.xlu1 %v4302_v44  ;;  %v4153_v7 = vadd.f32 %v3897_v19, %v7010_v25  ;;  %v4154_v47 = vadd.f32 %v3898_v41, %v7010_v25  ;;  %v7039_v1 = vadd.f32 %v2130_v6, %v6927_v58 }
 0x3a6   :  { %v3912_v23 = vsub.f32 %v6815_v5, %v3656_v45  ;;  %v3659_v16 = vmul.f32 2.0, %v2517_v2  ;;  %3515 = vmatprep.mubr.f32.mxu1 %v8223_v4  ;;  %v4155_v10 = vadd.f32 %v3899_v51, %v7010_v25  ;;  %v7048_v22 = vadd.f32 %v2142_v33, %v6934_v48  ;;  %v2360_v58 = vpop.f32.mrb[50].mxu0 }
 0x3a7   :  { %v3914_v12 = vsub.f32 %v6820_v11, %v3658_v13  ;;  %v3913_v61 = vsub.f32 %v6824_v46, %v3657_v62  ;;  %v4303_v6 = vmin.f32 %v4152_v17, %v4153_v7  ;;  %v3672_v31 = vmul.f32 2.0, %v2360_v58  ;;  %v2362_v14 = vpop.f32.mrb[51].mxu0  ;;  %5770 = vmatmul.mubr.msk.f32.gmra.mrb[156].mxu0 %vm1364_vm3, %v5954_v15  ;;  %v5955_v62 = vld [vmem:[%s8219_s7 + $0x78] sm:$0xff] }
 0x3a8   :  { %v3915_v60 = vsub.f32 %v6826_v42, %v3659_v16  ;;  %v2521_v63 = vpop.f32.mrb[50].mxu1  ;;  %4501 = vmin.xlane.f32.xlu0 %v4479_v9  ;;  %v4480_v48 = vmin.f32 %v4154_v47, %v4155_v10  ;;  %v4168_v33 = vadd.f32 %v3912_v23, %v7032_v28  ;;  %v3673_v30 = vmul.f32 2.0, %v2362_v14  ;;  %3360 = vmatprep.mubr.f32.mxu0 %v8223_v4  ;;  %v7086_v23 = vpop.xlane.xlu1 %2063 }
 0x3a9   :  { %v3674_v27 = vmul.f32 2.0, %v2521_v63  ;;  %v2523_v8 = vpop.f32.mrb[51].mxu1  ;;  %5786 = vmatmul.mubr.msk.f32.gmra.mrb[156].mxu1 %vm1364_vm3, %v5954_v15  ;;  %4326 = vmin.xlane.f32.xlu1 %v4303_v6  ;;  %v4169_v34 = vadd.f32 %v3913_v61, %v7032_v28  ;;  %v4170_v41 = vadd.f32 %v3914_v12, %v7032_v28  ;;  %v7066_v19 = vadd.f32 %v2152_v26, %v6945_v50 }
 0x3aa   :  { %v3928_v43 = vsub.f32 %v6815_v5, %v3672_v31  ;;  %v3675_v44 = vmul.f32 2.0, %v2523_v8  ;;  %3521 = vmatprep.mubr.f32.mxu1 %v8223_v4  ;;  %v4171_v51 = vadd.f32 %v3915_v60, %v7032_v28  ;;  %v7075_v45 = vadd.f32 %v2170_v24, %v6958_v29  ;;  %v2366_v50 = vpop.f32.mrb[52].mxu0  ;;  %8265 = vst [vmem:[#allocation14_spill] sm:$0xff] %v7086_v23 }
 0x3ab   :  { %v3930_v52 = vsub.f32 %v6820_v11, %v3674_v27  ;;  %v3929_v32 = vsub.f32 %v6824_v46, %v3673_v30  ;;  %v4304_v26 = vmin.f32 %v4168_v33, %v4169_v34  ;;  %v3688_v9 = vmul.f32 2.0, %v2366_v50  ;;  %v2368_v13 = vpop.f32.mrb[53].mxu0  ;;  %5771 = vmatmul.mubr.msk.f32.gmra.mrb[158].mxu0 %vm1364_vm3, %v5955_v62 }
 0x3ac   :  { %v3931_v54 = vsub.f32 %v6826_v42, %v3675_v44  ;;  %v2527_v17 = vpop.f32.mrb[52].mxu1  ;;  %4503 = vmin.xlane.f32.xlu0 %v4480_v48  ;;  %v4481_v29 = vmin.f32 %v4170_v41, %v4171_v51  ;;  %v4184_v24 = vadd.f32 %v3928_v43, %v7059_v36  ;;  %v3689_v7 = vmul.f32 2.0, %v2368_v13 }
 0x3ad   :  { %v3690_v2 = vmul.f32 2.0, %v2527_v17  ;;  %v2529_v47 = vpop.f32.mrb[53].mxu1  ;;  %5787 = vmatmul.mubr.msk.f32.gmra.mrb[158].mxu1 %vm1364_vm3, %v5955_v62  ;;  %4328 = vmin.xlane.f32.xlu1 %v4304_v26  ;;  %v4185_v16 = vadd.f32 %v3929_v32, %v7059_v36  ;;  %v4186_v10 = vadd.f32 %v3930_v52, %v7059_v36  ;;  %v2180_v12 = vrot.slane %v7016_v35, 4 }
 0x3ae   :  { %v3944_v61 = vsub.f32 %v6815_v5, %v3688_v9  ;;  %v3691_v58 = vmul.f32 2.0, %v2529_v47  ;;  %v4187_v6 = vadd.f32 %v3931_v54, %v7059_v36  ;;  %v7096_v60 = vadd.f32 %v2164_v38, %v6963_v53  ;;  %v2372_v14 = vpop.f32.mrb[54].mxu0  ;;  %v7102_v53 = vpop.xlane.xlu0 %2066 }
 0x3af   :  { %v3946_v31 = vsub.f32 %v6820_v11, %v3690_v2  ;;  %v3945_v63 = vsub.f32 %v6824_v46, %v3689_v7  ;;  %v4305_v15 = vmin.f32 %v4184_v24, %v4185_v16  ;;  %v3704_v33 = vmul.f32 2.0, %v2372_v14  ;;  %v2374_v30 = vpop.f32.mrb[55].mxu0 }
 0x3b0   :  { %v3947_v48 = vsub.f32 %v6826_v42, %v3691_v58  ;;  %v2533_v27 = vpop.f32.mrb[54].mxu1  ;;  %4505 = vmin.xlane.f32.xlu0 %v4481_v29  ;;  %v4482_v8 = vmin.f32 %v4186_v10, %v4187_v6  ;;  %v4200_v34 = vadd.f32 %v3944_v61, %v7086_v23  ;;  %v3705_v43 = vmul.f32 2.0, %v2374_v30  ;;  %v7114_v6 = vpop.xlane.xlu1 %2069 }
 0x3b1   :  { %v3706_v41 = vmul.f32 2.0, %v2533_v27  ;;  %v2535_v44 = vpop.f32.mrb[55].mxu1  ;;  %4330 = vmin.xlane.f32.xlu1 %v4305_v15  ;;  %v4201_v38 = vadd.f32 %v3945_v63, %v7086_v23  ;;  %v4202_v51 = vadd.f32 %v3946_v31, %v7086_v23  ;;  %v2154_v52 = vrot.slane %v7066_v19, 1  ;;  %8266 = vst [vmem:[#allocation15_spill] sm:$0xff] %v7114_v6 }
 0x3b2   :  { %v3960_v32 = vsub.f32 %v6815_v5, %v3704_v33  ;;  %v3707_v50 = vmul.f32 2.0, %v2535_v44  ;;  %v4203_v26 = vadd.f32 %v3947_v48, %v7086_v23  ;;  %v2172_v54 = vrot.slane %v7075_v45, 1  ;;  %v2378_v13 = vpop.f32.mrb[56].mxu0 }
 0x3b3   :  { %v3962_v9 = vsub.f32 %v6820_v11, %v3706_v41  ;;  %v3961_v17 = vsub.f32 %v6824_v46, %v3705_v43  ;;  %v4306_v62 = vmin.f32 %v4200_v34, %v4201_v38  ;;  %v3720_v24 = vmul.f32 2.0, %v2378_v13  ;;  %v2380_v7 = vpop.f32.mrb[57].mxu0 }
 0x3b4   :  { %v3963_v29 = vsub.f32 %v6826_v42, %v3707_v50  ;;  %v2539_v2 = vpop.f32.mrb[56].mxu1  ;;  %4507 = vmin.xlane.f32.xlu0 %v4482_v8  ;;  %v4483_v47 = vmin.f32 %v4202_v51, %v4203_v26  ;;  %v4216_v16 = vadd.f32 %v3960_v32, %v7102_v53  ;;  %v3721_v61 = vmul.f32 2.0, %v2380_v7 }
 0x3b5   :  { %v3722_v10 = vmul.f32 2.0, %v2539_v2  ;;  %v2541_v58 = vpop.f32.mrb[57].mxu1  ;;  %4332 = vmin.xlane.f32.xlu1 %v4306_v62  ;;  %v4217_v31 = vadd.f32 %v3961_v17, %v7102_v53  ;;  %v4218_v63 = vadd.f32 %v3962_v9, %v7102_v53  ;;  %v7119_v14 = vadd.f32 %v2180_v12, %v7016_v35  ;;  %v7128_v9 = vpop.xlane.xlu0 %2072 }
 0x3b6   :  { %v3976_v15 = vsub.f32 %v6815_v5, %v3720_v24  ;;  %v3723_v48 = vmul.f32 2.0, %v2541_v58  ;;  %v4219_v33 = vadd.f32 %v3963_v29, %v7102_v53  ;;  %v2166_v27 = vrot.slane %v7096_v60, 1  ;;  %v2384_v34 = vpop.f32.mrb[58].mxu0 }
 0x3b7   :  { %v3978_v30 = vsub.f32 %v6820_v11, %v3722_v10  ;;  %v3977_v8 = vsub.f32 %v6824_v46, %v3721_v61  ;;  %v4307_v41 = vmin.f32 %v4216_v16, %v4217_v31  ;;  %v3736_v44 = vmul.f32 2.0, %v2384_v34  ;;  %v2386_v51 = vpop.f32.mrb[59].mxu0 }
 0x3b8   :  { %v3979_v43 = vsub.f32 %v6826_v42, %v3723_v48  ;;  %v2545_v38 = vpop.f32.mrb[58].mxu1  ;;  %4509 = vmin.xlane.f32.xlu0 %v4483_v47  ;;  %v4484_v35 = vmin.f32 %v4218_v63, %v4219_v33  ;;  %v4232_v12 = vadd.f32 %v3976_v15, %v7114_v6  ;;  %v3737_v50 = vmul.f32 2.0, %v2386_v51 }
 0x3b9   :  { %v3738_v32 = vmul.f32 2.0, %v2545_v38  ;;  %v2547_v26 = vpop.f32.mrb[59].mxu1  ;;  %4334 = vmin.xlane.f32.xlu1 %v4307_v41  ;;  %v4233_v17 = vadd.f32 %v3977_v8, %v7114_v6  ;;  %v4234_v13 = vadd.f32 %v3978_v30, %v7114_v6  ;;  %v7134_v62 = vmul.f32 %v6561_v39, %v6561_v39 }
 0x3ba   :  { %v3992_v29 = vsub.f32 %v6815_v5, %v3736_v44  ;;  %v3739_v24 = vmul.f32 2.0, %v2547_v26  ;;  %v4235_v2 = vadd.f32 %v3979_v43, %v7114_v6  ;;  %v7139_v7 = vadd.f32 %v2154_v52, %v7066_v19  ;;  %v2390_v10 = vpop.f32.mrb[60].mxu0  ;;  %v7145_v19 = vpop.xlane.xlu1 %2075 }
 0x3bb   :  { %v3994_v47 = vsub.f32 %v6820_v11, %v3738_v32  ;;  %v3993_v16 = vsub.f32 %v6824_v46, %v3737_v50  ;;  %v4308_v61 = vmin.f32 %v4232_v12, %v4233_v17  ;;  %v3752_v31 = vmul.f32 2.0, %v2390_v10  ;;  %v2392_v39 = vpop.f32.mrb[61].mxu0 }
 0x3bc   :  { %v3995_v58 = vsub.f32 %v6826_v42, %v3739_v24  ;;  %v2551_v63 = vpop.f32.mrb[60].mxu1  ;;  %4511 = vmin.xlane.f32.xlu0 %v4484_v35  ;;  %v4485_v15 = vmin.f32 %v4234_v13, %v4235_v2  ;;  %v4248_v48 = vadd.f32 %v3992_v29, %v7128_v9  ;;  %v3753_v30 = vmul.f32 2.0, %v2392_v39 }
 0x3bd   :  { %v3754_v33 = vmul.f32 2.0, %v2551_v63  ;;  %v2553_v8 = vpop.f32.mrb[61].mxu1  ;;  %4336 = vmin.xlane.f32.xlu1 %v4308_v61  ;;  %v4249_v52 = vadd.f32 %v3993_v16, %v7128_v9  ;;  %v4250_v34 = vadd.f32 %v3994_v47, %v7128_v9  ;;  %v7151_v41 = vmul.f32 %v6566_v40, %v6566_v40 }
 0x3be   :  { %v4008_v43 = vsub.f32 %v6815_v5, %v3752_v31  ;;  %v3755_v44 = vmul.f32 2.0, %v2553_v8  ;;  %v4251_v38 = vadd.f32 %v3995_v58, %v7128_v9  ;;  %v7158_v51 = vadd.f32 %v2172_v54, %v7075_v45  ;;  %v2396_v32 = vpop.f32.mrb[62].mxu0  ;;  %v7164_v45 = vpop.xlane.xlu0 %2078 }
 0x3bf   :  { %v4010_v35 = vsub.f32 %v6820_v11, %v3754_v33  ;;  %v4009_v12 = vsub.f32 %v6824_v46, %v3753_v30  ;;  %v4309_v50 = vmin.f32 %v4248_v48, %v4249_v52  ;;  %v3768_v40 = vmul.f32 2.0, %v2396_v32  ;;  %v2398_v13 = vpop.f32.mrb[63].mxu0 }
 0x3c0   :  { %v4011_v26 = vsub.f32 %v6826_v42, %v3755_v44  ;;  %v2557_v17 = vpop.f32.mrb[62].mxu1  ;;  %4513 = vmin.xlane.f32.xlu0 %v4485_v15  ;;  %v4486_v29 = vmin.f32 %v4250_v34, %v4251_v38  ;;  %v4264_v24 = vadd.f32 %v4008_v43, %v7145_v19  ;;  %v3769_v47 = vmul.f32 2.0, %v2398_v13 }
 0x3c1   :  { %v3770_v2 = vmul.f32 2.0, %v2557_v17  ;;  %v2559_v16 = vpop.f32.mrb[63].mxu1  ;;  %4338 = vmin.xlane.f32.xlu1 %v4309_v50  ;;  %v4265_v54 = vadd.f32 %v4009_v12, %v7145_v19  ;;  %v4266_v10 = vadd.f32 %v4010_v35, %v7145_v19  ;;  %v2182_v61 = vrot.slane %v7119_v14, 2 }
 0x3c2   :  { %v4024_v58 = vsub.f32 %v6815_v5, %v3768_v40  ;;  %v3771_v31 = vmul.f32 2.0, %v2559_v16  ;;  %v4267_v63 = vadd.f32 %v4011_v26, %v7145_v19  ;;  %v7174_v39 = vadd.f32 %v2166_v27, %v7096_v60  ;;  %v2628_v33 = vpop.f32.mrb[64].mxu0 }
 0x3c3   :  { %v4026_v15 = vsub.f32 %v6820_v11, %v3770_v2  ;;  %v4025_v48 = vsub.f32 %v6824_v46, %v3769_v47  ;;  %v4310_v30 = vmin.f32 %v4264_v24, %v4265_v54  ;;  %v3532_v52 = vmul.f32 2.0, %v2628_v33  ;;  %v2630_v43 = vpop.f32.mrb[65].mxu0 }
 0x3c4   :  { %v4027_v8 = vsub.f32 %v6826_v42, %v3771_v31  ;;  %v2789_v34 = vpop.f32.mrb[64].mxu1  ;;  %4515 = vmin.xlane.f32.xlu0 %v4486_v29  ;;  %v4487_v5 = vmin.f32 %v4266_v10, %v4267_v63  ;;  %v4280_v44 = vadd.f32 %v4024_v58, %v7164_v45  ;;  %v3533_v35 = vmul.f32 2.0, %v2630_v43 }
 0x3c5   :  { %v3534_v38 = vmul.f32 2.0, %v2789_v34  ;;  %v2791_v12 = vpop.f32.mrb[65].mxu1  ;;  %4340 = vmin.xlane.f32.xlu1 %v4310_v30  ;;  %v4281_v60 = vadd.f32 %v4025_v48, %v7164_v45  ;;  %v4282_v11 = vadd.f32 %v4026_v15, %v7164_v45  ;;  %v2174_v46 = vrot.slane %v7134_v62, 4 }
 0x3c6   :  { %v3788_v27 = vsub.f32 %v6829_v57, %v3532_v52  ;;  %v3535_v42 = vmul.f32 2.0, %v2791_v12  ;;  %v4283_v32 = vadd.f32 %v4027_v8, %v7164_v45  ;;  %v2186_v50 = vrot.slane %v7151_v41, 4  ;;  %v2634_v17 = vpop.f32.mrb[66].mxu0 }
 0x3c7   :  { %v3790_v26 = vsub.f32 %v6831_v21, %v3534_v38  ;;  %v3789_v40 = vsub.f32 %v7039_v1, %v3533_v35  ;;  %v4311_v13 = vmin.f32 %v4280_v44, %v4281_v60  ;;  %v3548_v24 = vmul.f32 2.0, %v2634_v17  ;;  %v2636_v47 = vpop.f32.mrb[67].mxu0 }
 0x3c8   :  { %v3791_v29 = vsub.f32 %v7048_v22, %v3535_v42  ;;  %v2795_v2 = vpop.f32.mrb[66].mxu1  ;;  %4517 = vmin.xlane.f32.xlu0 %v4487_v5  ;;  %v4488_v16 = vmin.f32 %v4282_v11, %v4283_v32  ;;  %v4044_v54 = vadd.f32 %v3788_v27, %v6843_v49  ;;  %v3549_v58 = vmul.f32 2.0, %v2636_v47 }
 0x3c9   :  { %v3550_v10 = vmul.f32 2.0, %v2795_v2  ;;  %v2797_v31 = vpop.f32.mrb[67].mxu1  ;;  %4342 = vmin.xlane.f32.xlu1 %v4311_v13  ;;  %v4045_v63 = vadd.f32 %v3789_v40, %v6843_v49  ;;  %v4046_v15 = vadd.f32 %v3790_v26, %v6843_v49  ;;  %v7193_v48 = vadd.f32 %v2182_v61, %v7119_v14 }
 0x3ca   :  { %v3804_v33 = vsub.f32 %v6829_v57, %v3548_v24  ;;  %v3551_v30 = vmul.f32 2.0, %v2797_v31  ;;  %v4047_v8 = vadd.f32 %v3791_v29, %v6843_v49  ;;  %v7198_v52 = vadd.f32 %v2174_v46, %v7134_v62  ;;  %v2640_v5 = vpop.f32.mrb[68].mxu0 }
 0x3cb   :  { %v3806_v34 = vsub.f32 %v6831_v21, %v3550_v10  ;;  %v3805_v43 = vsub.f32 %v7039_v1, %v3549_v58  ;;  %v4618_v44 = vmin.f32 %v4044_v54, %v4045_v63  ;;  %v3564_v35 = vmul.f32 2.0, %v2640_v5  ;;  %v2642_v14 = vpop.f32.mrb[69].mxu0 }
 0x3cc   :  { %v3807_v38 = vsub.f32 %v7048_v22, %v3551_v30  ;;  %v2801_v12 = vpop.f32.mrb[68].mxu1  ;;  %4519 = vmin.xlane.f32.xlu0 %v4488_v16  ;;  %v4060_v61 = vadd.f32 %v3804_v33, %v6868_v0  ;;  %v4763_v60 = vmin.f32 %v4046_v15, %v4047_v8  ;;  %v3565_v27 = vmul.f32 2.0, %v2642_v14 }
 0x3cd   :  { %v3566_v11 = vmul.f32 2.0, %v2801_v12  ;;  %v2803_v42 = vpop.f32.mrb[69].mxu1  ;;  %4634 = vmin.xlane.f32.xlu1 %v4618_v44  ;;  %v4061_v62 = vadd.f32 %v3805_v43, %v6868_v0  ;;  %v4062_v46 = vadd.f32 %v3806_v34, %v6868_v0  ;;  %v7207_v32 = vadd.f32 %v2186_v50, %v7151_v41 }
 0x3ce   :  { %v3820_v26 = vsub.f32 %v6829_v57, %v3564_v35  ;;  %v3567_v40 = vmul.f32 2.0, %v2803_v42  ;;  %v4063_v17 = vadd.f32 %v3807_v38, %v6868_v0  ;;  %v2184_v13 = vrot.slane %v7193_v48, 1  ;;  %v2646_v2 = vpop.f32.mrb[70].mxu0 }
 0x3cf   :  { %v3822_v29 = vsub.f32 %v6831_v21, %v3566_v11  ;;  %v3821_v24 = vsub.f32 %v7039_v1, %v3565_v27  ;;  %v4619_v47 = vmin.f32 %v4060_v61, %v4061_v62  ;;  %v3580_v54 = vmul.f32 2.0, %v2646_v2  ;;  %v2648_v58 = vpop.f32.mrb[71].mxu0 }
 0x3d0   :  { %v3823_v16 = vsub.f32 %v7048_v22, %v3567_v40  ;;  %v2807_v10 = vpop.f32.mrb[70].mxu1  ;;  %v4764_v41 = vmin.f32 %v4062_v46, %v4063_v17  ;;  %v4076_v50 = vadd.f32 %v3820_v26, %v6882_v37  ;;  %v3581_v63 = vmul.f32 2.0, %v2648_v58 }
 0x3d1   :  { %v3582_v31 = vmul.f32 2.0, %v2807_v10  ;;  %v2809_v15 = vpop.f32.mrb[71].mxu1  ;;  %4636 = vmin.xlane.f32.xlu0 %v4619_v47  ;;  %4779 = vmin.xlane.f32.xlu1 %v4763_v60  ;;  %v4077_v33 = vadd.f32 %v3821_v24, %v6882_v37  ;;  %v4078_v30 = vadd.f32 %v3822_v29, %v6882_v37  ;;  %v2176_v8 = vrot.slane %v7198_v52, 2 }
 0x3d2   :  { %v3836_v34 = vsub.f32 %v6829_v57, %v3580_v54  ;;  %v3583_v43 = vmul.f32 2.0, %v2809_v15  ;;  %v4079_v5 = vadd.f32 %v3823_v16, %v6882_v37  ;;  %v2188_v44 = vrot.slane %v7207_v32, 2  ;;  %v2652_v12 = vpop.f32.mrb[72].mxu0 }
 0x3d3   :  { %v3838_v38 = vsub.f32 %v6831_v21, %v3582_v31  ;;  %v3837_v35 = vsub.f32 %v7039_v1, %v3581_v63  ;;  %v4620_v14 = vmin.f32 %v4076_v50, %v4077_v33  ;;  %v3596_v60 = vmul.f32 2.0, %v2652_v12  ;;  %v2654_v27 = vpop.f32.mrb[73].mxu0 }
 0x3d4   :  { %v3839_v61 = vsub.f32 %v7048_v22, %v3583_v43  ;;  %v2813_v11 = vpop.f32.mrb[72].mxu1  ;;  %v4765_v42 = vmin.f32 %v4078_v30, %v4079_v5  ;;  %v4092_v62 = vadd.f32 %v3836_v34, %v6904_v59  ;;  %v3597_v26 = vmul.f32 2.0, %v2654_v27 }
 0x3d5   :  { %v3598_v46 = vmul.f32 2.0, %v2813_v11  ;;  %v2815_v40 = vpop.f32.mrb[73].mxu1  ;;  %4781 = vmin.xlane.f32.xlu0 %v4764_v41  ;;  %4638 = vmin.xlane.f32.xlu1 %v4620_v14  ;;  %v4093_v17 = vadd.f32 %v3837_v35, %v6904_v59  ;;  %v4094_v29 = vadd.f32 %v3838_v38, %v6904_v59  ;;  %v7229_v24 = vadd.f32 %v2184_v13, %v7193_v48 }
 0x3d6   :  { %v3852_v2 = vsub.f32 %v6829_v57, %v3596_v60  ;;  %v3599_v47 = vmul.f32 2.0, %v2815_v40  ;;  %v4095_v16 = vadd.f32 %v3839_v61, %v6904_v59  ;;  %v2177_v54 = vadd.f32 %v2176_v8, %v7198_v52  ;;  %v2658_v41 = vpop.f32.mrb[74].mxu0 }
 0x3d7   :  { %v3854_v10 = vsub.f32 %v6831_v21, %v3598_v46  ;;  %v3853_v58 = vsub.f32 %v7039_v1, %v3597_v26  ;;  %v4621_v50 = vmin.f32 %v4092_v62, %v4093_v17  ;;  %v3612_v63 = vmul.f32 2.0, %v2658_v41  ;;  %v2660_v33 = vpop.f32.mrb[75].mxu0 }
 0x3d8   :  { %v3855_v31 = vsub.f32 %v7048_v22, %v3599_v47  ;;  %v2819_v15 = vpop.f32.mrb[74].mxu1  ;;  %v4766_v48 = vmin.f32 %v4094_v29, %v4095_v16  ;;  %v4108_v13 = vadd.f32 %v3852_v2, %v6948_v55  ;;  %v3613_v34 = vmul.f32 2.0, %v2660_v33 }
 0x3d9   :  { %v3614_v30 = vmul.f32 2.0, %v2819_v15  ;;  %v2821_v43 = vpop.f32.mrb[75].mxu1  ;;  %4783 = vmin.xlane.f32.xlu0 %v4765_v42  ;;  %4640 = vmin.xlane.f32.xlu1 %v4621_v50  ;;  %v4109_v52 = vadd.f32 %v3853_v58, %v6948_v55  ;;  %v4110_v8 = vadd.f32 %v3854_v10, %v6948_v55  ;;  %v2189_v5 = vadd.f32 %v2188_v44, %v7207_v32 }
 0x3da   :  { %v3868_v38 = vsub.f32 %v6829_v57, %v3612_v63  ;;  %v3615_v35 = vmul.f32 2.0, %v2821_v43  ;;  %v4111_v12 = vadd.f32 %v3855_v31, %v6948_v55  ;;  %v2178_v14 = vrot.slane %v2177_v54, 1  ;;  %v2664_v11 = vpop.f32.mrb[76].mxu0 }
 0x3db   :  { %v3870_v61 = vsub.f32 %v6831_v21, %v3614_v30  ;;  %v3869_v60 = vsub.f32 %v7039_v1, %v3613_v34  ;;  %v4622_v27 = vmin.f32 %v4108_v13, %v4109_v52  ;;  %v3628_v62 = vmul.f32 2.0, %v2664_v11  ;;  %v2666_v26 = vpop.f32.mrb[77].mxu0 }
 0x3dc   :  { %v3871_v42 = vsub.f32 %v7048_v22, %v3615_v35  ;;  %v2825_v46 = vpop.f32.mrb[76].mxu1  ;;  %v4767_v40 = vmin.f32 %v4110_v8, %v4111_v12  ;;  %v4124_v32 = vadd.f32 %v3868_v38, %v6972_v3  ;;  %v3629_v17 = vmul.f32 2.0, %v2666_v26 }
 0x3dd   :  { %v3630_v44 = vmul.f32 2.0, %v2825_v46  ;;  %v2827_v29 = vpop.f32.mrb[77].mxu1  ;;  %4785 = vmin.xlane.f32.xlu0 %v4766_v48  ;;  %4642 = vmin.xlane.f32.xlu1 %v4622_v27  ;;  %v4125_v2 = vadd.f32 %v3869_v60, %v6972_v3  ;;  %v4126_v47 = vadd.f32 %v3870_v61, %v6972_v3  ;;  %v2190_v16 = vrot.slane %v2189_v5, 1 }
 0x3de   :  { %v3884_v10 = vsub.f32 %v6829_v57, %v3628_v62  ;;  %v3631_v58 = vmul.f32 2.0, %v2827_v29  ;;  %v4127_v41 = vadd.f32 %v3871_v42, %v6972_v3  ;;  %v7251_v50 = vadd.f32 %v2178_v14, %v2177_v54  ;;  %v2670_v15 = vpop.f32.mrb[78].mxu0 }
 0x3df   :  { %v3886_v31 = vsub.f32 %v6831_v21, %v3630_v44  ;;  %v3885_v63 = vsub.f32 %v7039_v1, %v3629_v17  ;;  %v4623_v33 = vmin.f32 %v4124_v32, %v4125_v2  ;;  %v3644_v13 = vmul.f32 2.0, %v2670_v15  ;;  %v2672_v34 = vpop.f32.mrb[79].mxu0 }
 0x3e0   :  { %v3887_v48 = vsub.f32 %v7048_v22, %v3631_v58  ;;  %v2831_v30 = vpop.f32.mrb[78].mxu1  ;;  %v4768_v43 = vmin.f32 %v4126_v47, %v4127_v41  ;;  %v4140_v52 = vadd.f32 %v3884_v10, %v6991_v20  ;;  %v3645_v38 = vmul.f32 2.0, %v2672_v34 }
 0x3e1   :  { %v3646_v8 = vmul.f32 2.0, %v2831_v30  ;;  %v2833_v35 = vpop.f32.mrb[79].mxu1  ;;  %4787 = vmin.xlane.f32.xlu0 %v4767_v40  ;;  %4644 = vmin.xlane.f32.xlu1 %v4623_v33  ;;  %v4141_v54 = vadd.f32 %v3885_v63, %v6991_v20  ;;  %v4142_v12 = vadd.f32 %v3886_v31, %v6991_v20  ;;  %v3900_v14 = vsub.f32 %v6829_v57, %v3644_v13 }
 0x3e2   :  { %v3647_v61 = vmul.f32 2.0, %v2833_v35  ;;  %v4143_v60 = vadd.f32 %v3887_v48, %v6991_v20  ;;  %v4360_v11 = vlaneseq  ;;  %v7261_v27 = vadd.f32 %v2190_v16, %v2189_v5  ;;  %v2676_v46 = vpop.f32.mrb[80].mxu0 }
 0x3e3   :  { %v3902_v42 = vsub.f32 %v6831_v21, %v3646_v8  ;;  %v3901_v62 = vsub.f32 %v7039_v1, %v3645_v38  ;;  %v4624_v26 = vmin.f32 %v4140_v52, %v4141_v54  ;;  %v3660_v32 = vmul.f32 2.0, %v2676_v46  ;;  %v2678_v17 = vpop.f32.mrb[81].mxu0 }
 0x3e4   :  { %v3903_v40 = vsub.f32 %v7048_v22, %v3647_v61  ;;  %v2837_v44 = vpop.f32.mrb[80].mxu1  ;;  %v4769_v29 = vmin.f32 %v4142_v12, %v4143_v60  ;;  %v4156_v2 = vadd.f32 %v3900_v14, %v7010_v25  ;;  %v3661_v10 = vmul.f32 2.0, %v2678_v17 }
 0x3e5   :  { %v3662_v47 = vmul.f32 2.0, %v2837_v44  ;;  %v2839_v58 = vpop.f32.mrb[81].mxu1  ;;  %4789 = vmin.xlane.f32.xlu0 %v4768_v43  ;;  %4646 = vmin.xlane.f32.xlu1 %v4624_v26  ;;  %v4157_v5 = vadd.f32 %v3901_v62, %v7010_v25  ;;  %v4158_v16 = vadd.f32 %v3902_v42, %v7010_v25  ;;  %v3916_v41 = vsub.f32 %v6829_v57, %v3660_v32 }
 0x3e6   :  { %v3663_v31 = vmul.f32 2.0, %v2839_v58  ;;  %v4159_v63 = vadd.f32 %v3903_v40, %v7010_v25  ;;  %v7271_v15 = vand.u32 127, %v4360_v11  ;;  %v3917_v48 = vsub.f32 %v7039_v1, %v3661_v10  ;;  %v2682_v13 = vpop.f32.mrb[82].mxu0 }
 0x3e7   :  { %v3918_v33 = vsub.f32 %v6831_v21, %v3662_v47  ;;  %v4625_v30 = vmin.f32 %v4156_v2, %v4157_v5  ;;  %v7275_v34 = vshrl.u32 %v4360_v11, 7  ;;  %v3676_v52 = vmul.f32 2.0, %v2682_v13  ;;  %v2684_v38 = vpop.f32.mrb[83].mxu0 }
 0x3e8   :  { %v3919_v43 = vsub.f32 %v7048_v22, %v3663_v31  ;;  %v2843_v8 = vpop.f32.mrb[82].mxu1  ;;  %v4770_v35 = vmin.f32 %v4158_v16, %v4159_v63  ;;  %v4172_v54 = vadd.f32 %v3916_v41, %v7032_v28  ;;  %v3677_v14 = vmul.f32 2.0, %v2684_v38 }
 0x3e9   :  { %v3678_v12 = vmul.f32 2.0, %v2843_v8  ;;  %v2845_v61 = vpop.f32.mrb[83].mxu1  ;;  %4791 = vmin.xlane.f32.xlu0 %v4769_v29  ;;  %4648 = vmin.xlane.f32.xlu1 %v4625_v30  ;;  %v4173_v60 = vadd.f32 %v3917_v48, %v7032_v28  ;;  %v4174_v42 = vadd.f32 %v3918_v33, %v7032_v28  ;;  %v3932_v11 = vsub.f32 %v6829_v57, %v3676_v52 }
 0x3ea   :  { %v3679_v62 = vmul.f32 2.0, %v2845_v61  ;;  %v4175_v46 = vadd.f32 %v3919_v43, %v7032_v28  ;;  %v4366_v26 = vadd.s32 4294967288, %v7271_v15  ;;  %v3933_v32 = vsub.f32 %v7039_v1, %v3677_v14  ;;  %v2688_v44 = vpop.f32.mrb[84].mxu0 }
 0x3eb   :  { %v3934_v40 = vsub.f32 %v6831_v21, %v3678_v12  ;;  %v4626_v17 = vmin.f32 %v4172_v54, %v4173_v60  ;;  %v7288_v29 = vsub.s32 %v7271_v15, %v7275_v34  ;;  %v3692_v47 = vmul.f32 2.0, %v2688_v44  ;;  %v2690_v58 = vpop.f32.mrb[85].mxu0 }
 0x3ec   :  { %v3935_v2 = vsub.f32 %v7048_v22, %v3679_v62  ;;  %v2849_v10 = vpop.f32.mrb[84].mxu1  ;;  %v4771_v5 = vmin.f32 %v4174_v42, %v4175_v46  ;;  %v4188_v16 = vadd.f32 %v3932_v11, %v7059_v36  ;;  %v3693_v31 = vmul.f32 2.0, %v2690_v58 }
 0x3ed   :  { %8267 = vst [vmem:[#allocation16_spill] sm:$0xff] %v7288_v29  ;;  %v3694_v41 = vmul.f32 2.0, %v2849_v10  ;;  %v2851_v63 = vpop.f32.mrb[85].mxu1  ;;  %4793 = vmin.xlane.f32.xlu0 %v4770_v35  ;;  %4650 = vmin.xlane.f32.xlu1 %v4626_v17  ;;  %v4189_v33 = vadd.f32 %v3933_v32, %v7059_v36  ;;  %v4190_v48 = vadd.f32 %v3934_v40, %v7059_v36  ;;  %v4373_v35 = vadd.s32 4294967280, %v7271_v15 }
 0x3ee   :  { %v3948_v13 = vsub.f32 %v6829_v57, %v3692_v47  ;;  %v3695_v30 = vmul.f32 2.0, %v2851_v63  ;;  %v4191_v43 = vadd.f32 %v3935_v2, %v7059_v36  ;;  %v7297_v52 = vsub.s32 %v4366_v26, %v7275_v34  ;;  %v2694_v54 = vpop.f32.mrb[86].mxu0 }
 0x3ef   :  { %v3950_v8 = vsub.f32 %v6831_v21, %v3694_v41  ;;  %v3949_v38 = vsub.f32 %v7039_v1, %v3693_v31  ;;  %v4627_v12 = vmin.f32 %v4188_v16, %v4189_v33  ;;  %v3708_v61 = vmul.f32 2.0, %v2694_v54  ;;  %v2696_v42 = vpop.f32.mrb[87].mxu0 }
 0x3f0   :  { %8268 = vst [vmem:[#allocation17_spill] sm:$0xff] %v7297_v52  ;;  %v3951_v14 = vsub.f32 %v7048_v22, %v3695_v30  ;;  %v2855_v60 = vpop.f32.mrb[86].mxu1  ;;  %v4772_v11 = vmin.f32 %v4190_v48, %v4191_v43  ;;  %v4204_v62 = vadd.f32 %v3948_v13, %v7086_v23  ;;  %v3709_v40 = vmul.f32 2.0, %v2696_v42 }
 0x3f1   :  { %v3710_v46 = vmul.f32 2.0, %v2855_v60  ;;  %v2857_v26 = vpop.f32.mrb[87].mxu1  ;;  %4795 = vmin.xlane.f32.xlu0 %v4771_v5  ;;  %4652 = vmin.xlane.f32.xlu1 %v4627_v12  ;;  %v4205_v32 = vadd.f32 %v3949_v38, %v7086_v23  ;;  %v4206_v44 = vadd.f32 %v3950_v8, %v7086_v23  ;;  %v3964_v17 = vsub.f32 %v6829_v57, %v3708_v61 }
 0x3f2   :  { %v3711_v2 = vmul.f32 2.0, %v2857_v26  ;;  %v4207_v47 = vadd.f32 %v3951_v14, %v7086_v23  ;;  %v4380_v10 = vadd.s32 4294967272, %v7271_v15  ;;  %v3965_v16 = vsub.f32 %v7039_v1, %v3709_v40  ;;  %v2700_v41 = vpop.f32.mrb[88].mxu0 }
 0x3f3   :  { %v3966_v58 = vsub.f32 %v6831_v21, %v3710_v46  ;;  %v4628_v31 = vmin.f32 %v4204_v62, %v4205_v32  ;;  %v7312_v5 = vsub.s32 %v4373_v35, %v7275_v34  ;;  %v3724_v33 = vmul.f32 2.0, %v2700_v41  ;;  %v2702_v13 = vpop.f32.mrb[89].mxu0 }
 0x3f4   :  { %v3967_v63 = vsub.f32 %v7048_v22, %v3711_v2  ;;  %v2861_v48 = vpop.f32.mrb[88].mxu1  ;;  %v4773_v30 = vmin.f32 %v4206_v44, %v4207_v47  ;;  %v4220_v43 = vadd.f32 %v3964_v17, %v7102_v53  ;;  %v3725_v38 = vmul.f32 2.0, %v2702_v13 }
 0x3f5   :  { %8269 = vst [vmem:[#allocation18_spill] sm:$0xff] %v7312_v5  ;;  %v3726_v8 = vmul.f32 2.0, %v2861_v48  ;;  %v2863_v54 = vpop.f32.mrb[89].mxu1  ;;  %4797 = vmin.xlane.f32.xlu0 %v4772_v11  ;;  %4654 = vmin.xlane.f32.xlu1 %v4628_v31  ;;  %v4221_v12 = vadd.f32 %v3965_v16, %v7102_v53  ;;  %v4222_v14 = vadd.f32 %v3966_v58, %v7102_v53  ;;  %v4387_v11 = vadd.s32 4294967264, %v7271_v15 }
 0x3f6   :  { %v3980_v35 = vsub.f32 %v6829_v57, %v3724_v33  ;;  %v3727_v61 = vmul.f32 2.0, %v2863_v54  ;;  %v4223_v60 = vadd.f32 %v3967_v63, %v7102_v53  ;;  %v7321_v42 = vsub.s32 %v4380_v10, %v7275_v34  ;;  %v2706_v40 = vpop.f32.mrb[90].mxu0 }
 0x3f7   :  { %v3982_v62 = vsub.f32 %v6831_v21, %v3726_v8  ;;  %v3981_v46 = vsub.f32 %v7039_v1, %v3725_v38  ;;  %v4629_v26 = vmin.f32 %v4220_v43, %v4221_v12  ;;  %v3740_v44 = vmul.f32 2.0, %v2706_v40  ;;  %v2708_v2 = vpop.f32.mrb[91].mxu0 }
 0x3f8   :  { %8270 = vst [vmem:[#allocation19_spill] sm:$0xff] %v7321_v42  ;;  %v3983_v32 = vsub.f32 %v7048_v22, %v3727_v61  ;;  %v2867_v17 = vpop.f32.mrb[90].mxu1  ;;  %v4774_v47 = vmin.f32 %v4222_v14, %v4223_v60  ;;  %v4236_v58 = vadd.f32 %v3980_v35, %v7114_v6  ;;  %v3741_v41 = vmul.f32 2.0, %v2708_v2 }
 0x3f9   :  { %v3742_v16 = vmul.f32 2.0, %v2867_v17  ;;  %v2869_v10 = vpop.f32.mrb[91].mxu1  ;;  %4799 = vmin.xlane.f32.xlu0 %v4773_v30  ;;  %4656 = vmin.xlane.f32.xlu1 %v4629_v26  ;;  %v4237_v31 = vadd.f32 %v3981_v46, %v7114_v6  ;;  %v4238_v63 = vadd.f32 %v3982_v62, %v7114_v6  ;;  %v3996_v33 = vsub.f32 %v6829_v57, %v3740_v44 }
 0x3fa   :  { %v3743_v48 = vmul.f32 2.0, %v2869_v10  ;;  %v4239_v13 = vadd.f32 %v3983_v32, %v7114_v6  ;;  %v4394_v43 = vadd.s32 4294967256, %v7271_v15  ;;  %v3997_v38 = vsub.f32 %v7039_v1, %v3741_v41  ;;  %v2712_v54 = vpop.f32.mrb[92].mxu0 }
 0x3fb   :  { %v3998_v8 = vsub.f32 %v6831_v21, %v3742_v16  ;;  %v4630_v12 = vmin.f32 %v4236_v58, %v4237_v31  ;;  %v7336_v30 = vsub.s32 %v4387_v11, %v7275_v34  ;;  %v3756_v35 = vmul.f32 2.0, %v2712_v54  ;;  %v2714_v60 = vpop.f32.mrb[93].mxu0 }
 0x3fc   :  { %v3999_v14 = vsub.f32 %v7048_v22, %v3743_v48  ;;  %v2873_v61 = vpop.f32.mrb[92].mxu1  ;;  %v4775_v62 = vmin.f32 %v4238_v63, %v4239_v13  ;;  %v4252_v46 = vadd.f32 %v3996_v33, %v7128_v9  ;;  %v3757_v26 = vmul.f32 2.0, %v2714_v60 }
 0x3fd   :  { %v3758_v40 = vmul.f32 2.0, %v2873_v61  ;;  %v2875_v32 = vpop.f32.mrb[93].mxu1  ;;  %4801 = vmin.xlane.f32.xlu0 %v4774_v47  ;;  %4658 = vmin.xlane.f32.xlu1 %v4630_v12  ;;  %v4253_v44 = vadd.f32 %v3997_v38, %v7128_v9  ;;  %v4254_v17 = vadd.f32 %v3998_v8, %v7128_v9  ;;  %v4012_v11 = vsub.f32 %v6829_v57, %v3756_v35 }
 0x3fe   :  { %v3759_v2 = vmul.f32 2.0, %v2875_v32  ;;  %v4255_v58 = vadd.f32 %v3999_v14, %v7128_v9  ;;  %v7345_v16 = vsub.s32 %v4394_v43, %v7275_v34  ;;  %v4013_v10 = vsub.f32 %v7039_v1, %v3757_v26  ;;  %v2718_v31 = vpop.f32.mrb[94].mxu0 }
 0x3ff   :  { %v4014_v41 = vsub.f32 %v6831_v21, %v3758_v40  ;;  %v4631_v63 = vmin.f32 %v4252_v46, %v4253_v44  ;;  %v4401_v47 = vadd.s32 4294967248, %v7271_v15  ;;  %v3772_v48 = vmul.f32 2.0, %v2718_v31  ;;  %v2720_v8 = vpop.f32.mrb[95].mxu0 }
 0x400   :  { %8271 = vst [vmem:[#allocation20_spill] sm:$0xff] %v7345_v16  ;;  %v4015_v33 = vsub.f32 %v7048_v22, %v3759_v2  ;;  %v2879_v13 = vpop.f32.mrb[94].mxu1  ;;  %v4776_v38 = vmin.f32 %v4254_v17, %v4255_v58  ;;  %v4268_v54 = vadd.f32 %v4012_v11, %v7145_v19  ;;  %v3773_v14 = vmul.f32 2.0, %v2720_v8 }
 0x401   :  { %v3774_v12 = vmul.f32 2.0, %v2879_v13  ;;  %v2881_v43 = vpop.f32.mrb[95].mxu1  ;;  %4803 = vmin.xlane.f32.xlu0 %v4775_v62  ;;  %4660 = vmin.xlane.f32.xlu1 %v4631_v63  ;;  %v4269_v35 = vadd.f32 %v4013_v10, %v7145_v19  ;;  %v4270_v61 = vadd.f32 %v4014_v41, %v7145_v19  ;;  %v4028_v60 = vsub.f32 %v6829_v57, %v3772_v48 }
 0x402   :  { %v3775_v46 = vmul.f32 2.0, %v2881_v43  ;;  %v4271_v40 = vadd.f32 %v4015_v33, %v7145_v19  ;;  %v4408_v26 = vadd.s32 4294967240, %v7271_v15  ;;  %v4029_v44 = vsub.f32 %v7039_v1, %v3773_v14  ;;  %v2950_v17 = vpop.f32.mrb[96].mxu0 }
 0x403   :  { %v4030_v32 = vsub.f32 %v6831_v21, %v3774_v12  ;;  %v4632_v11 = vmin.f32 %v4268_v54, %v4269_v35  ;;  %v7360_v62 = vsub.s32 %v4401_v47, %v7275_v34  ;;  %v3536_v58 = vmul.f32 2.0, %v2950_v17  ;;  %v2952_v10 = vpop.f32.mrb[97].mxu0 }
 0x404   :  { %v4031_v2 = vsub.f32 %v7048_v22, %v3775_v46  ;;  %v3111_v41 = vpop.f32.mrb[96].mxu1  ;;  %v4777_v57 = vmin.f32 %v4270_v61, %v4271_v40  ;;  %v4284_v31 = vadd.f32 %v4028_v60, %v7164_v45  ;;  %v3537_v33 = vmul.f32 2.0, %v2952_v10 }
 0x405   :  { %8272 = vst [vmem:[#allocation21_spill] sm:$0xff] %v7360_v62  ;;  %v3538_v63 = vmul.f32 2.0, %v3111_v41  ;;  %v3113_v48 = vpop.f32.mrb[97].mxu1  ;;  %4805 = vmin.xlane.f32.xlu0 %v4776_v38  ;;  %4662 = vmin.xlane.f32.xlu1 %v4632_v11  ;;  %v4285_v21 = vadd.f32 %v4029_v44, %v7164_v45  ;;  %v4286_v1 = vadd.f32 %v4030_v32, %v7164_v45  ;;  %v4415_v38 = vadd.s32 4294967232, %v7271_v15 }
 0x406   :  { %v3792_v47 = vsub.f32 %v6911_v18, %v3536_v58  ;;  %v3539_v13 = vmul.f32 2.0, %v3113_v48  ;;  %v4287_v22 = vadd.f32 %v4031_v2, %v7164_v45  ;;  %v7369_v8 = vsub.s32 %v4408_v26, %v7275_v34  ;;  %v2956_v14 = vpop.f32.mrb[98].mxu0 }
 0x407   :  { %v3794_v54 = vsub.f32 %v6952_v56, %v3538_v63  ;;  %v3793_v12 = vsub.f32 %v7139_v7, %v3537_v33  ;;  %v4633_v43 = vmin.f32 %v4284_v31, %v4285_v21  ;;  %v3552_v61 = vmul.f32 2.0, %v2956_v14  ;;  %v2958_v46 = vpop.f32.mrb[99].mxu0 }
 0x408   :  { %8273 = vst [vmem:[#allocation22_spill] sm:$0xff] %v7369_v8  ;;  %v3795_v35 = vsub.f32 %v7174_v39, %v3539_v13  ;;  %v3117_v60 = vpop.f32.mrb[98].mxu1  ;;  %v4778_v40 = vmin.f32 %v4286_v1, %v4287_v22  ;;  %v4048_v32 = vadd.f32 %v3792_v47, %v6843_v49  ;;  %v3553_v17 = vmul.f32 2.0, %v2958_v46 }
 0x409   :  { %v3554_v44 = vmul.f32 2.0, %v3117_v60  ;;  %v3119_v26 = vpop.f32.mrb[99].mxu1  ;;  %4807 = vmin.xlane.f32.xlu0 %v4777_v57  ;;  %4664 = vmin.xlane.f32.xlu1 %v4633_v43  ;;  %v4049_v11 = vadd.f32 %v3793_v12, %v6843_v49  ;;  %v4050_v2 = vadd.f32 %v3794_v54, %v6843_v49  ;;  %v3808_v58 = vsub.f32 %v6911_v18, %v3552_v61 }
 0x40a   :  { %v3555_v41 = vmul.f32 2.0, %v3119_v26  ;;  %v4051_v10 = vadd.f32 %v3795_v35, %v6843_v49  ;;  %v4422_v31 = vadd.s32 4294967224, %v7271_v15  ;;  %v3809_v33 = vsub.f32 %v7139_v7, %v3553_v17  ;;  %v2962_v48 = vpop.f32.mrb[100].mxu0 }
 0x40b   :  { %v3810_v63 = vsub.f32 %v6952_v56, %v3554_v44  ;;  %v4908_v21 = vmin.f32 %v4048_v32, %v4049_v11  ;;  %v7384_v57 = vsub.s32 %v4415_v38, %v7275_v34  ;;  %v3568_v47 = vmul.f32 2.0, %v2962_v48  ;;  %v2964_v22 = vpop.f32.mrb[101].mxu0 }
 0x40c   :  { %v3811_v1 = vsub.f32 %v7174_v39, %v3555_v41  ;;  %v3123_v13 = vpop.f32.mrb[100].mxu1  ;;  %v4064_v54 = vadd.f32 %v3808_v58, %v6868_v0  ;;  %v5053_v12 = vmin.f32 %v4050_v2, %v4051_v10  ;;  %v3569_v43 = vmul.f32 2.0, %v2964_v22 }
 0x40d   :  { %v3570_v14 = vmul.f32 2.0, %v3123_v13  ;;  %v3125_v35 = vpop.f32.mrb[101].mxu1  ;;  %4809 = vmin.xlane.f32.xlu0 %v4778_v40  ;;  %4924 = vmin.xlane.f32.xlu1 %v4908_v21  ;;  %v4065_v61 = vadd.f32 %v3809_v33, %v6868_v0  ;;  %v4066_v60 = vadd.f32 %v3810_v63, %v6868_v0  ;;  %v3824_v38 = vsub.f32 %v6911_v18, %v3568_v47 }
 0x40e   :  { %v3571_v46 = vmul.f32 2.0, %v3125_v35  ;;  %v4067_v32 = vadd.f32 %v3811_v1, %v6868_v0  ;;  %v7393_v44 = vsub.s32 %v4422_v31, %v7275_v34  ;;  %v3825_v26 = vsub.f32 %v7139_v7, %v3569_v43  ;;  %v2968_v11 = vpop.f32.mrb[102].mxu0 }
 0x40f   :  { %v3826_v17 = vsub.f32 %v6952_v56, %v3570_v14  ;;  %v4909_v2 = vmin.f32 %v4064_v54, %v4065_v61  ;;  %v4429_v40 = vadd.s32 4294967216, %v7271_v15  ;;  %v3584_v41 = vmul.f32 2.0, %v2968_v11  ;;  %v2970_v63 = vpop.f32.mrb[103].mxu0 }
 0x410   :  { %v3827_v58 = vsub.f32 %v7174_v39, %v3571_v46  ;;  %v3129_v10 = vpop.f32.mrb[102].mxu1  ;;  %v5054_v33 = vmin.f32 %v4066_v60, %v4067_v32  ;;  %v4080_v48 = vadd.f32 %v3824_v38, %v6882_v37  ;;  %v3585_v1 = vmul.f32 2.0, %v2970_v63 }
 0x411   :  { %v3586_v21 = vmul.f32 2.0, %v3129_v10  ;;  %v3131_v31 = vpop.f32.mrb[103].mxu1  ;;  %4926 = vmin.xlane.f32.xlu0 %v4909_v2  ;;  %5069 = vmin.xlane.f32.xlu1 %v5053_v12  ;;  %v4081_v47 = vadd.f32 %v3825_v26, %v6882_v37  ;;  %v4082_v13 = vadd.f32 %v3826_v17, %v6882_v37  ;;  %v3840_v22 = vsub.f32 %v6911_v18, %v3584_v41 }
 0x412   :  { %v3587_v54 = vmul.f32 2.0, %v3131_v31  ;;  %v4083_v14 = vadd.f32 %v3827_v58, %v6882_v37  ;;  %v4436_v43 = vadd.s32 4294967208, %v7271_v15  ;;  %v3841_v61 = vsub.f32 %v7139_v7, %v3585_v1  ;;  %v2974_v60 = vpop.f32.mrb[104].mxu0 }
 0x413   :  { %v3842_v35 = vsub.f32 %v6952_v56, %v3586_v21  ;;  %v4910_v38 = vmin.f32 %v4080_v48, %v4081_v47  ;;  %v7408_v46 = vsub.s32 %v4429_v40, %v7275_v34  ;;  %v3600_v32 = vmul.f32 2.0, %v2974_v60  ;;  %v2976_v26 = vpop.f32.mrb[105].mxu0 }
 0x414   :  { %v3843_v12 = vsub.f32 %v7174_v39, %v3587_v54  ;;  %v3135_v17 = vpop.f32.mrb[104].mxu1  ;;  %v5055_v11 = vmin.f32 %v4082_v13, %v4083_v14  ;;  %v4096_v2 = vadd.f32 %v3840_v22, %v6904_v59  ;;  %v3601_v41 = vmul.f32 2.0, %v2976_v26 }
 0x415   :  { %v3602_v58 = vmul.f32 2.0, %v3135_v17  ;;  %v3137_v10 = vpop.f32.mrb[105].mxu1  ;;  %5071 = vmin.xlane.f32.xlu0 %v5054_v33  ;;  %4928 = vmin.xlane.f32.xlu1 %v4910_v38  ;;  %v4097_v63 = vadd.f32 %v3841_v61, %v6904_v59  ;;  %v4098_v48 = vadd.f32 %v3842_v35, %v6904_v59  ;;  %v3856_v40 = vsub.f32 %v6911_v18, %v3600_v32 }
 0x416   :  { %v3603_v21 = vmul.f32 2.0, %v3137_v10  ;;  %v4099_v1 = vadd.f32 %v3843_v12, %v6904_v59  ;;  %v7417_v31 = vsub.s32 %v4436_v43, %v7275_v34  ;;  %v3857_v13 = vsub.f32 %v7139_v7, %v3601_v41  ;;  %v2980_v22 = vpop.f32.mrb[106].mxu0 }
 0x417   :  { %v3858_v47 = vsub.f32 %v6952_v56, %v3602_v58  ;;  %v4911_v54 = vmin.f32 %v4096_v2, %v4097_v63  ;;  %v4443_v33 = vadd.s32 4294967200, %v7271_v15  ;;  %v3616_v61 = vmul.f32 2.0, %v2980_v22  ;;  %v2982_v60 = vpop.f32.mrb[107].mxu0 }
 0x418   :  { %v3859_v14 = vsub.f32 %v7174_v39, %v3603_v21  ;;  %v3141_v35 = vpop.f32.mrb[106].mxu1  ;;  %v5056_v38 = vmin.f32 %v4098_v48, %v4099_v1  ;;  %v4112_v32 = vadd.f32 %v3856_v40, %v6948_v55  ;;  %v3617_v17 = vmul.f32 2.0, %v2982_v60 }
 0x419   :  { %v3618_v12 = vmul.f32 2.0, %v3141_v35  ;;  %v3143_v43 = vpop.f32.mrb[107].mxu1  ;;  %5073 = vmin.xlane.f32.xlu0 %v5055_v11  ;;  %4930 = vmin.xlane.f32.xlu1 %v4911_v54  ;;  %v7424_v26 = vpop.xlane.xlu1 %4312  ;;  %v4113_v58 = vadd.f32 %v3857_v13, %v6948_v55  ;;  %v4114_v2 = vadd.f32 %v3858_v47, %v6948_v55  ;;  %v3872_v41 = vsub.f32 %v6911_v18, %v3616_v61 }
 0x41a   :  { %v3619_v10 = vmul.f32 2.0, %v3143_v43  ;;  %v4115_v63 = vadd.f32 %v3859_v14, %v6948_v55  ;;  %v4450_v48 = vadd.s32 4294967192, %v7271_v15  ;;  %v3873_v21 = vsub.f32 %v7139_v7, %v3617_v17  ;;  %v2986_v1 = vpop.f32.mrb[108].mxu0 }
 0x41b   :  { %v3874_v40 = vsub.f32 %v6952_v56, %v3618_v12  ;;  %v4912_v11 = vmin.f32 %v4112_v32, %v4113_v58  ;;  %v4457_v22 = vadd.s32 4294967184, %v7271_v15  ;;  %v3632_v13 = vmul.f32 2.0, %v2986_v1  ;;  %v2988_v47 = vpop.f32.mrb[109].mxu0 }
 0x41c   :  { %v3875_v54 = vsub.f32 %v7174_v39, %v3619_v10  ;;  %v3147_v35 = vpop.f32.mrb[108].mxu1  ;;  %v5057_v61 = vmin.f32 %v4114_v2, %v4115_v63  ;;  %v4128_v60 = vadd.f32 %v3872_v41, %v6972_v3  ;;  %v3633_v43 = vmul.f32 2.0, %v2988_v47 }
 0x41d   :  { %v3634_v14 = vmul.f32 2.0, %v3147_v35  ;;  %v3149_v4 = vpop.f32.mrb[109].mxu1  ;;  %5075 = vmin.xlane.f32.xlu0 %v5056_v38  ;;  %4932 = vmin.xlane.f32.xlu1 %v4912_v11  ;;  %v4315_v12 = vpop.xlane.xlu0 %4314  ;;  %v4129_v17 = vadd.f32 %v3873_v21, %v6972_v3  ;;  %v4130_v32 = vadd.f32 %v3874_v40, %v6972_v3  ;;  %v3888_v58 = vsub.f32 %v6911_v18, %v3632_v13 }
 0x41e   :  { %v3635_v10 = vmul.f32 2.0, %v3149_v4  ;;  %v4490_v1 = vpop.xlane.xlu1 %4489  ;;  %v4131_v55 = vadd.f32 %v3875_v54, %v6972_v3  ;;  %v7441_v2 = vsub.s32 %v4443_v33, %v7275_v34  ;;  %v3889_v38 = vsub.f32 %v7139_v7, %v3633_v43  ;;  %v2992_v63 = vpop.f32.mrb[110].mxu0 }
 0x41f   :  { %v3890_v41 = vsub.f32 %v6952_v56, %v3634_v14  ;;  %v4913_v11 = vmin.f32 %v4128_v60, %v4129_v17  ;;  %v7446_v21 = vsub.s32 %v4450_v48, %v7275_v34  ;;  %v3648_v13 = vmul.f32 2.0, %v2992_v63  ;;  %v2994_v35 = vpop.f32.mrb[111].mxu0 }
 0x420   :  { %v3891_v40 = vsub.f32 %v7174_v39, %v3635_v10  ;;  %v3153_v4 = vpop.f32.mrb[110].mxu1  ;;  %v5058_v47 = vmin.f32 %v4130_v32, %v4131_v55  ;;  %v7450_v54 = vsub.s32 %v4457_v22, %v7275_v34  ;;  %v7453_v14 = vmul.f32 2.0, %v2994_v35 }
 0x421   :  { %v4146_v33 = vadd.f32 %v3890_v41, %v6991_v20  ;;  %v3650_v3 = vmul.f32 2.0, %v3153_v4  ;;  %v3155_v43 = vpop.f32.mrb[111].mxu1  ;;  %5077 = vmin.xlane.f32.xlu0 %v5057_v61  ;;  %4934 = vmin.xlane.f32.xlu1 %v4913_v11  ;;  %v4492_v60 = vpop.xlane.xlu0 %4491  ;;  %v4464_v48 = vadd.s32 4294967176, %v7271_v15  ;;  %v3904_v10 = vsub.f32 %v6911_v18, %v3648_v13 }
 0x422   :  { %8274 = vst [vmem:[#allocation23_spill] sm:$0xff] %v7450_v54  ;;  %v4147_v17 = vadd.f32 %v3891_v40, %v6991_v20  ;;  %v3651_v63 = vmul.f32 2.0, %v3155_v43  ;;  %v4317_v55 = vpop.xlane.xlu1 %4316  ;;  %v4144_v22 = vadd.f32 %v3888_v58, %v6991_v20  ;;  %v4370_v32 = vrot.slane %v4315_v12, %v7297_v52  ;;  %v2998_v61 = vpop.f32.mrb[112].mxu0 }
 0x423   :  { %v3906_v41 = vsub.f32 %v6952_v56, %v3650_v3  ;;  %v3905_v4 = vsub.f32 %v7139_v7, %v7453_v14  ;;  %v4145_v11 = vadd.f32 %v3889_v38, %v6991_v20  ;;  %v4544_v40 = vrot.slane %v4492_v60, %v7297_v52  ;;  %v3000_v43 = vpop.f32.mrb[113].mxu0 }
 0x424   :  { %v3907_v15 = vsub.f32 %v7174_v39, %v3651_v63  ;;  %v3664_v13 = vmul.f32 2.0, %v2998_v61  ;;  %v3159_v35 = vpop.f32.mrb[112].mxu1  ;;  %v5059_v59 = vmin.f32 %v4146_v33, %v4147_v17  ;;  %v4365_v12 = vrot.slane %v7424_v26, %v7288_v29 }
 0x425   :  { %v4377_v3 = vrot.slane %v4317_v55, %v7312_v5  ;;  %v3666_v58 = vmul.f32 2.0, %v3159_v35  ;;  %v3665_v54 = vmul.f32 2.0, %v3000_v43  ;;  %v3161_v14 = vpop.f32.mrb[113].mxu1  ;;  %5079 = vmin.xlane.f32.xlu0 %v5058_v47  ;;  %v4494_v37 = vpop.xlane.xlu0 %4493  ;;  %v4540_v38 = vrot.slane %v4490_v1, %v7288_v29 }
 0x426   :  { %v3920_v63 = vsub.f32 %v6911_v18, %v3664_v13  ;;  %v3667_v20 = vmul.f32 2.0, %v3161_v14  ;;  %v4914_v60 = vmin.f32 %v4144_v22, %v4145_v11  ;;  %v4319_v61 = vpop.xlane.xlu1 %4318  ;;  %v4372_v52 = vsel %vm4371_vm4, %v4370_v32, %v4365_v12  ;;  %v3004_v17 = vpop.f32.mrb[114].mxu0 }
 0x427   :  { %v3922_v33 = vsub.f32 %v6952_v56, %v3666_v58  ;;  %v3921_v26 = vsub.f32 %v7139_v7, %v3665_v54  ;;  %v7475_v55 = vsub.s32 %v4464_v48, %v7275_v34  ;;  %v4162_v47 = vadd.f32 %v3906_v41, %v7010_v25  ;;  %v3006_v35 = vpop.f32.mrb[115].mxu0 }
 0x428   :  { %v4545_v1 = vsel %vm4371_vm4, %v4544_v40, %v4540_v38  ;;  %v3923_v13 = vsub.f32 %v7174_v39, %v3667_v20  ;;  %4936 = vmin.xlane.f32.xlu1 %v4914_v60  ;;  %v3680_v22 = vmul.f32 2.0, %v3004_v17  ;;  %v3165_v11 = vpop.f32.mrb[114].mxu1  ;;  %v4163_v32 = vadd.f32 %v3907_v15, %v7010_v25 }
 0x429   :  { %8275 = vst [vmem:[#allocation24_spill] sm:$0xff] %v7475_v55  ;;  %v4379_v43 = vsel %vm4378_vm5, %v4377_v3, %v4372_v52  ;;  %v4549_v54 = vrot.slane %v4494_v37, %v7312_v5  ;;  %v3167_v12 = vpop.f32.mrb[115].mxu1  ;;  %5081 = vmin.xlane.f32.xlu0 %v5059_v59  ;;  %v4160_v34 = vadd.f32 %v3904_v10, %v7010_v25  ;;  %v4496_v48 = vpop.xlane.xlu0 %4495  ;;  %v3682_v20 = vmul.f32 2.0, %v3165_v11 }
 0x42a   :  { %v4384_v41 = vrot.slane %v4319_v61, %v7321_v42  ;;  %v3936_v40 = vsub.f32 %v6911_v18, %v3680_v22  ;;  %v3681_v58 = vmul.f32 2.0, %v3006_v35  ;;  %v4321_v14 = vpop.xlane.xlu1 %4320  ;;  %v4176_v38 = vadd.f32 %v3920_v63, %v7032_v28  ;;  %v3010_v37 = vpop.f32.mrb[116].mxu0 }
 0x42b   :  { %v4177_v15 = vadd.f32 %v3921_v26, %v7032_v28  ;;  %v3683_v60 = vmul.f32 2.0, %v3167_v12  ;;  %v4161_v52 = vadd.f32 %v3905_v4, %v7010_v25  ;;  %v3938_v59 = vsub.f32 %v6952_v56, %v3682_v20  ;;  %v3012_v22 = vpop.f32.mrb[117].mxu0 }
 0x42c   :  { %v3937_v10 = vsub.f32 %v7139_v7, %v3681_v58  ;;  %v4554_v3 = vrot.slane %v4496_v48, %v7321_v42  ;;  %v3696_v61 = vmul.f32 2.0, %v3010_v37  ;;  %v3171_v17 = vpop.f32.mrb[116].mxu1  ;;  %v4178_v11 = vadd.f32 %v3922_v33, %v7032_v28 }
 0x42d   :  { %v4550_v35 = vsel %vm4378_vm5, %v4549_v54, %v4545_v1  ;;  %v3939_v63 = vsub.f32 %v7174_v39, %v3683_v60  ;;  %v4915_v26 = vmin.f32 %v4160_v34, %v4161_v52  ;;  %v3173_v12 = vpop.f32.mrb[117].mxu1  ;;  %v4498_v5 = vpop.xlane.xlu0 %4497  ;;  %v4386_v4 = vsel %vm4385_vm6, %v4384_v41, %v4379_v43 }
 0x42e   :  { %v4391_v20 = vrot.slane %v4321_v14, %v7336_v30  ;;  %v3952_v58 = vsub.f32 %v6911_v18, %v3696_v61  ;;  %v3698_v25 = vmul.f32 2.0, %v3171_v17  ;;  %v7498_v48 = vpop.xlane.xlu1 %4322  ;;  %v4179_v37 = vadd.f32 %v3923_v13, %v7032_v28  ;;  %v3016_v54 = vpop.f32.mrb[118].mxu0 }
 0x42f   :  { %4938 = vmin.xlane.f32.xlu1 %v4915_v26  ;;  %v3697_v33 = vmul.f32 2.0, %v3012_v22  ;;  %v3699_v42 = vmul.f32 2.0, %v3173_v12  ;;  %v5060_v1 = vmin.f32 %v4162_v47, %v4163_v32  ;;  %v4192_v34 = vadd.f32 %v3936_v40, %v7059_v36  ;;  %v3018_v52 = vpop.f32.mrb[119].mxu0 }
 0x430   :  { %v4555_v60 = vsel %vm4385_vm6, %v4554_v3, %v4550_v35  ;;  %v3954_v43 = vsub.f32 %v6952_v56, %v3698_v25  ;;  %v4916_v41 = vmin.f32 %v4176_v38, %v4177_v15  ;;  %v3177_v14 = vpop.f32.mrb[118].mxu1  ;;  %v4193_v61 = vadd.f32 %v3937_v10, %v7059_v36 }
 0x431   :  { %v3953_v13 = vsub.f32 %v7139_v7, %v3697_v33  ;;  %v3955_v17 = vsub.f32 %v7174_v39, %v3699_v42  ;;  %5083 = vmin.xlane.f32.xlu0 %v5060_v1  ;;  %v3712_v47 = vmul.f32 2.0, %v3016_v54  ;;  %v3179_v32 = vpop.f32.mrb[119].mxu1  ;;  %v4500_v22 = vpop.xlane.xlu0 %4499  ;;  %v4393_v40 = vsel %vm4392_vm7, %v4391_v20, %v4386_v4 }
 0x432   :  { %v4559_v3 = vrot.slane %v4498_v5, %v7336_v30  ;;  %v3714_v35 = vmul.f32 2.0, %v3177_v14  ;;  %v3713_v25 = vmul.f32 2.0, %v3018_v52  ;;  %v4325_v38 = vpop.xlane.xlu1 %4324  ;;  %v4194_v15 = vadd.f32 %v3938_v59, %v7059_v36  ;;  %v3022_v12 = vpop.f32.mrb[120].mxu0 }
 0x433   :  { %v4195_v26 = vadd.f32 %v3939_v63, %v7059_v36  ;;  %v4208_v10 = vadd.f32 %v3952_v58, %v7086_v23  ;;  %4940 = vmin.xlane.f32.xlu1 %v4916_v41  ;;  %v3968_v42 = vsub.f32 %v6911_v18, %v3712_v47  ;;  %v3715_v4 = vmul.f32 2.0, %v3179_v32  ;;  %v3024_v54 = vpop.f32.mrb[121].mxu0 }
 0x434   :  { %v3970_v33 = vsub.f32 %v6952_v56, %v3714_v35  ;;  %v3969_v1 = vsub.f32 %v7139_v7, %v3713_v25  ;;  %v5061_v20 = vmin.f32 %v4178_v11, %v4179_v37  ;;  %v3183_v5 = vpop.f32.mrb[120].mxu1  ;;  %v7516_v14 = vadd.f32 %v3954_v43, %v7086_v23 }
 0x435   :  { %v4209_v59 = vadd.f32 %v3953_v13, %v7086_v23  ;;  %v4398_v63 = vrot.slane %v7498_v48, %v7345_v16  ;;  %v4917_v58 = vmin.f32 %v4192_v34, %v4193_v61  ;;  %v3185_v41 = vpop.f32.mrb[121].mxu1  ;;  %v7521_v52 = vpop.xlane.xlu0 %4501  ;;  %v4211_v47 = vadd.f32 %v3955_v17, %v7086_v23 }
 0x436   :  { %v4560_v35 = vsel %vm4392_vm7, %v4559_v3, %v4555_v60  ;;  %v3971_v11 = vsub.f32 %v7174_v39, %v3715_v4  ;;  %5085 = vmin.xlane.f32.xlu0 %v5061_v20  ;;  %v3728_v37 = vmul.f32 2.0, %v3022_v12  ;;  %v7526_v32 = vpop.xlane.xlu1 %4326  ;;  %v4564_v43 = vrot.slane %v4500_v22, %v7345_v16  ;;  %v3028_v61 = vpop.f32.mrb[122].mxu0 }
 0x437   :  { %4942 = vmin.xlane.f32.xlu1 %v4917_v58  ;;  %v4405_v13 = vrot.slane %v4325_v38, %v7360_v62  ;;  %v3730_v48 = vmul.f32 2.0, %v3183_v5  ;;  %v3729_v34 = vmul.f32 2.0, %v3024_v54  ;;  %v4224_v25 = vadd.f32 %v3968_v42, %v7102_v53  ;;  %v3030_v4 = vpop.f32.mrb[123].mxu0 }
 0x438   :  { %v3984_v17 = vsub.f32 %v6911_v18, %v3728_v37  ;;  %v3731_v23 = vmul.f32 2.0, %v3185_v41  ;;  %v5062_v60 = vmin.f32 %v4194_v15, %v4195_v26  ;;  %v3189_v3 = vpop.f32.mrb[122].mxu1  ;;  %v4225_v12 = vadd.f32 %v3969_v1, %v7102_v53 }
 0x439   :  { %v3986_v20 = vsub.f32 %v6952_v56, %v3730_v48  ;;  %v3985_v22 = vsub.f32 %v7139_v7, %v3729_v34  ;;  %v4918_v58 = vmin.f32 %v4208_v10, %v4209_v59  ;;  %v3191_v38 = vpop.f32.mrb[123].mxu1  ;;  %v4504_v5 = vpop.xlane.xlu0 %4503  ;;  %v4400_v54 = vsel %vm4399_vm8, %v4398_v63, %v4393_v40 }
 0x43a   :  { %v4226_v42 = vadd.f32 %v3970_v33, %v7102_v53  ;;  %v3987_v41 = vsub.f32 %v7174_v39, %v3731_v23  ;;  %5087 = vmin.xlane.f32.xlu0 %v5062_v60  ;;  %v3744_v15 = vmul.f32 2.0, %v3028_v61  ;;  %v4329_v26 = vpop.xlane.xlu1 %4328  ;;  %v4227_v37 = vadd.f32 %v3971_v11, %v7102_v53  ;;  %v3034_v59 = vpop.f32.mrb[124].mxu0 }
 0x43b   :  { %v4565_v1 = vsel %vm4399_vm8, %v4564_v43, %v4560_v35  ;;  %v4407_v48 = vsel %vm4406_vm9, %v4405_v13, %v4400_v54  ;;  %4944 = vmin.xlane.f32.xlu1 %v4918_v58  ;;  %v3746_v10 = vmul.f32 2.0, %v3189_v3  ;;  %v4240_v34 = vadd.f32 %v3984_v17, %v7114_v6  ;;  %v3036_v61 = vpop.f32.mrb[125].mxu0 }
 0x43c   :  { %v4569_v40 = vrot.slane %v7521_v52, %v7360_v62  ;;  %v4000_v33 = vsub.f32 %v6911_v18, %v3744_v15  ;;  %v3745_v23 = vmul.f32 2.0, %v3030_v4  ;;  %v3195_v63 = vpop.f32.mrb[124].mxu1  ;;  %v3747_v11 = vmul.f32 2.0, %v3191_v38 }
 0x43d   :  { %v4002_v60 = vsub.f32 %v6952_v56, %v3746_v10  ;;  %v5063_v35 = vmin.f32 %v7516_v14, %v4211_v47  ;;  %v4919_v43 = vmin.f32 %v4224_v25, %v4225_v12  ;;  %v3197_v13 = vpop.f32.mrb[125].mxu1  ;;  %v7547_v58 = vpop.xlane.xlu0 %4505  ;;  %v4242_v3 = vadd.f32 %v3986_v20, %v7114_v6 }
 0x43e   :  { %v4241_v17 = vadd.f32 %v3985_v22, %v7114_v6  ;;  %v4412_v52 = vrot.slane %v7526_v32, %v7369_v8  ;;  %v4001_v4 = vsub.f32 %v7139_v7, %v3745_v23  ;;  %v7554_v54 = vpop.xlane.xlu1 %4330  ;;  %v4003_v38 = vsub.f32 %v7174_v39, %v3747_v11  ;;  %v3040_v12 = vpop.f32.mrb[126].mxu0 }
 0x43f   :  { %5089 = vmin.xlane.f32.xlu0 %v5063_v35  ;;  %4946 = vmin.xlane.f32.xlu1 %v4919_v43  ;;  %v4574_v14 = vrot.slane %v4504_v5, %v7369_v8  ;;  %v3760_v47 = vmul.f32 2.0, %v3034_v59  ;;  %v3762_v25 = vmul.f32 2.0, %v3195_v63  ;;  %v4243_v20 = vadd.f32 %v3987_v41, %v7114_v6  ;;  %v3042_v23 = vpop.f32.mrb[127].mxu0 }
 0x440   :  { %v4570_v22 = vsel %vm4406_vm9, %v4569_v40, %v4565_v1  ;;  %v4419_v32 = vrot.slane %v4329_v26, %v7384_v57  ;;  %v3761_v15 = vmul.f32 2.0, %v3036_v61  ;;  %v3201_v10 = vpop.f32.mrb[126].mxu1  ;;  %v4256_v62 = vadd.f32 %v4000_v33, %v7128_v9 }
 0x441   :  { %v4016_v11 = vsub.f32 %v6911_v18, %v3760_v47  ;;  %v4018_v35 = vsub.f32 %v6952_v56, %v3762_v25  ;;  %v3763_v43 = vmul.f32 2.0, %v3197_v13  ;;  %v3203_v5 = vpop.f32.mrb[127].mxu1  ;;  %v7564_v59 = vpop.xlane.xlu0 %4507  ;;  %v4257_v41 = vadd.f32 %v4001_v4, %v7128_v9 }
 0x442   :  { %v4017_v1 = vsub.f32 %v7139_v7, %v3761_v15  ;;  %v5064_v40 = vmin.f32 %v4226_v42, %v4227_v37  ;;  %v4920_v26 = vmin.f32 %v4240_v34, %v4241_v17  ;;  %v4333_v63 = vpop.xlane.xlu1 %4332  ;;  %v4414_v61 = vsel %vm4413_vm10, %v4412_v52, %v4407_v48  ;;  %v3272_v13 = vpop.f32.mrb[128].mxu0 }
 0x443   :  { %v4258_v33 = vadd.f32 %v4002_v60, %v7128_v9  ;;  %v4575_v47 = vsel %vm4413_vm10, %v4574_v14, %v4570_v22  ;;  %v4019_v25 = vsub.f32 %v7174_v39, %v3763_v43  ;;  %v4259_v8 = vadd.f32 %v4003_v38, %v7128_v9  ;;  %v3274_v37 = vpop.f32.mrb[129].mxu0 }
 0x444   :  { %v4421_v6 = vsel %vm4420_vm11, %v4419_v32, %v4414_v61  ;;  %5091 = vmin.xlane.f32.xlu0 %v5064_v40  ;;  %4948 = vmin.xlane.f32.xlu1 %v4920_v26  ;;  %v3776_v4 = vmul.f32 2.0, %v3040_v12  ;;  %v3778_v15 = vmul.f32 2.0, %v3201_v10  ;;  %v3433_v42 = vpop.f32.mrb[128].mxu1  ;;  %v4579_v48 = vrot.slane %v7547_v58, %v7384_v57 }
 0x445   :  { %v4426_v34 = vrot.slane %v7554_v54, %v7393_v44  ;;  %v3777_v60 = vmul.f32 2.0, %v3042_v23  ;;  %v3779_v17 = vmul.f32 2.0, %v3203_v5  ;;  %v3435_v52 = vpop.f32.mrb[129].mxu1  ;;  %v7578_v14 = vpop.xlane.xlu0 %4509  ;;  %v5065_v32 = vmin.f32 %v4242_v3, %v4243_v20 }
 0x446   :  { %v4032_v38 = vsub.f32 %v6911_v18, %v3776_v4  ;;  %v4034_v22 = vsub.f32 %v6952_v56, %v3778_v15  ;;  %v4921_v12 = vmin.f32 %v4256_v62, %v4257_v41  ;;  %v7582_v10 = vpop.xlane.xlu1 %4334  ;;  %v4272_v43 = vadd.f32 %v4016_v11, %v7145_v19  ;;  %v3278_v23 = vpop.f32.mrb[130].mxu0 }
 0x447   :  { %v4273_v58 = vadd.f32 %v4017_v1, %v7145_v19  ;;  %v4033_v40 = vsub.f32 %v7139_v7, %v3777_v60  ;;  %v4035_v54 = vsub.f32 %v7174_v39, %v3779_v17  ;;  %v4274_v5 = vadd.f32 %v4018_v35, %v7145_v19  ;;  %v3280_v20 = vpop.f32.mrb[131].mxu0 }
 0x448   :  { %5093 = vmin.xlane.f32.xlu0 %v5065_v32  ;;  %4950 = vmin.xlane.f32.xlu1 %v4921_v12  ;;  %v4584_v18 = vrot.slane %v7564_v59, %v7393_v44  ;;  %v4433_v56 = vrot.slane %v4333_v63, %v7408_v46  ;;  %v3540_v62 = vmul.f32 2.0, %v3272_v13  ;;  %v3439_v3 = vpop.f32.mrb[130].mxu1  ;;  %v4275_v11 = vadd.f32 %v4019_v25, %v7145_v19 }
 0x449   :  { %v4580_v7 = vsel %vm4420_vm11, %v4579_v48, %v4575_v47  ;;  %v4428_v39 = vsel %vm4427_vm12, %v4426_v34, %v4421_v6  ;;  %v3542_v41 = vmul.f32 2.0, %v3433_v42  ;;  %v3441_v1 = vpop.f32.mrb[131].mxu1  ;;  %v7595_v26 = vpop.xlane.xlu0 %4511  ;;  %v4288_v35 = vadd.f32 %v4032_v38, %v7164_v45 }
 0x44a   :  { %v7599_v61 = vadd.f32 %v4034_v22, %v7164_v45  ;;  %v3541_v59 = vmul.f32 2.0, %v3274_v37  ;;  %v3543_v63 = vmul.f32 2.0, %v3435_v52  ;;  %v7601_v13 = vpop.xlane.xlu1 %4336  ;;  %v4289_v4 = vadd.f32 %v4033_v40, %v7164_v45  ;;  %v3284_v15 = vpop.f32.mrb[132].mxu0 }
 0x44b   :  { %v7605_v25 = vadd.f32 %v4035_v54, %v7164_v45  ;;  %v5066_v47 = vmin.f32 %v4258_v33, %v4259_v8  ;;  %v4922_v6 = vmin.f32 %v4272_v43, %v4273_v58  ;;  %v4585_v42 = vsel %vm4427_vm12, %v4584_v18, %v4580_v7  ;;  %v3286_v17 = vpop.f32.mrb[133].mxu0 }
 0x44c   :  { %v4435_v48 = vsel %vm4434_vm13, %v4433_v56, %v4428_v39  ;;  %v3796_v34 = vsub.f32 %v7158_v51, %v3540_v62  ;;  %v3797_v37 = vsub.f32 %v7251_v50, %v3541_v59  ;;  %v3445_v60 = vpop.f32.mrb[132].mxu1  ;;  %v3798_v52 = vsub.f32 %v7229_v24, %v3542_v41 }
 0x44d   :  { %5095 = vmin.xlane.f32.xlu0 %v5066_v47  ;;  %4952 = vmin.xlane.f32.xlu1 %v4922_v6  ;;  %v4589_v8 = vrot.slane %v7578_v14, %v7408_v46  ;;  %v3556_v33 = vmul.f32 2.0, %v3278_v23  ;;  %v3558_v38 = vmul.f32 2.0, %v3439_v3  ;;  %v3447_v22 = vpop.f32.mrb[133].mxu1  ;;  %v7614_v32 = vpop.xlane.xlu0 %4513  ;;  %v3799_v12 = vsub.f32 %v7261_v27, %v3543_v63 }
 0x44e   :  { %v4440_v43 = vrot.slane %v7582_v10, %v7417_v31  ;;  %v3557_v58 = vmul.f32 2.0, %v3280_v20  ;;  %v3559_v40 = vmul.f32 2.0, %v3441_v1  ;;  %v7619_v54 = vpop.xlane.xlu1 %4338  ;;  %v5067_v62 = vmin.f32 %v4274_v5, %v4275_v11  ;;  %v3290_v23 = vpop.f32.mrb[134].mxu0 }
 0x44f   :  { %v3812_v18 = vsub.f32 %v7158_v51, %v3556_v33  ;;  %v3814_v56 = vsub.f32 %v7229_v24, %v3558_v38  ;;  %v4923_v14 = vmin.f32 %v4288_v35, %v4289_v4  ;;  %v4052_v3 = vadd.f32 %v3796_v34, %v6843_v49  ;;  %v3292_v20 = vpop.f32.mrb[135].mxu0 }
 0x450   :  { %v4053_v7 = vadd.f32 %v3797_v37, %v6843_v49  ;;  %v3813_v39 = vsub.f32 %v7251_v50, %v3557_v58  ;;  %v3815_v41 = vsub.f32 %v7261_v27, %v3559_v40  ;;  %v3451_v10 = vpop.f32.mrb[134].mxu1  ;;  %v4054_v1 = vadd.f32 %v3798_v52, %v6843_v49 }
 0x451   :  { %5097 = vmin.xlane.f32.xlu0 %v5067_v62  ;;  %4954 = vmin.xlane.f32.xlu1 %v4923_v14  ;;  %v4594_v5 = vrot.slane %v7595_v26, %v7417_v31  ;;  %v3572_v11 = vmul.f32 2.0, %v3284_v15  ;;  %v3574_v35 = vmul.f32 2.0, %v3445_v60  ;;  %v3453_v59 = vpop.f32.mrb[135].mxu1  ;;  %v7630_v63 = vpop.xlane.xlu0 %4515  ;;  %v4055_v4 = vadd.f32 %v3799_v12, %v6843_v49 }
 0x452   :  { %v4590_v47 = vsel %vm4434_vm13, %v4589_v8, %v4585_v42  ;;  %v4442_v6 = vsel %vm4441_vm14, %v4440_v43, %v4435_v48  ;;  %v4447_v34 = vrot.slane %v7601_v13, %v7441_v2  ;;  %v7637_v37 = vpop.xlane.xlu1 %4340  ;;  %v4068_v52 = vadd.f32 %v3812_v18, %v6868_v0  ;;  %v3296_v33 = vpop.f32.mrb[136].mxu0 }
 0x453   :  { %v7641_v26 = vadd.f32 %v3814_v56, %v6868_v0  ;;  %v3573_v15 = vmul.f32 2.0, %v3286_v17  ;;  %v3575_v60 = vmul.f32 2.0, %v3447_v22  ;;  %v4069_v49 = vadd.f32 %v3813_v39, %v6868_v0  ;;  %v3298_v38 = vpop.f32.mrb[137].mxu0 }
 0x454   :  { %v7645_v42 = vadd.f32 %v3815_v41, %v6868_v0  ;;  %v5068_v48 = vmin.f32 %v7599_v61, %v7605_v25  ;;  %v5198_v13 = vmin.f32 %v4052_v3, %v4053_v7  ;;  %v3457_v8 = vpop.f32.mrb[136].mxu1  ;;  %v4595_v12 = vsel %vm4441_vm14, %v4594_v5, %v4590_v47 }
 0x455   :  { %v3828_v43 = vsub.f32 %v7158_v51, %v3572_v11  ;;  %v3830_v17 = vsub.f32 %v7229_v24, %v3574_v35  ;;  %v3829_v22 = vsub.f32 %v7251_v50, %v3573_v15  ;;  %v3459_v58 = vpop.f32.mrb[137].mxu1  ;;  %v7653_v40 = vpop.xlane.xlu0 %4517  ;;  %v4449_v0 = vsel %vm4448_vm15, %v4447_v34, %v4442_v6 }
 0x456   :  { %5099 = vmin.xlane.f32.xlu0 %v5068_v48  ;;  %5214 = vmin.xlane.f32.xlu1 %v5198_v13  ;;  %v4599_v61 = vrot.slane %v7614_v32, %v7441_v2  ;;  %v3588_v25 = vmul.f32 2.0, %v3290_v23  ;;  %v3590_v18 = vmul.f32 2.0, %v3451_v10  ;;  %v4343_v56 = vpop.xlane.xlu1 %4342  ;;  %v3831_v62 = vsub.f32 %v7261_v27, %v3575_v60  ;;  %v3302_v39 = vpop.f32.mrb[138].mxu0  ;;  %v8276_v32 = vld [vmem:[#allocation8_spill] sm:$0xff] }
 0x457   :  { %v4454_v14 = vrot.slane %v7619_v54, %v7446_v21  ;;  %v3589_v3 = vmul.f32 2.0, %v3292_v20  ;;  %v3591_v7 = vmul.f32 2.0, %v3453_v59  ;;  %v5199_v11 = vmin.f32 %v4068_v52, %v4069_v49  ;;  %v3304_v6 = vpop.f32.mrb[139].mxu0  ;;  %v8277_v52 = vld [vmem:[#allocation23_spill] sm:$0xff] }
 0x458   :  { %v3844_v41 = vsub.f32 %v7158_v51, %v3588_v25  ;;  %v3846_v5 = vsub.f32 %v7229_v24, %v3590_v18  ;;  %v5343_v35 = vmin.f32 %v4054_v1, %v4055_v4  ;;  %v3463_v47 = vpop.f32.mrb[138].mxu1  ;;  %v4084_v23 = vadd.f32 %v3828_v43, %v8276_v32 }
 0x459   :  { %v7665_v10 = vadd.f32 %v3830_v17, %v8276_v32  ;;  %v4085_v34 = vadd.f32 %v3829_v22, %v8276_v32  ;;  %v3845_v54 = vsub.f32 %v7251_v50, %v3589_v3  ;;  %v3465_v20 = vpop.f32.mrb[139].mxu1  ;;  %v7669_v59 = vpop.xlane.xlu0 %4519  ;;  %v4600_v15 = vsel %vm4448_vm15, %v4599_v61, %v4595_v12  ;;  %v8278_v12 = vld [vmem:[#allocation9_spill] sm:$0xff] }
 0x45a   :  { %5216 = vmin.xlane.f32.xlu0 %v5199_v11  ;;  %5359 = vmin.xlane.f32.xlu1 %v5343_v35  ;;  %v4461_v1 = vrot.slane %v7637_v37, %v8277_v52  ;;  %v3604_v4 = vmul.f32 2.0, %v3296_v33  ;;  %v3606_v60 = vmul.f32 2.0, %v3457_v8  ;;  %v7674_v49 = vpop.xlane.xlu1 %4634  ;;  %v4087_v48 = vadd.f32 %v3831_v62, %v8276_v32  ;;  %v3308_v22 = vpop.f32.mrb[140].mxu0 }
 0x45b   :  { %v4456_v13 = vsel %vm4455_vm0, %v4454_v14, %v4449_v0  ;;  %v3847_v43 = vsub.f32 %v7261_v27, %v3591_v7  ;;  %v4604_v17 = vrot.slane %v7630_v63, %v7446_v21  ;;  %v4100_v61 = vadd.f32 %v3844_v41, %v8278_v12  ;;  %v3310_v18 = vpop.f32.mrb[141].mxu0 }
 0x45c   :  { %v7683_v25 = vadd.f32 %v3846_v5, %v8278_v12  ;;  %v3605_v37 = vmul.f32 2.0, %v3298_v38  ;;  %v3607_v33 = vmul.f32 2.0, %v3459_v58  ;;  %v3469_v8 = vpop.f32.mrb[140].mxu1  ;;  %v4101_v3 = vadd.f32 %v3845_v54, %v8278_v12 }
 0x45d   :  { %v5344_v0 = vmin.f32 %v7641_v26, %v7645_v42  ;;  %v5200_v62 = vmin.f32 %v4084_v23, %v4085_v34  ;;  %v4468_v14 = vrot.slane %v4343_v56, %v7475_v55  ;;  %v3471_v7 = vpop.f32.mrb[141].mxu1  ;;  %v4463_v63 = vsel %vm4462_vm1, %v4461_v1, %v4456_v13 }
 0x45e   :  { %v3860_v41 = vsub.f32 %v7158_v51, %v3604_v4  ;;  %v3862_v5 = vsub.f32 %v7229_v24, %v3606_v60  ;;  %v3861_v38 = vsub.f32 %v7251_v50, %v3605_v37  ;;  %v7693_v58 = vpop.xlane.xlu0 %4636  ;;  %v7695_v11 = vpop.xlane.xlu1 %4779  ;;  %v3863_v35 = vsub.f32 %v7261_v27, %v3607_v33 }
 0x45f   :  { %5361 = vmin.xlane.f32.xlu0 %v5344_v0  ;;  %5218 = vmin.xlane.f32.xlu1 %v5200_v62  ;;  %v4609_v26 = vrot.slane %v7653_v40, %v8277_v52  ;;  %v4470_v42 = vsel %vm4469_vm2, %v4468_v14, %v4463_v63  ;;  %v3620_v56 = vmul.f32 2.0, %v3302_v39  ;;  %v3314_v32 = vpop.f32.mrb[142].mxu0  ;;  %v4103_v23 = vadd.f32 %v3847_v43, %v8278_v12  ;;  %v8279_v62 = vld [vmem:[#allocation10_spill] sm:$0xff] }
 0x460   :  { %v4605_v34 = vsel %vm4455_vm0, %v4604_v17, %v4600_v15  ;;  %4472 = vst [vmem:[#allocation4] sm:$0x1] %v4470_v42  ;;  %v3622_v54 = vmul.f32 2.0, %v3463_v47  ;;  %v3621_v1 = vmul.f32 2.0, %v3304_v6  ;;  %v3475_v4 = vpop.f32.mrb[142].mxu1  ;;  %v3316_v60 = vpop.f32.mrb[143].mxu0  ;;  %v5345_v33 = vmin.f32 %v7665_v10, %v4087_v48 }
 0x461   :  { %v3876_v13 = vsub.f32 %v7158_v51, %v3620_v56  ;;  %v3623_v37 = vmul.f32 2.0, %v3465_v20  ;;  %v5201_v0 = vmin.f32 %v4100_v61, %v4101_v3  ;;  %v3477_v40 = vpop.f32.mrb[143].mxu1  ;;  %v4116_v14 = vadd.f32 %v3860_v41, %v8279_v62  ;;  %v8280_v42 = vld [vmem:[#allocation11_spill] sm:$0xff] }
 0x462   :  { %v4117_v39 = vadd.f32 %v3861_v38, %v8279_v62  ;;  %v3877_v43 = vsub.f32 %v7251_v50, %v3621_v1  ;;  %v4614_v15 = vrot.slane %v7669_v59, %v7475_v55  ;;  %v7710_v47 = vpop.xlane.xlu0 %4781  ;;  %v7712_v6 = vpop.xlane.xlu1 %4638  ;;  %v4118_v17 = vadd.f32 %v3862_v5, %v8279_v62 }
 0x463   :  { %v4119_v20 = vadd.f32 %v3863_v35, %v8279_v62  ;;  %v4610_v10 = vsel %vm4462_vm1, %v4609_v26, %v4605_v34  ;;  %5363 = vmin.xlane.f32.xlu0 %v5345_v33  ;;  %5220 = vmin.xlane.f32.xlu1 %v5201_v0  ;;  %v3636_v48 = vmul.f32 2.0, %v3308_v22  ;;  %v3320_v12 = vpop.f32.mrb[144].mxu0  ;;  %v3878_v61 = vsub.f32 %v7229_v24, %v3622_v54 }
 0x464   :  { %v4615_v3 = vsel %vm4469_vm2, %v4614_v15, %v4610_v10  ;;  %v3638_v63 = vmul.f32 2.0, %v3469_v8  ;;  %v3637_v59 = vmul.f32 2.0, %v3310_v18  ;;  %v3481_v41 = vpop.f32.mrb[144].mxu1  ;;  %v3322_v38 = vpop.f32.mrb[145].mxu0  ;;  %v4132_v56 = vadd.f32 %v3876_v13, %v8280_v42 }
 0x465   :  { %v3879_v5 = vsub.f32 %v7261_v27, %v3623_v37  ;;  %4617 = vst [vmem:[#allocation4 + $0x1] sm:$0x1] %v4615_v3  ;;  %v3639_v35 = vmul.f32 2.0, %v3471_v7  ;;  %v5346_v26 = vmin.f32 %v7683_v25, %v4103_v23  ;;  %v3483_v34 = vpop.f32.mrb[145].mxu1  ;;  %v4133_v22 = vadd.f32 %v3877_v43, %v8280_v42  ;;  %v8281_v23 = vld [vmem:[#allocation17_spill] sm:$0xff] }
 0x466   :  { %v3892_v1 = vsub.f32 %v7158_v51, %v3636_v48  ;;  %v3893_v54 = vsub.f32 %v7251_v50, %v3637_v59  ;;  %v5202_v33 = vmin.f32 %v4116_v14, %v4117_v39  ;;  %v7725_v8 = vpop.xlane.xlu0 %4783  ;;  %v7727_v18 = vpop.xlane.xlu1 %4640  ;;  %v4685_v13 = vrot.slane %v7674_v49, %v7288_v29  ;;  %v8282_v59 = vld [vmem:[#allocation12_spill] sm:$0xff] }
 0x467   :  { %5365 = vmin.xlane.f32.xlu0 %v5346_v26  ;;  %v3652_v37 = vmul.f32 2.0, %v3314_v32  ;;  %v3326_v7 = vpop.f32.mrb[146].mxu0  ;;  %v3894_v25 = vsub.f32 %v7229_v24, %v3638_v63  ;;  %v4689_v0 = vrot.slane %v7693_v58, %v8281_v23  ;;  %v3654_v62 = vmul.f32 2.0, %v3475_v4 }
 0x468   :  { %5222 = vmin.xlane.f32.xlu1 %v5202_v33  ;;  %v3653_v43 = vmul.f32 2.0, %v3316_v60  ;;  %v3487_v15 = vpop.f32.mrb[146].mxu1  ;;  %v3328_v14 = vpop.f32.mrb[147].mxu0  ;;  %v4134_v39 = vadd.f32 %v3878_v61, %v8280_v42  ;;  %v3895_v10 = vsub.f32 %v7261_v27, %v3639_v35  ;;  %v3655_v48 = vmul.f32 2.0, %v3477_v40 }
 0x469   :  { %v5347_v3 = vmin.f32 %v4118_v17, %v4119_v20  ;;  %v3489_v49 = vpop.f32.mrb[147].mxu1  ;;  %v4135_v32 = vadd.f32 %v3879_v5, %v8280_v42  ;;  %v4148_v26 = vadd.f32 %v3892_v1, %v8282_v59  ;;  %v4149_v63 = vadd.f32 %v3893_v54, %v8282_v59 }
 0x46a   :  { %v5203_v33 = vmin.f32 %v4132_v56, %v4133_v22  ;;  %v7739_v55 = vpop.xlane.xlu0 %4785  ;;  %v7741_v58 = vpop.xlane.xlu1 %4642  ;;  %v4830_v4 = vrot.slane %v7695_v11, %v7288_v29  ;;  %v3908_v60 = vsub.f32 %v7158_v51, %v3652_v37  ;;  %v3909_v40 = vsub.f32 %v7251_v50, %v3653_v43  ;;  %v8283_v43 = vld [vmem:[#allocation18_spill] sm:$0xff] }
 0x46b   :  { %5367 = vmin.xlane.f32.xlu0 %v5347_v3  ;;  %v3668_v17 = vmul.f32 2.0, %v3320_v12  ;;  %v3332_v20 = vpop.f32.mrb[148].mxu0  ;;  %v4150_v61 = vadd.f32 %v3894_v25, %v8282_v59  ;;  %v4690_v42 = vsel %vm4371_vm4, %v4689_v0, %v4685_v13  ;;  %v3910_v56 = vsub.f32 %v7229_v24, %v3654_v62 }
 0x46c   :  { %5224 = vmin.xlane.f32.xlu1 %v5203_v33  ;;  %v3670_v5 = vmul.f32 2.0, %v3481_v41  ;;  %v3493_v35 = vpop.f32.mrb[148].mxu1  ;;  %v3334_v22 = vpop.f32.mrb[149].mxu0  ;;  %v4151_v1 = vadd.f32 %v3895_v10, %v8282_v59  ;;  %v3911_v11 = vsub.f32 %v7261_v27, %v3655_v48  ;;  %v4834_v54 = vrot.slane %v7710_v47, %v8281_v23  ;;  %v8284_v33 = vld [vmem:[#allocation13_spill] sm:$0xff] }
 0x46d   :  { %v3669_v37 = vmul.f32 2.0, %v3322_v38  ;;  %v3495_v12 = vpop.f32.mrb[149].mxu1  ;;  %v4694_v25 = vrot.slane %v7712_v6, %v8283_v43  ;;  %v3924_v13 = vsub.f32 %v7158_v51, %v3668_v17  ;;  %v5348_v0 = vmin.f32 %v4134_v39, %v4135_v32  ;;  %v8285_v17 = vld [vmem:[#allocation19_spill] sm:$0xff] }
 0x46e   :  { %v5204_v62 = vmin.f32 %v4148_v26, %v4149_v63  ;;  %v7757_v3 = vpop.xlane.xlu0 %4787  ;;  %v7759_v41 = vpop.xlane.xlu1 %4644  ;;  %v4164_v10 = vadd.f32 %v3908_v60, %v8284_v33  ;;  %v4165_v48 = vadd.f32 %v3909_v40, %v8284_v33  ;;  %v3671_v47 = vmul.f32 2.0, %v3483_v34 }
 0x46f   :  { %v3925_v59 = vsub.f32 %v7251_v50, %v3669_v37  ;;  %v3338_v38 = vpop.f32.mrb[150].mxu0  ;;  %v4166_v29 = vadd.f32 %v3910_v56, %v8284_v33  ;;  %v3926_v6 = vsub.f32 %v7229_v24, %v3670_v5  ;;  %5369 = vmin.xlane.f32.xlu0 %v5348_v0  ;;  %v4839_v39 = vrot.slane %v7725_v8, %v8283_v43 }
 0x470   :  { %5226 = vmin.xlane.f32.xlu1 %v5204_v62  ;;  %v3684_v32 = vmul.f32 2.0, %v3326_v7  ;;  %v3499_v26 = vpop.f32.mrb[150].mxu1  ;;  %v3340_v63 = vpop.f32.mrb[151].mxu0  ;;  %v4835_v60 = vsel %vm4371_vm4, %v4834_v54, %v4830_v4  ;;  %v4699_v40 = vrot.slane %v7727_v18, %v8285_v17  ;;  %v3686_v37 = vmul.f32 2.0, %v3487_v15 }
 0x471   :  { %v3685_v34 = vmul.f32 2.0, %v3328_v14  ;;  %v3501_v23 = vpop.f32.mrb[151].mxu1  ;;  %v4167_v56 = vadd.f32 %v3911_v11, %v8284_v33  ;;  %v4695_v5 = vsel %vm4378_vm5, %v4694_v25, %v4690_v42  ;;  %v4180_v0 = vadd.f32 %v3924_v13, %v7032_v28 }
 0x472   :  { %v3687_v62 = vmul.f32 2.0, %v3489_v49  ;;  %v7774_v52 = vpop.xlane.xlu0 %4789  ;;  %v7776_v8 = vpop.xlane.xlu1 %4646  ;;  %v4181_v7 = vadd.f32 %v3925_v59, %v7032_v28  ;;  %v3927_v4 = vsub.f32 %v7261_v27, %v3671_v47  ;;  %v5349_v54 = vmin.f32 %v4150_v61, %v4151_v1 }
 0x473   :  { %v5205_v18 = vmin.f32 %v4164_v10, %v4165_v48  ;;  %v7780_v15 = vpop.f32.mrb[152].mxu0  ;;  %v4182_v14 = vadd.f32 %v3926_v6, %v7032_v28  ;;  %v4840_v11 = vsel %vm4378_vm5, %v4839_v39, %v4835_v60  ;;  %v3940_v42 = vsub.f32 %v7158_v51, %v3684_v32 }
 0x474   :  { %v3941_v49 = vsub.f32 %v7251_v50, %v3685_v34  ;;  %v3505_v25 = vpop.f32.mrb[152].mxu1  ;;  %v7786_v13 = vpop.f32.mrb[153].mxu0  ;;  %v4700_v33 = vsel %vm4385_vm6, %v4699_v40, %v4695_v5  ;;  %v3942_v59 = vsub.f32 %v7229_v24, %v3686_v37  ;;  %5371 = vmin.xlane.f32.xlu0 %v5349_v54  ;;  %v3700_v61 = vmul.f32 2.0, %v3332_v20 }
 0x475   :  { %5228 = vmin.xlane.f32.xlu1 %v5205_v18  ;;  %v3702_v1 = vmul.f32 2.0, %v3493_v35  ;;  %v3507_v10 = vpop.f32.mrb[153].mxu1  ;;  %v3943_v48 = vsub.f32 %v7261_v27, %v3687_v62  ;;  %v4844_v47 = vrot.slane %v7739_v55, %v8285_v17  ;;  %v3701_v6 = vmul.f32 2.0, %v3334_v22 }
 0x476   :  { %v3703_v39 = vmul.f32 2.0, %v3495_v12  ;;  %v7793_v32 = vpop.xlane.xlu0 %4791  ;;  %v7795_v60 = vpop.xlane.xlu1 %4648  ;;  %v4183_v40 = vadd.f32 %v3927_v4, %v7032_v28  ;;  %v4704_v37 = vrot.slane %v7741_v58, %v7336_v30  ;;  %v5350_v34 = vmin.f32 %v4166_v29, %v4167_v56 }
 0x477   :  { %v5206_v20 = vmin.f32 %v4180_v0, %v4181_v7  ;;  %v7800_v35 = vpop.f32.mrb[154].mxu0  ;;  %v4196_v5 = vadd.f32 %v3940_v42, %v7059_v36  ;;  %v4197_v62 = vadd.f32 %v3941_v49, %v7059_v36  ;;  %v3956_v55 = vsub.f32 %v7158_v51, %v3700_v61 }
 0x478   :  { %v3957_v22 = vsub.f32 %v7251_v50, %v3701_v6  ;;  %v7806_v12 = vpop.f32.mrb[154].mxu1  ;;  %v7808_v54 = vpop.f32.mrb[155].mxu0  ;;  %v4198_v28 = vadd.f32 %v3942_v59, %v7059_v36  ;;  %v3958_v58 = vsub.f32 %v7229_v24, %v3702_v1  ;;  %v3959_v29 = vsub.f32 %v7261_v27, %v3703_v39  ;;  %5373 = vmin.xlane.f32.xlu0 %v5350_v34 }
 0x479   :  { %5230 = vmin.xlane.f32.xlu1 %v5206_v20  ;;  %v3716_v56 = vmul.f32 2.0, %v3338_v38  ;;  %v3513_v0 = vpop.f32.mrb[155].mxu1  ;;  %v4199_v7 = vadd.f32 %v3943_v48, %v7059_v36  ;;  %v4845_v4 = vsel %vm4385_vm6, %v4844_v47, %v4840_v11  ;;  %v4849_v18 = vrot.slane %v7757_v3, %v7336_v30  ;;  %v8286_v36 = vld [vmem:[#allocation14_spill] sm:$0xff] }
 0x47a   :  { %v3718_v42 = vmul.f32 2.0, %v3499_v26  ;;  %v7817_v49 = vpop.xlane.xlu0 %4793  ;;  %v7819_v61 = vpop.xlane.xlu1 %4650  ;;  %v4705_v59 = vsel %vm4392_vm7, %v4704_v37, %v4700_v33  ;;  %v4709_v1 = vrot.slane %v7759_v41, %v7345_v16  ;;  %v3717_v6 = vmul.f32 2.0, %v3340_v63 }
 0x47b   :  { %v3719_v38 = vmul.f32 2.0, %v3501_v23  ;;  %v7824_v39 = vpop.f32.mrb[156].mxu0  ;;  %v4212_v48 = vadd.f32 %v3956_v55, %v8286_v36  ;;  %v4213_v11 = vadd.f32 %v3957_v22, %v8286_v36  ;;  %v5351_v47 = vmin.f32 %v4182_v14, %v4183_v40 }
 0x47c   :  { %v5207_v3 = vmin.f32 %v4196_v5, %v4197_v62  ;;  %v3517_v26 = vpop.f32.mrb[156].mxu1  ;;  %v7828_v34 = vpop.f32.mrb[157].mxu0  ;;  %v4214_v20 = vadd.f32 %v3958_v58, %v8286_v36  ;;  %v4215_v33 = vadd.f32 %v3959_v29, %v8286_v36  ;;  %v3972_v37 = vsub.f32 %v7158_v51, %v3716_v56 }
 0x47d   :  { %v3973_v41 = vsub.f32 %v7251_v50, %v3717_v6  ;;  %v3519_v23 = vpop.f32.mrb[157].mxu1  ;;  %v4850_v63 = vsel %vm4392_vm7, %v4849_v18, %v4845_v4  ;;  %v3974_v55 = vsub.f32 %v7229_v24, %v3718_v42  ;;  %5375 = vmin.xlane.f32.xlu0 %v5351_v47  ;;  %v3732_v14 = vmul.f32 2.0, %v7780_v15 }
 0x47e   :  { %5232 = vmin.xlane.f32.xlu1 %v5207_v3  ;;  %v3734_v40 = vmul.f32 2.0, %v3505_v25  ;;  %v7837_v5 = vpop.xlane.xlu0 %4795  ;;  %v7839_v62 = vpop.xlane.xlu1 %4652  ;;  %v3975_v22 = vsub.f32 %v7261_v27, %v3719_v38  ;;  %v4854_v58 = vrot.slane %v7774_v52, %v7345_v16  ;;  %v3733_v29 = vmul.f32 2.0, %v7786_v13  ;;  %v8287_v3 = vld [vmem:[#allocation21_spill] sm:$0xff] }
 0x47f   :  { %v3735_v56 = vmul.f32 2.0, %v3507_v10  ;;  %v3362_v4 = vpop.f32.mrb[158].mxu0  ;;  %v4710_v18 = vsel %vm4399_vm8, %v4709_v1, %v4705_v59  ;;  %v3988_v42 = vsub.f32 %v7158_v51, %v3732_v14  ;;  %v5352_v6 = vmin.f32 %v4198_v28, %v4199_v7 }
 0x480   :  { %v5208_v15 = vmin.f32 %v4212_v48, %v4213_v11  ;;  %v3523_v25 = vpop.f32.mrb[158].mxu1  ;;  %v7847_v36 = vpop.f32.mrb[159].mxu0  ;;  %v4228_v47 = vadd.f32 %v3972_v37, %v7102_v53  ;;  %v4229_v38 = vadd.f32 %v3973_v41, %v7102_v53  ;;  %v4714_v52 = vrot.slane %v7776_v8, %v8287_v3 }
 0x481   :  { %v3989_v13 = vsub.f32 %v7251_v50, %v3733_v29  ;;  %v3525_v10 = vpop.f32.mrb[159].mxu1  ;;  %v4230_v16 = vadd.f32 %v3974_v55, %v7102_v53  ;;  %v3990_v59 = vsub.f32 %v7229_v24, %v3734_v40  ;;  %v3991_v28 = vsub.f32 %v7261_v27, %v3735_v56  ;;  %5377 = vmin.xlane.f32.xlu0 %v5352_v6  ;;  %v8288_v55 = vld [vmem:[#allocation15_spill] sm:$0xff]  ;;  %v8289_v40 = vld [vmem:[#allocation22_spill] sm:$0xff] }
 0x482   :  { %5234 = vmin.xlane.f32.xlu1 %v5208_v15  ;;  %v3748_v7 = vmul.f32 2.0, %v7800_v35  ;;  %v7858_v1 = vpop.xlane.xlu0 %4797  ;;  %v7860_v48 = vpop.xlane.xlu1 %4654  ;;  %v4231_v11 = vadd.f32 %v3975_v22, %v7102_v53  ;;  %v4855_v8 = vsel %vm4399_vm8, %v4854_v58, %v4850_v63  ;;  %v4859_v37 = vrot.slane %v7793_v32, %v8287_v3 }
 0x483   :  { %v3750_v41 = vmul.f32 2.0, %v7806_v12  ;;  %v4244_v14 = vadd.f32 %v3988_v42, %v8288_v55  ;;  %v4719_v29 = vrot.slane %v7795_v60, %v8289_v40  ;;  %v3749_v35 = vmul.f32 2.0, %v7808_v54 }
 0x484   :  { %v3751_v56 = vmul.f32 2.0, %v3513_v0  ;;  %v4245_v6 = vadd.f32 %v3989_v13, %v8288_v55  ;;  %v4004_v15 = vsub.f32 %v7158_v51, %v3748_v7  ;;  %v5353_v53 = vmin.f32 %v4214_v20, %v4215_v33 }
 0x485   :  { %v5209_v22 = vmin.f32 %v4228_v47, %v4229_v38  ;;  %v4715_v63 = vsel %vm4406_vm9, %v4714_v52, %v4710_v18  ;;  %v4246_v32 = vadd.f32 %v3990_v59, %v8288_v55  ;;  %v4247_v12 = vadd.f32 %v3991_v28, %v8288_v55 }
 0x486   :  { %v4005_v58 = vsub.f32 %v7251_v50, %v3749_v35  ;;  %v7877_v42 = vpop.xlane.xlu0 %4799  ;;  %v7879_v60 = vpop.xlane.xlu1 %4656  ;;  %v7882_v54 = vsel %vm4406_vm9, %v4859_v37, %v4855_v8  ;;  %v4006_v0 = vsub.f32 %v7229_v24, %v3750_v41  ;;  %5379 = vmin.xlane.f32.xlu0 %v5353_v53  ;;  %v3764_v20 = vmul.f32 2.0, %v7824_v39 }
 0x487   :  { %5236 = vmin.xlane.f32.xlu1 %v5209_v22  ;;  %v3766_v33 = vmul.f32 2.0, %v3517_v26  ;;  %v4720_v18 = vsel %vm4413_vm10, %v4719_v29, %v4715_v63  ;;  %v4007_v47 = vsub.f32 %v7261_v27, %v3751_v56  ;;  %v3765_v38 = vmul.f32 2.0, %v7828_v34 }
 0x488   :  { %v3767_v52 = vmul.f32 2.0, %v3519_v23  ;;  %v4260_v13 = vadd.f32 %v4004_v15, %v7128_v9  ;;  %v4020_v59 = vsub.f32 %v7158_v51, %v3764_v20  ;;  %v5354_v28 = vmin.f32 %v4230_v16, %v4231_v11 }
 0x489   :  { %v5210_v7 = vmin.f32 %v4244_v14, %v4245_v6  ;;  %v4261_v8 = vadd.f32 %v4005_v58, %v7128_v9  ;;  %v4022_v37 = vsub.f32 %v7229_v24, %v3766_v33  ;;  %v4021_v39 = vsub.f32 %v7251_v50, %v3765_v38 }
 0x48a   :  { %v4023_v26 = vsub.f32 %v7261_v27, %v3767_v52  ;;  %v7895_v41 = vpop.xlane.xlu0 %4801  ;;  %v4659_v55 = vpop.xlane.xlu1 %4658  ;;  %v4262_v34 = vadd.f32 %v4006_v0, %v7128_v9  ;;  %v4724_v23 = vrot.slane %v7819_v61, %v7384_v57  ;;  %5381 = vmin.xlane.f32.xlu0 %v5354_v28  ;;  %v3780_v16 = vmul.f32 2.0, %v3362_v4 }
 0x48b   :  { %5238 = vmin.xlane.f32.xlu1 %v5210_v7  ;;  %v3782_v11 = vmul.f32 2.0, %v3523_v25  ;;  %v4263_v14 = vadd.f32 %v4007_v47, %v7128_v9  ;;  %v4276_v29 = vadd.f32 %v4020_v59, %v7145_v19  ;;  %v4277_v35 = vadd.f32 %v4021_v39, %v7145_v19 }
 0x48c   :  { %v4729_v56 = vrot.slane %v7839_v62, %v7393_v44  ;;  %v4036_v6 = vsub.f32 %v7158_v51, %v3780_v16  ;;  %v3781_v53 = vmul.f32 2.0, %v7847_v36  ;;  %v3783_v61 = vmul.f32 2.0, %v3525_v10 }
 0x48d   :  { %v4038_v15 = vsub.f32 %v7229_v24, %v3782_v11  ;;  %v4278_v22 = vadd.f32 %v4022_v37, %v7145_v19  ;;  %v4279_v4 = vadd.f32 %v4023_v26, %v7145_v19  ;;  %v5355_v25 = vmin.f32 %v4246_v32, %v4247_v12  ;;  %v8291_v11 = vld [vmem:[#allocation24_spill] sm:$0xff] }
 0x48e   :  { %v5211_v9 = vmin.f32 %v4260_v13, %v4261_v8  ;;  %v4804_v63 = vpop.xlane.xlu0 %4803  ;;  %v4661_v58 = vpop.xlane.xlu1 %4660  ;;  %v4292_v0 = vadd.f32 %v4036_v6, %v7164_v45  ;;  %v4037_v62 = vsub.f32 %v7251_v50, %v3781_v53  ;;  %v4039_v51 = vsub.f32 %v7261_v27, %v3783_v61 }
 0x48f   :  { %v4294_v20 = vadd.f32 %v4038_v15, %v7164_v45  ;;  %v4864_v24 = vrot.slane %v7817_v49, %v8289_v40  ;;  %5383 = vmin.xlane.f32.xlu0 %v5355_v25  ;;  %v4734_v19 = vrot.slane %v7860_v48, %v7408_v46  ;;  %v5356_v36 = vmin.f32 %v4262_v34, %v4263_v14 }
 0x490   :  { %5240 = vmin.xlane.f32.xlu1 %v5211_v9  ;;  %v4725_v10 = vsel %vm4420_vm11, %v4724_v23, %v4720_v18  ;;  %v4293_v32 = vadd.f32 %v4037_v62, %v7164_v45  ;;  %v4295_v12 = vadd.f32 %v4039_v51, %v7164_v45  ;;  %v5212_v33 = vmin.f32 %v4276_v29, %v4277_v35  ;;  %v5497_v9 = vld [vmem:[%s8220_s8] sm:$0xff] }
 0x491   :  { %v4869_v50 = vrot.slane %v7837_v5, %v7384_v57  ;;  %v4739_v27 = vrot.slane %v7879_v60, %v7417_v31  ;;  %v5357_v49 = vmin.f32 %v4278_v22, %v4279_v4  ;;  %v4744_v47 = vrot.slane %v4659_v55, %v7441_v2 }
 0x492   :  { %v4806_v38 = vpop.xlane.xlu0 %4805  ;;  %v4663_v52 = vpop.xlane.xlu1 %4662  ;;  %v4730_v48 = vsel %vm4427_vm12, %v4729_v56, %v4725_v10  ;;  %v4874_v18 = vrot.slane %v7858_v1, %v7393_v44  ;;  %v5213_v13 = vmin.f32 %v4292_v0, %v4293_v32  ;;  %v5358_v59 = vmin.f32 %v4294_v20, %v4295_v12  ;;  %v8290_v1 = vld [vmem:[#allocation23_spill] sm:$0xff]  ;;  %v5500_v10 = vld [vmem:[%s8220_s8 + $0x18] sm:$0xff] }
 0x493   :  { %v4735_v45 = vsel %vm4434_vm13, %v4734_v19, %v4730_v48  ;;  %5385 = vmin.xlane.f32.xlu0 %v5356_v36  ;;  %v4879_v5 = vrot.slane %v7877_v42, %v7408_v46  ;;  %v4749_v60 = vrot.slane %v4661_v58, %v7446_v21  ;;  %v4865_v28 = vsel %vm4413_vm10, %v4864_v24, %v7882_v54  ;;  %v5499_v36 = vld [vmem:[%s8220_s8 + $0x10] sm:$0xff] }
 0x494   :  { %5242 = vmin.xlane.f32.xlu1 %v5212_v33  ;;  %v4740_v7 = vsel %vm4441_vm14, %v4739_v27, %v4735_v45  ;;  %v4884_v8 = vrot.slane %v7895_v41, %v7417_v31  ;;  %v4754_v37 = vrot.slane %v4663_v52, %v8290_v1  ;;  %v4870_v39 = vsel %vm4420_vm11, %v4869_v50, %v4865_v28 }
 0x495   :  { %v4745_v26 = vsel %vm4448_vm15, %v4744_v47, %v4740_v7  ;;  %v4889_v55 = vrot.slane %v4804_v63, %v7441_v2  ;;  %v4875_v23 = vsel %vm4427_vm12, %v4874_v18, %v4870_v39  ;;  %v4894_v54 = vrot.slane %v4806_v38, %v7446_v21  ;;  %v5498_v63 = vld [vmem:[%s8220_s8 + $0x8] sm:$0xff]  ;;  %v5503_v38 = vld [vmem:[%s8220_s8 + $0x30] sm:$0xff]  ;;  %v5504_v18 = vld [vmem:[%s8220_s8 + $0x38] sm:$0xff] }
 0x496   :  { %v4808_v34 = vpop.xlane.xlu0 %4807  ;;  %v4665_v42 = vpop.xlane.xlu1 %4664  ;;  %v4750_v16 = vsel %vm4455_vm0, %v4749_v60, %v4745_v26  ;;  %v4880_v41 = vsel %vm4434_vm13, %v4879_v5, %v4875_v23  ;;  %v6006_v15 = vmov 0.0|0.0   ;;  %v5873_v0 = vpack.c.bf16 %v5498_v63, %v5497_v9  ;;  %v5502_v47 = vld [vmem:[%s8220_s8 + $0x28] sm:$0xff]  ;;  %v5505_v5 = vld [vmem:[%s8220_s8 + $0x40] sm:$0xff]  ;;  %v8293_v9 = vld [vmem:[#allocation17_spill] sm:$0xff] }
 0x497   :  { %v4759_v14 = vrot.slane %v4665_v42, %v8291_v11  ;;  %5387 = vmin.xlane.f32.xlu0 %v5357_v49  ;;  %v4755_v29 = vsel %vm4462_vm1, %v4754_v37, %v4750_v16  ;;  %v4899_v35 = vrot.slane %v4808_v34, %v8290_v1  ;;  %v4885_v56 = vsel %vm4441_vm14, %v4884_v8, %v4880_v41  ;;  %v5501_v49 = vld [vmem:[%s8220_s8 + $0x20] sm:$0xff]  ;;  %v5506_v60 = vld [vmem:[%s8220_s8 + $0x48] sm:$0xff]  ;;  %v5507_v8 = vld [vmem:[%s8220_s8 + $0x50] sm:$0xff] }
 0x498   :  { %5244 = vmin.xlane.f32.xlu1 %v5213_v13  ;;  %5872 = vmatprep.subr.bf16.mxu0 %v6006_v15  ;;  %v4890_v53 = vsel %vm4448_vm15, %v4889_v55, %v4885_v56  ;;  %v5876_v32 = vpack.c.bf16 %v5500_v10, %v5499_v36  ;;  %v5879_v48 = vpack.c.bf16 %v5502_v47, %v5501_v49  ;;  %vm6007_vm3 = vmmov 0   ;;  %v5508_v37 = vld [vmem:[%s8220_s8 + $0x58] sm:$0xff]  ;;  %v5509_v34 = vld [vmem:[%s8220_s8 + $0x60] sm:$0xff]  ;;  %v5510_v42 = vld [vmem:[%s8220_s8 + $0x68] sm:$0xff] }
 0x499   :  { %v4760_v6 = vsel %vm4469_vm2, %v4759_v14, %v4755_v29  ;;  %v4895_v4 = vsel %vm4455_vm0, %v4894_v54, %v4890_v53  ;;  %5874 = vmatpush3.bf16.msra.mxu0 %v5873_v0  ;;  %v8292_v13 = vmov 0.0   ;;  %v5882_v45 = vpack.c.bf16 %v5504_v18, %v5503_v38  ;;  %v5511_v54 = vld [vmem:[%s8220_s8 + $0x70] sm:$0xff]  ;;  %v5512_v14 = vld [vmem:[%s8220_s8 + $0x78] sm:$0xff]  ;;  %s6008_s8 = smov [#allocation4]  }
 0x49a   :  { %4762 = vst [vmem:[#allocation4 + $0x2] sm:$0x1] %v4760_v6  ;;  %v4810_v61 = vpop.xlane.xlu0 %4809  ;;  %v7953_v22 = vpop.xlane.xlu1 %4924  ;;  %v4900_v58 = vsel %vm4462_vm1, %v4899_v35, %v4895_v4  ;;  %5875 = vmatprep.subr.bf16.mxu0 %v6006_v15  ;;  %5837 = vmatprep.mubr.msk.f32.mxu0 %vm6007_vm3, %v8292_v13  ;;  %v5885_v7 = vpack.c.bf16 %v5506_v60, %v5505_v5  ;;  %v8294_v0 = vld [vmem:[#allocation16_spill] sm:$0xff]  ;;  %s5600_s6 = sshll.u32 %s6008_s8, 4  ;;  %s5601_s6 = int_to_ptr.vmem [resolvable:$true] %s5600_s6 }
 0x49b   :  { %v4904_v25 = vrot.slane %v4810_v61, %v8291_v11  ;;  %5389 = vmin.xlane.f32.xlu0 %v5358_v59  ;;  %v5888_v55 = vpack.c.bf16 %v5508_v37, %v5507_v8  ;;  %v5891_v16 = vpack.c.bf16 %v5510_v42, %v5509_v34  ;;  %v5894_v35 = vpack.c.bf16 %v5512_v14, %v5511_v54  ;;  %v8295_v47 = vld [vmem:[#allocation20_spill] sm:$0xff]  ;;  %s5956_s3 = scalar_lea.vmem %s5601_s6, 128  ;;  %p5961_p1 = scmp.lt.s32.totalorder %s5601_s6, %s5601_s6 }
 0x49c   :  { %p5957_p0 = scmp.ne.s32.totalorder %s5601_s6, %s5956_s3  ;;  %p5962_p2 = scmp.lt.s32.totalorder %s5956_s3, %s5956_s3 }
 0x49d   :  { %v4905_v20 = vsel %vm4469_vm2, %v4904_v25, %v4900_v58  ;;  %5877 = vmatpush3.bf16.msra.mxu0 %v5876_v32 }
 0x49e   :  { %4907 = vst [vmem:[#allocation4 + $0x3] sm:$0x1] %v4905_v20  ;;  %v7965_v62 = vpop.xlane.xlu0 %4926  ;;  %v7967_v51 = vpop.xlane.xlu1 %5069  ;;  %5878 = vmatprep.subr.bf16.mxu0 %v6006_v15  ;;  %v4975_v20 = vrot.slane %v7953_v22, %v8294_v0  ;;  %p5963_p3 = por %p5962_p2, %p5961_p1 }
 0x49f   :  { %v4979_v63 = vrot.slane %v7965_v62, %v8293_v9 }
 0x4a0   :  { %p5964_p4 = pnand %p5963_p3, %p5957_p0 }
 0x4a1   :  { %5880 = vmatpush3.bf16.msra.mxu0 %v5879_v48  ;;  %v4980_v49 = vsel %vm4371_vm4, %v4979_v63, %v4975_v20 }
 0x4a2   :  { %v7970_v24 = vpop.xlane.xlu0 %5071  ;;  %v7972_v19 = vpop.xlane.xlu1 %4928  ;;  %5881 = vmatprep.subr.bf16.mxu0 %v6006_v15 }
 0x4a3   :  { %v4984_v58 = vrot.slane %v7972_v19, %v8283_v43  ;;  %v5124_v62 = vrot.slane %v7970_v24, %v8293_v9 }
 0x4a5   :  { %5883 = vmatpush3.bf16.msra.mxu0 %v5882_v45  ;;  %v4985_v19 = vsel %vm4378_vm5, %v4984_v58, %v4980_v49  ;;  %v5120_v45 = vrot.slane %v7967_v51, %v8294_v0 }
 0x4a6   :  { %v7980_v12 = vpop.xlane.xlu0 %5073  ;;  %v7982_v33 = vpop.xlane.xlu1 %4930  ;;  %5884 = vmatprep.subr.bf16.mxu0 %v6006_v15 }
 0x4a7   :  { %v5129_v22 = vrot.slane %v7980_v12, %v8283_v43  ;;  %v5125_v8 = vsel %vm4371_vm4, %v5124_v62, %v5120_v45 }
 0x4a9   :  { %5886 = vmatpush3.bf16.msra.mxu0 %v5885_v7 }
 0x4aa   :  { %v7985_v50 = vpop.xlane.xlu0 %5075  ;;  %v7987_v27 = vpop.xlane.xlu1 %4932  ;;  %5887 = vmatprep.subr.bf16.mxu0 %v6006_v15 }
 0x4ab   :  { %v4994_v32 = vrot.slane %v7987_v27, %v7336_v30 }
 0x4ad   :  { %5889 = vmatpush3.bf16.msra.mxu0 %v5888_v55 }
 0x4ae   :  { %v7998_v52 = vpop.xlane.xlu0 %5077  ;;  %v4935_v59 = vpop.xlane.xlu1 %4934  ;;  %5890 = vmatprep.subr.bf16.mxu0 %v6006_v15 }
 0x4af   :  { %v4999_v38 = vrot.slane %v4935_v59, %v8295_v47  ;;  %v5134_v59 = vrot.slane %v7985_v50, %v8285_v17  ;;  %v5139_v60 = vrot.slane %v7998_v52, %v7336_v30 }
 0x4b1   :  { %5892 = vmatpush3.bf16.msra.mxu0 %v5891_v16 }
 0x4b2   :  { %v8011_v28 = vpop.xlane.xlu0 %5079  ;;  %5893 = vmatprep.subr.bf16.mxu0 %v6006_v15  ;;  %v4989_v15 = vrot.slane %v7982_v33, %v8285_v17 }
 0x4b3   :  { %v5144_v37 = vrot.slane %v8011_v28, %v8295_v47 }
 0x4b4   :  { %v4990_v33 = vsel %vm4385_vm6, %v4989_v15, %v4985_v19 }
 0x4b5   :  { %v4937_v39 = vpop.xlane.xlu1 %4936  ;;  %5895 = vmatpush3.bf16.msra.mxu0 %v5894_v35  ;;  %v4995_v24 = vsel %vm4392_vm7, %v4994_v32, %v4990_v33 }
 0x4b6   :  { %v8020_v26 = vpop.xlane.xlu0 %5081  ;;  %v5004_v48 = vrot.slane %v4937_v39, %v8287_v3  ;;  %v5000_v12 = vsel %vm4399_vm8, %v4999_v38, %v4995_v24  ;;  %v5130_v39 = vsel %vm4378_vm5, %v5129_v22, %v5125_v8 }
 0x4b7   :  { %v5149_v55 = vrot.slane %v8020_v26, %v8287_v3  ;;  %v5135_v42 = vsel %vm4385_vm6, %v5134_v59, %v5130_v39 }
 0x4b8   :  { %v5005_v51 = vsel %vm4406_vm9, %v5004_v48, %v5000_v12 }
 0x4bc   :  { %v4939_v23 = vpop.xlane.xlu1 %4938 }
 0x4bd   :  { %v5009_v18 = vrot.slane %v4939_v23, %v8289_v40 }
 0x4be   :  { %v8036_v41 = vpop.xlane.xlu0 %5083 }
 0x4bf   :  { %v5010_v52 = vsel %vm4413_vm10, %v5009_v18, %v5005_v51  ;;  %v5154_v23 = vrot.slane %v8036_v41, %v8289_v40 }
 0x4c0   :  { %v4941_v29 = vpop.xlane.xlu1 %4940 }
 0x4c1   :  { %v5014_v5 = vrot.slane %v4941_v29, %v7384_v57  ;;  %v5140_v29 = vsel %vm4392_vm7, %v5139_v60, %v5135_v42 }
 0x4c3   :  { %v8039_v56 = vpop.xlane.xlu0 %5085  ;;  %v5015_v28 = vsel %vm4420_vm11, %v5014_v5, %v5010_v52 }
 0x4c4   :  { %v4943_v6 = vpop.xlane.xlu1 %4942  ;;  %v5159_v26 = vrot.slane %v8039_v56, %v7384_v57 }
 0x4c5   :  { %v5019_v7 = vrot.slane %v4943_v6, %v7393_v44 }
 0x4c7   :  { %v8041_v53 = vpop.xlane.xlu0 %5087  ;;  %v5020_v35 = vsel %vm4427_vm12, %v5019_v7, %v5015_v28 }
 0x4c8   :  { %v4945_v61 = vpop.xlane.xlu1 %4944  ;;  %v5164_v41 = vrot.slane %v8041_v53, %v7393_v44 }
 0x4c9   :  { %v5024_v50 = vrot.slane %v4945_v61, %v7408_v46  ;;  %v5145_v61 = vsel %vm4399_vm8, %v5144_v37, %v5140_v29 }
 0x4ca   :  { %v5150_v58 = vsel %vm4406_vm9, %v5149_v55, %v5145_v61 }
 0x4cb   :  { %v5155_v15 = vsel %vm4413_vm10, %v5154_v23, %v5150_v58 }
 0x4cc   :  { %v8043_v4 = vpop.xlane.xlu0 %5089  ;;  %v4947_v25 = vpop.xlane.xlu1 %4946  ;;  %v5160_v53 = vsel %vm4420_vm11, %v5159_v26, %v5155_v15 }
 0x4cd   :  { %v5029_v34 = vrot.slane %v4947_v25, %v7417_v31  ;;  %v5025_v25 = vsel %vm4434_vm13, %v5024_v50, %v5020_v35  ;;  %v5169_v20 = vrot.slane %v8043_v4, %v7408_v46  ;;  %v5165_v4 = vsel %vm4427_vm12, %v5164_v41, %v5160_v53 }
 0x4cf   :  { %v5030_v56 = vsel %vm4441_vm14, %v5029_v34, %v5025_v25 }
 0x4d1   :  { %v5092_v36 = vpop.xlane.xlu0 %5091  ;;  %v4949_v10 = vpop.xlane.xlu1 %4948 }
 0x4d2   :  { %v5034_v16 = vrot.slane %v4949_v10, %v7441_v2  ;;  %v5174_v10 = vrot.slane %v5092_v36, %v7417_v31  ;;  %v5170_v36 = vsel %vm4434_vm13, %v5169_v20, %v5165_v4 }
 0x4d4   :  { %v5035_v32 = vsel %vm4448_vm15, %v5034_v16, %v5030_v56  ;;  %v5175_v45 = vsel %vm4441_vm14, %v5174_v10, %v5170_v36 }
 0x4d5   :  { %v5094_v13 = vpop.xlane.xlu0 %5093  ;;  %v4951_v27 = vpop.xlane.xlu1 %4950 }
 0x4d6   :  { %v5039_v6 = vrot.slane %v4951_v27, %v7446_v21  ;;  %v5179_v62 = vrot.slane %v5094_v13, %v7441_v2 }
 0x4d8   :  { %v5040_v19 = vsel %vm4455_vm0, %v5039_v6, %v5035_v32  ;;  %v5180_v13 = vsel %vm4448_vm15, %v5179_v62, %v5175_v45 }
 0x4da   :  { %v5096_v54 = vpop.xlane.xlu0 %5095  ;;  %v4953_v14 = vpop.xlane.xlu1 %4952 }
 0x4db   :  { %v5044_v63 = vrot.slane %v4953_v14, %v8290_v1  ;;  %v5184_v22 = vrot.slane %v5096_v54, %v7446_v21 }
 0x4dd   :  { %v5045_v33 = vsel %vm4462_vm1, %v5044_v63, %v5040_v19  ;;  %v5185_v5 = vsel %vm4455_vm0, %v5184_v22, %v5180_v13 }
 0x4de   :  { %v5098_v49 = vpop.xlane.xlu0 %5097  ;;  %v4955_v38 = vpop.xlane.xlu1 %4954 }
 0x4df   :  { %v5049_v48 = vrot.slane %v4955_v38, %v8291_v11  ;;  %v5189_v18 = vrot.slane %v5098_v49, %v8290_v1 }
 0x4e1   :  { %v5050_v27 = vsel %vm4469_vm2, %v5049_v48, %v5045_v33  ;;  %v5190_v12 = vsel %vm4462_vm1, %v5189_v18, %v5185_v5 }
 0x4e2   :  { %5052 = vst [vmem:[#allocation4 + $0x4] sm:$0x1] %v5050_v27 }
 0x4e3   :  { %v5100_v59 = vpop.xlane.xlu0 %5099  ;;  %v5215_v24 = vpop.xlane.xlu1 %5214 }
 0x4e4   :  { %v5194_v60 = vrot.slane %v5100_v59, %v8291_v11  ;;  %v5265_v56 = vrot.slane %v5215_v24, %v8294_v0 }
 0x4e6   :  { %v5195_v7 = vsel %vm4469_vm2, %v5194_v60, %v5190_v12 }
 0x4e7   :  { %5197 = vst [vmem:[#allocation4 + $0x5] sm:$0x1] %v5195_v7  ;;  %v5217_v8 = vpop.xlane.xlu0 %5216  ;;  %v5360_v37 = vpop.xlane.xlu1 %5359 }
 0x4e8   :  { %v5269_v58 = vrot.slane %v5217_v8, %v8293_v9  ;;  %v5410_v22 = vrot.slane %v5360_v37, %v8294_v0 }
 0x4ea   :  { %v5270_v38 = vsel %vm4371_vm4, %v5269_v58, %v5265_v56 }
 0x4ec   :  { %v5362_v51 = vpop.xlane.xlu0 %5361  ;;  %v5219_v50 = vpop.xlane.xlu1 %5218 }
 0x4ed   :  { %v5274_v20 = vrot.slane %v5219_v50, %v8283_v43  ;;  %v5414_v53 = vrot.slane %v5362_v51, %v8293_v9 }
 0x4ef   :  { %v5275_v19 = vsel %vm4378_vm5, %v5274_v20, %v5270_v38 }
 0x4f0   :  { %v5364_v39 = vpop.xlane.xlu0 %5363  ;;  %v5221_v55 = vpop.xlane.xlu1 %5220 }
 0x4f1   :  { %v5279_v15 = vrot.slane %v5221_v55, %v8285_v17  ;;  %v5419_v48 = vrot.slane %v5364_v39, %v8283_v43  ;;  %v5415_v43 = vsel %vm4371_vm4, %v5414_v53, %v5410_v22 }
 0x4f3   :  { %v5280_v33 = vsel %vm4385_vm6, %v5279_v15, %v5275_v19 }
 0x4f4   :  { %v5366_v52 = vpop.xlane.xlu0 %5365 }
 0x4f5   :  { %v5223_v34 = vpop.xlane.xlu1 %5222  ;;  %v5424_v36 = vrot.slane %v5366_v52, %v8285_v17  ;;  %v5420_v17 = vsel %vm4378_vm5, %v5419_v48, %v5415_v43 }
 0x4f6   :  { %v5284_v49 = vrot.slane %v5223_v34, %v7336_v30 }
 0x4f7   :  { %v5425_v7 = vsel %vm4385_vm6, %v5424_v36, %v5420_v17 }
 0x4f8   :  { %v5368_v42 = vpop.xlane.xlu0 %5367  ;;  %v5285_v27 = vsel %vm4392_vm7, %v5284_v49, %v5280_v33 }
 0x4f9   :  { %v5225_v23 = vpop.xlane.xlu1 %5224  ;;  %v5429_v9 = vrot.slane %v5368_v42, %v7336_v30 }
 0x4fa   :  { %v5289_v62 = vrot.slane %v5225_v23, %v8295_v47 }
 0x4fc   :  { %v5370_v28 = vpop.xlane.xlu0 %5369  ;;  %v5290_v24 = vsel %vm4399_vm8, %v5289_v62, %v5285_v27 }
 0x4fd   :  { %v5227_v16 = vpop.xlane.xlu1 %5226  ;;  %v5434_v0 = vrot.slane %v5370_v28, %v8295_v47  ;;  %v5430_v47 = vsel %vm4392_vm7, %v5429_v9, %v5425_v7 }
 0x4fe   :  { %v5294_v4 = vrot.slane %v5227_v16, %v8287_v3 }
 0x4ff   :  { %v5435_v34 = vsel %vm4399_vm8, %v5434_v0, %v5430_v47 }
 0x500   :  { %v5295_v60 = vsel %vm4406_vm9, %v5294_v4, %v5290_v24 }
 0x501   :  { %v5372_v54 = vpop.xlane.xlu0 %5371 }
 0x502   :  { %v5229_v14 = vpop.xlane.xlu1 %5228  ;;  %v5439_v12 = vrot.slane %v5372_v54, %v8287_v3 }
 0x503   :  { %v5299_v18 = vrot.slane %v5229_v14, %v8289_v40 }
 0x504   :  { %v5440_v28 = vsel %vm4406_vm9, %v5439_v12, %v5435_v34 }
 0x505   :  { %v5374_v29 = vpop.xlane.xlu0 %5373  ;;  %v5300_v8 = vsel %vm4413_vm10, %v5299_v18, %v5295_v60 }
 0x506   :  { %v5231_v26 = vpop.xlane.xlu1 %5230  ;;  %v5444_v37 = vrot.slane %v5374_v29, %v8289_v40 }
 0x507   :  { %v5304_v45 = vrot.slane %v5231_v26, %v7384_v57 }
 0x508   :  { %v5445_v14 = vsel %vm4413_vm10, %v5444_v37, %v5440_v28 }
 0x509   :  { %v5305_v50 = vsel %vm4420_vm11, %v5304_v45, %v5300_v8 }
 0x50a   :  { %v5376_v35 = vpop.xlane.xlu0 %5375 }
 0x50b   :  { %v5233_v6 = vpop.xlane.xlu1 %5232  ;;  %v5449_v39 = vrot.slane %v5376_v35, %v7384_v57 }
 0x50c   :  { %v5309_v5 = vrot.slane %v5233_v6, %v7393_v44 }
 0x50d   :  { %v5450_v35 = vsel %vm4420_vm11, %v5449_v39, %v5445_v14 }
 0x50e   :  { %v5378_v61 = vpop.xlane.xlu0 %5377  ;;  %v5310_v42 = vsel %vm4427_vm12, %v5309_v5, %v5305_v50 }
 0x50f   :  { %v5235_v41 = vpop.xlane.xlu1 %5234  ;;  %v5454_v23 = vrot.slane %v5378_v61, %v7393_v44 }
 0x510   :  { %v5314_v30 = vrot.slane %v5235_v41, %v7408_v46 }
 0x512   :  { %v5315_v16 = vsel %vm4434_vm13, %v5314_v30, %v5310_v42 }
 0x513   :  { %v8123_v25 = vpop.xlane.xlu0 %5379 }
 0x514   :  { %v5237_v63 = vpop.xlane.xlu1 %5236  ;;  %v5459_v54 = vrot.slane %v8123_v25, %v7408_v46 }
 0x515   :  { %v5319_v51 = vrot.slane %v5237_v63, %v7417_v31  ;;  %v5455_v63 = vsel %vm4427_vm12, %v5454_v23, %v5450_v35 }
 0x516   :  { %v5460_v20 = vsel %vm4434_vm13, %v5459_v54, %v5455_v63 }
 0x517   :  { %v5382_v10 = vpop.xlane.xlu0 %5381  ;;  %v5320_v29 = vsel %vm4441_vm14, %v5319_v51, %v5315_v16 }
 0x518   :  { %v5239_v32 = vpop.xlane.xlu1 %5238  ;;  %v5464_v26 = vrot.slane %v5382_v10, %v7417_v31 }
 0x519   :  { %v5324_v55 = vrot.slane %v5239_v32, %v7441_v2 }
 0x51a   :  { %v5465_v15 = vsel %vm4441_vm14, %v5464_v26, %v5460_v20 }
 0x51b   :  { %v5325_v44 = vsel %vm4448_vm15, %v5324_v55, %v5320_v29 }
 0x51c   :  { %v5384_v13 = vpop.xlane.xlu0 %5383 }
 0x51d   :  { %v5241_v59 = vpop.xlane.xlu1 %5240  ;;  %v5469_v6 = vrot.slane %v5384_v13, %v7441_v2 }
 0x51e   :  { %v5329_v40 = vrot.slane %v5241_v59, %v7446_v21 }
 0x51f   :  { %v5470_v10 = vsel %vm4448_vm15, %v5469_v6, %v5465_v15 }
 0x520   :  { %v5386_v52 = vpop.xlane.xlu0 %5385  ;;  %v5330_v46 = vsel %vm4455_vm0, %v5329_v40, %v5325_v44 }
 0x521   :  { %v5243_v3 = vpop.xlane.xlu1 %5242  ;;  %v5474_v25 = vrot.slane %v5386_v52, %v7446_v21 }
 0x522   :  { %v5334_v57 = vrot.slane %v5243_v3, %v8290_v1 }
 0x523   :  { %v5475_v49 = vsel %vm4455_vm0, %v5474_v25, %v5470_v10 }
 0x524   :  { %v5388_v61 = vpop.xlane.xlu0 %5387  ;;  %v5335_v31 = vsel %vm4462_vm1, %v5334_v57, %v5330_v46 }
 0x525   :  { %v5245_v41 = vpop.xlane.xlu1 %5244  ;;  %v5479_v56 = vrot.slane %v5388_v61, %v8290_v1 }
 0x526   :  { %v5339_v58 = vrot.slane %v5245_v41, %v8291_v11 }
 0x527   :  { %v5480_v38 = vsel %vm4462_vm1, %v5479_v56, %v5475_v49 }
 0x528   :  { %v5340_v2 = vsel %vm4469_vm2, %v5339_v58, %v5335_v31  ;;  %v5390_v32 = vpop.xlane.xlu0 %5389 }
 0x529   :  { %5342 = vst [vmem:[#allocation4 + $0x6] sm:$0x1] %v5340_v2  ;;  %v5484_v21 = vrot.slane %v5390_v32, %v8291_v11 }
 0x52b   :  { %v5485_v53 = vsel %vm4469_vm2, %v5484_v21, %v5480_v38 }
 0x52c   :  { %5487 = vst [vmem:[#allocation4 + $0x7] sm:$0x1] %v5485_v53 }
 0x533   :  { %v5488_v62 = vld [vmem:[#allocation4] sm:$0xff] }
 0x534   :  { %v5489_v19 = vmax.f32 %v5488_v62, 0.0 }
 0x536   :  { %v5492_v1 = vadd.f32 0.0001, %v5489_v19  ;;  %5490 = vst [vmem:[#allocation4] sm:$0xff] %v5489_v19  ;;  %v5491_v48 = vadd.f32 1.0, %v5489_v19 }
 0x538   :  { %5944 = vrcp.f32 %v5492_v1 }
 0x542   :  { %v5945_v4 = vpop.eup %5944 }
 0x543   :  { %v5494_v22 = vmul.f32 %v5945_v4, %v5491_v48 }
 0x545   :  { %5946 = vlog2.f32 %v5494_v22 }
 0x54f   :  { %v5947_v33 = vpop.eup %5946 }
 0x550   :  { %v5496_v36 = vmul.f32 0.6931472, %v5947_v33 }
 0x552   :  { %5838 = vmatmul.mubr.f32.vlgmr.msra.gmra.mrb[160].mxu0 %v5496_v36 }
 0x553   :  { %5967 = shalt.err (!%p5964_p4)
}
 0x554   :  { %s5968_s19 = scalar_lea.hbm %s8222_s10, 128 }
 0x555   :  { %p5969_p5 = scmp.ne.s32.totalorder %s8222_s10, %s5968_s19  ;;  %p5972_p6 = scmp.lt.u32.totalorder %s5968_s19, %s8222_s10 }
 0x557   :  { %p5974_p7 = pnand %p5972_p6, %p5969_p5 }
 0x559   :  { %5977 = shalt.err (!%p5974_p7)
}
 0x55a   :  { %5603 = dma.vmem_to_hbm [thread:$0]  %s5601_s6, 128, %s8222_s10, [#allocation5]  }
 0x55b   :  { %s6009_s26 = smov [#allocation2]  }
 0x55c   :  { %s5590_s27 = sshll.u32 %s6009_s26, 4  ;;  %s5591_s27 = int_to_ptr.vmem [resolvable:$true] %s5590_s27 }
 0x55d   :  { %s5978_s28 = scalar_lea.vmem %s5591_s27, 128  ;;  %p5983_p9 = scmp.lt.s32.totalorder %s5591_s27, %s5591_s27 }
 0x55e   :  { %p5979_p8 = scmp.ne.s32.totalorder %s5591_s27, %s5978_s28  ;;  %p5984_p10 = scmp.lt.s32.totalorder %s5978_s28, %s5978_s28 }
 0x560   :  { %p5985_p11 = por %p5984_p10, %p5983_p9 }
 0x562   :  { %p5986_p12 = pnand %p5985_p11, %p5979_p8 }
 0x625   :  { %v5579_v11 = vpop.f32.mrb[160].mxu0 }
 0x626   :  { %5583 = vst [vmem:[#allocation2] sm:$0xff] %v5579_v11  ;;  %v5839_v18 = vpop.f32.mrb[161].mxu0 }
 0x627   :  { %5989 = shalt.err (!%p5986_p12)
}
 0x628   :  { %s5990_s11 = scalar_lea.hbm %s8221_s9, 128 }
 0x629   :  { %p5991_p13 = scmp.ne.s32.totalorder %s8221_s9, %s5990_s11  ;;  %p5994_p0 = scmp.lt.u32.totalorder %s5990_s11, %s8221_s9 }
 0x62b   :  { %p5996_p1 = pnand %p5994_p0, %p5991_p13 }
 0x62d   :  { %5999 = shalt.err (!%p5996_p1)
}
 0x62e   :  { %5593 = dma.vmem_to_hbm [thread:$0]  %s5591_s27, 128, %s8221_s9, [#allocation3]  }
 0x62f   :  { %6000 = dma.done.wait [#allocation3], 128  }
 0x630   :  { %6001 = vsyncadd [#allocation3], 4294967168 }
 0x631   :  { %6002 = dma.done.wait [#allocation5], 128  }
 0x632   :  { %6003 = vsyncadd [#allocation5], 4294967168 }
 0x633   :  { %5610 = vsyncpa [#allocation3], 1 }
 0x634   :  { %5611 = vsyncpa [#allocation5], 1 }

</bundles_post_ra>
